<compile_context>
chip_gen: v5e
topology: v5e:2x2
jax: 0.10.0
libtpu: 0.0.40
codegen_flags: <defaults>
</compile_context>

<pallas_src>
import jax
import jax.numpy as jnp
from jax.experimental import pallas as pl
from jax.experimental.pallas import tpu as pltpu


# ------------------------------ Pallas kernel ------------------------------ #

def _basic_block_kernel(x_ref, w1_ref, b1_ref, w2_ref, b2_ref, out_ref, pad_sc):
    # x_ref:   (1, H, W, Cin)    input tile (one image)
    # w1_ref:  (9*Cin, Cmid)     conv1 taps, BN1 scale folded in
    # b1_ref:  (1, Cmid)         folded BN1 bias
    # w2_ref:  (9*Cmid, Cout)    conv2 taps, BN2 scale folded in
    # b2_ref:  (1, Cout)         folded BN2 bias
    # out_ref: (1, H*W, Cout)    output kept in matmul-native layout
    # pad_sc:  (H+2, W+2, C)     zero-padded VMEM scratch, reused by both convs
    H, W = x_ref.shape[1], x_ref.shape[2]
    C = pad_sc.shape[2]
    Cout = out_ref.shape[2]

    def im2col():
        # (H+2, W+2, C) padded map -> (H*W, 9*C); column order (ky*3+kx)*C + c
        # matches the (3,3,Cin,Cout).reshape(9*Cin, Cout) weight layout.  Each
        # window slice only restacks sublanes (the lane dim = C stays put).
        cols = [pad_sc[ky:ky + H, kx:kx + W, :].reshape(H * W, C)
                for ky in range(3) for kx in range(3)]
        return jnp.concatenate(cols, axis=1)

    # Zero once per image: the interior writes below never touch the halo
    # ring, so a single fill serves both convolutions.
    pad_sc[...] = jnp.zeros_like(pad_sc)

    # ---- relu(bn1(conv1(x))): one im2col matmul on the MXU, f32 accumulate --
    pad_sc[1:1 + H, 1:1 + W, :] = x_ref[0].astype(pad_sc.dtype)
    y1 = jnp.dot(im2col(), w1_ref[...], preferred_element_type=jnp.float32)
    y1 = jnp.maximum(y1 + b1_ref[0], 0.0)

    # ---- conv2 input: overwrite the same padded scratch (halo stays zero) ---
    pad_sc[1:1 + H, 1:1 + W, :] = y1.reshape(H, W, C)

    # ---- relu(bn2(conv2(.)) + x): matmul + bias + residual + ReLU ----------
    y2 = jnp.dot(im2col(), w2_ref[...], preferred_element_type=jnp.float32)
    y2 = y2 + b2_ref[0] + x_ref[0].reshape(H * W, Cout).astype(jnp.float32)
    out_ref[0] = jnp.maximum(y2, 0.0).astype(out_ref.dtype)


# -------------------------------- Wrapper ----------------------------------- #

def _fold_bn(gamma, beta, mean, var, eps=1e-5):
    scale = gamma / jnp.sqrt(var + eps)
    return scale, beta - mean * scale


def _fold_weight(w_oihw, scale):
    """PyTorch OIHW conv weight -> (9*Cin, Cout) with per-Cout BN scale folded."""
    cout, cin = w_oihw.shape[0], w_oihw.shape[1]
    w = jnp.transpose(w_oihw, (2, 3, 1, 0)).reshape(9 * cin, cout)
    return (w * scale[None, :]).astype(jnp.float32)


def basic_block_forward(x_nchw, params, eps=1e-5):
    """BasicBlock forward (stride=1, no downsample). x_nchw: (N, C, H, W) f32."""
    x = jnp.transpose(x_nchw, (0, 2, 3, 1))          # NCHW -> NHWC
    N, H, W, Cin = x.shape

    s1, b1 = _fold_bn(params["bn1_gamma"], params["bn1_beta"],
                      params["bn1_mean"], params["bn1_var"], eps)
    s2, b2 = _fold_bn(params["bn2_gamma"], params["bn2_beta"],
                      params["bn2_mean"], params["bn2_var"], eps)
    w1 = _fold_weight(params["conv1_w"], s1)
    w2 = _fold_weight(params["conv2_w"], s2)
    Cmid, Cout = w1.shape[1], w2.shape[1]
    assert Cin == Cmid == Cout, "identity residual requires inplanes == planes"
    # TODO(synk): stride>1 / downsample branch not implemented (module defaults).

    b1 = b1.reshape(1, Cmid).astype(jnp.float32)
    b2 = b2.reshape(1, Cout).astype(jnp.float32)

    out_flat = pl.pallas_call(
        _basic_block_kernel,
        out_shape=jax.ShapeDtypeStruct((N, H * W, Cout), x.dtype),
        grid=(N,),
        in_specs=[
            pl.BlockSpec((1, H, W, Cin), lambda n: (n, 0, 0, 0)),
            pl.BlockSpec((9 * Cin, Cmid), lambda n: (0, 0)),
            pl.BlockSpec((1, Cmid), lambda n: (0, 0)),
            pl.BlockSpec((9 * Cmid, Cout), lambda n: (0, 0)),
            pl.BlockSpec((1, Cout), lambda n: (0, 0)),
        ],
        out_specs=pl.BlockSpec((1, H * W, Cout), lambda n: (n, 0, 0)),
        scratch_shapes=[pltpu.VMEM((H + 2, W + 2, Cin), jnp.float32)],
        compiler_params=pltpu.CompilerParams(
            dimension_semantics=("parallel",)),
    )(x, w1, b1, w2, b2)

    # (N, H*W, C) -> (N, H, W, C) -> NCHW; boundary-only layout ops in XLA.
    return jnp.transpose(out_flat.reshape(N, H, W, Cout), (0, 3, 1, 2))


# ------------------------------ Reference ---------------------------------- #

def basic_block_reference(x, params, eps=1e-5):
    def conv(inp, w):
        return jax.lax.conv_general_dilated(
            inp, w, window_strides=(1, 1), padding=((1, 1), (1, 1)),
            dimension_numbers=("NCHW", "OIHW", "NCHW"))

    def bn(inp, g, b, m, v):
        return (inp - m[None, :, None, None]) / jnp.sqrt(v + eps)[None, :, None, None] \
               * g[None, :, None, None] + b[None, :, None, None]

    out = conv(x, params["conv1_w"])
    out = bn(out, params["bn1_gamma"], params["bn1_beta"],
             params["bn1_mean"], params["bn1_var"])
    out = jnp.maximum(out, 0.0)
    out = conv(out, params["conv2_w"])
    out = bn(out, params["bn2_gamma"], params["bn2_beta"],
             params["bn2_mean"], params["bn2_var"])
    out = out + x
    return jnp.maximum(out, 0.0)


# --------------------------------- Main ------------------------------------ #

if __name__ == "__main__":
    N, C, H, W = 2, 4, 16, 16   # inplanes == planes == 4, stride=1, downsample=None
    key = jax.random.PRNGKey(0)
    k = jax.random.split(key, 8)

    x = jax.random.normal(k[0], (N, C, H, W), jnp.float32)

    params = {
        "conv1_w": 0.1 * jax.random.normal(k[1], (C, C, 3, 3), jnp.float32),
        "conv2_w": 0.1 * jax.random.normal(k[2], (C, C, 3, 3), jnp.float32),
        "bn1_gamma": 1.0 + 0.1 * jax.random.normal(k[3], (C,), jnp.float32),
        "bn1_beta": 0.1 * jax.random.normal(k[4], (C,), jnp.float32),
        "bn1_mean": 0.05 * jax.random.normal(k[5], (C,), jnp.float32),
        "bn1_var": jnp.abs(jax.random.normal(k[6], (C,), jnp.float32)) + 0.5,
        "bn2_gamma": 1.0 + 0.1 * jax.random.normal(k[7], (C,), jnp.float32),
        "bn2_beta": jnp.linspace(-0.1, 0.1, C).astype(jnp.float32),
        "bn2_mean": jnp.linspace(-0.05, 0.05, C).astype(jnp.float32),
        "bn2_var": jnp.linspace(0.6, 1.4, C).astype(jnp.float32),
    }

    out = basic_block_forward(x, params)
    out = jax.block_until_ready(out)

    ref = jax.block_until_ready(basic_block_reference(x, params))
    assert out.shape == (N, C, H, W)
    assert jnp.allclose(out, ref, rtol=1e-4, atol=1e-4), (
        f"max abs err {jnp.max(jnp.abs(out - ref))}")

    print("KERNEL_OK")
</pallas_src>

<mosaic_0001>
module attributes {stable_mosaic.version = 11 : i64} {
  func.func @_basic_block_kernel(%arg0: i32, %arg1: memref<1x16x16x4xf32, #tpu.memory_space<vmem>>, %arg2: memref<36x4xf32, #tpu.memory_space<vmem>>, %arg3: memref<1x4xf32, #tpu.memory_space<vmem>>, %arg4: memref<36x4xf32, #tpu.memory_space<vmem>>, %arg5: memref<1x4xf32, #tpu.memory_space<vmem>>, %arg6: memref<1x256x4xf32, #tpu.memory_space<vmem>>, %arg7: memref<18x18x4xf32, #tpu.memory_space<vmem>>) attributes {dimension_semantics = [#tpu.dimension_semantics<parallel>], iteration_bounds = array<i64: 2>, scalar_prefetch = 0 : i64, scratch_operands = 1 : i64, tpu.core_type = #tpu.core_type<tc>, window_params = [{transform_indices = @transform_0, window_bounds = array<i64: 1, 16, 16, 4>}, {pipeline_mode = #tpu.pipeline_mode<synchronous>, transform_indices = @transform_1, window_bounds = array<i64: 36, 4>}, {pipeline_mode = #tpu.pipeline_mode<synchronous>, transform_indices = @transform_2, window_bounds = array<i64: 1, 4>}, {pipeline_mode = #tpu.pipeline_mode<synchronous>, transform_indices = @transform_3, window_bounds = array<i64: 36, 4>}, {pipeline_mode = #tpu.pipeline_mode<synchronous>, transform_indices = @transform_4, window_bounds = array<i64: 1, 4>}, {transform_indices = @transform_5, window_bounds = array<i64: 1, 256, 4>}]} {
    %cst = arith.constant 0.000000e+00 : f32
    %0 = vector.broadcast %cst : f32 to vector<18x18x4xf32>
    %c0 = arith.constant 0 : index
    %c0_0 = arith.constant 0 : index
    %c0_1 = arith.constant 0 : index
    %1 = vector.load %arg7[%c0, %c0_0, %c0_1] : memref<18x18x4xf32, #tpu.memory_space<vmem>>, vector<18x18x4xf32>
    tpu.vector_store %arg7[%c0, %c0_0, %c0_1], %0 {strides = array<i32>} : memref<18x18x4xf32, #tpu.memory_space<vmem>>, vector<18x18x4xf32>,
    %c0_2 = arith.constant 0 : index
    %c0_3 = arith.constant 0 : index
    %c0_4 = arith.constant 0 : index
    %c0_5 = arith.constant 0 : index
    %2 = vector.load %arg1[%c0_2, %c0_3, %c0_4, %c0_5] : memref<1x16x16x4xf32, #tpu.memory_space<vmem>>, vector<1x16x16x4xf32>
    %3 = vector.shape_cast %2 : vector<1x16x16x4xf32> to vector<16x16x4xf32>
    %c1 = arith.constant 1 : index
    %c1_6 = arith.constant 1 : index
    %c0_7 = arith.constant 0 : index
    %4 = vector.load %arg7[%c1, %c1_6, %c0_7] : memref<18x18x4xf32, #tpu.memory_space<vmem>>, vector<16x16x4xf32>
    tpu.vector_store %arg7[%c1, %c1_6, %c0_7], %3 {strides = array<i32>} : memref<18x18x4xf32, #tpu.memory_space<vmem>>, vector<16x16x4xf32>,
    %c0_8 = arith.constant 0 : index
    %c0_9 = arith.constant 0 : index
    %c0_10 = arith.constant 0 : index
    %5 = vector.load %arg7[%c0_8, %c0_9, %c0_10] : memref<18x18x4xf32, #tpu.memory_space<vmem>>, vector<16x16x4xf32>
    %6 = vector.shape_cast %5 : vector<16x16x4xf32> to vector<256x4xf32>
    %c0_11 = arith.constant 0 : index
    %c1_12 = arith.constant 1 : index
    %c0_13 = arith.constant 0 : index
    %7 = vector.load %arg7[%c0_11, %c1_12, %c0_13] : memref<18x18x4xf32, #tpu.memory_space<vmem>>, vector<16x16x4xf32>
    %8 = vector.shape_cast %7 : vector<16x16x4xf32> to vector<256x4xf32>
    %c0_14 = arith.constant 0 : index
    %c2 = arith.constant 2 : index
    %c0_15 = arith.constant 0 : index
    %9 = vector.load %arg7[%c0_14, %c2, %c0_15] : memref<18x18x4xf32, #tpu.memory_space<vmem>>, vector<16x16x4xf32>
    %10 = vector.shape_cast %9 : vector<16x16x4xf32> to vector<256x4xf32>
    %c1_16 = arith.constant 1 : index
    %c0_17 = arith.constant 0 : index
    %c0_18 = arith.constant 0 : index
    %11 = vector.load %arg7[%c1_16, %c0_17, %c0_18] : memref<18x18x4xf32, #tpu.memory_space<vmem>>, vector<16x16x4xf32>
    %12 = vector.shape_cast %11 : vector<16x16x4xf32> to vector<256x4xf32>
    %c1_19 = arith.constant 1 : index
    %c1_20 = arith.constant 1 : index
    %c0_21 = arith.constant 0 : index
    %13 = vector.load %arg7[%c1_19, %c1_20, %c0_21] : memref<18x18x4xf32, #tpu.memory_space<vmem>>, vector<16x16x4xf32>
    %14 = vector.shape_cast %13 : vector<16x16x4xf32> to vector<256x4xf32>
    %c1_22 = arith.constant 1 : index
    %c2_23 = arith.constant 2 : index
    %c0_24 = arith.constant 0 : index
    %15 = vector.load %arg7[%c1_22, %c2_23, %c0_24] : memref<18x18x4xf32, #tpu.memory_space<vmem>>, vector<16x16x4xf32>
    %16 = vector.shape_cast %15 : vector<16x16x4xf32> to vector<256x4xf32>
    %c2_25 = arith.constant 2 : index
    %c0_26 = arith.constant 0 : index
    %c0_27 = arith.constant 0 : index
    %17 = vector.load %arg7[%c2_25, %c0_26, %c0_27] : memref<18x18x4xf32, #tpu.memory_space<vmem>>, vector<16x16x4xf32>
    %18 = vector.shape_cast %17 : vector<16x16x4xf32> to vector<256x4xf32>
    %c2_28 = arith.constant 2 : index
    %c1_29 = arith.constant 1 : index
    %c0_30 = arith.constant 0 : index
    %19 = vector.load %arg7[%c2_28, %c1_29, %c0_30] : memref<18x18x4xf32, #tpu.memory_space<vmem>>, vector<16x16x4xf32>
    %20 = vector.shape_cast %19 : vector<16x16x4xf32> to vector<256x4xf32>
    %c2_31 = arith.constant 2 : index
    %c2_32 = arith.constant 2 : index
    %c0_33 = arith.constant 0 : index
    %21 = vector.load %arg7[%c2_31, %c2_32, %c0_33] : memref<18x18x4xf32, #tpu.memory_space<vmem>>, vector<16x16x4xf32>
    %22 = vector.shape_cast %21 : vector<16x16x4xf32> to vector<256x4xf32>
    %23 = tpu.concatenate %6, %8, %10, %12, %14, %16, %18, %20, %22 in 1 : vector<256x4xf32>, vector<256x4xf32>, vector<256x4xf32>, vector<256x4xf32>, vector<256x4xf32>, vector<256x4xf32>, vector<256x4xf32>, vector<256x4xf32>, vector<256x4xf32> -> vector<256x36xf32>
    %c0_34 = arith.constant 0 : index
    %c0_35 = arith.constant 0 : index
    %24 = vector.load %arg2[%c0_34, %c0_35] : memref<36x4xf32, #tpu.memory_space<vmem>>, vector<36x4xf32>
    %cst_36 = arith.constant dense<0.000000e+00> : vector<256x4xf32>
    %25 = tpu.matmul %23, %24, %cst_36 {dimension_numbers = #tpu.dot_dimension_numbers<[1], [0], [0], [1], [0, 0, 1, 1], [], []>} : vector<256x36xf32>, vector<36x4xf32>, vector<256x4xf32> -> vector<256x4xf32>
    %c0_37 = arith.constant 0 : index
    %c0_38 = arith.constant 0 : index
    %26 = vector.load %arg3[%c0_37, %c0_38] : memref<1x4xf32, #tpu.memory_space<vmem>>, vector<1x4xf32>
    %27 = vector.shape_cast %26 : vector<1x4xf32> to vector<4xf32>
    %28 = vector.shape_cast %27 : vector<4xf32> to vector<1x4xf32>
    %29 = vector.broadcast %28 : vector<1x4xf32> to vector<256x4xf32>
    %30 = arith.addf %25, %29 : vector<256x4xf32>
    %cst_39 = arith.constant 0.000000e+00 : f32
    %31 = vector.broadcast %cst_39 : f32 to vector<256x4xf32>
    %32 = arith.maximumf %30, %31 : vector<256x4xf32>
    %33 = vector.shape_cast %32 : vector<256x4xf32> to vector<16x16x4xf32>
    %c1_40 = arith.constant 1 : index
    %c1_41 = arith.constant 1 : index
    %c0_42 = arith.constant 0 : index
    %34 = vector.load %arg7[%c1_40, %c1_41, %c0_42] : memref<18x18x4xf32, #tpu.memory_space<vmem>>, vector<16x16x4xf32>
    tpu.vector_store %arg7[%c1_40, %c1_41, %c0_42], %33 {strides = array<i32>} : memref<18x18x4xf32, #tpu.memory_space<vmem>>, vector<16x16x4xf32>,
    %c0_43 = arith.constant 0 : index
    %c0_44 = arith.constant 0 : index
    %c0_45 = arith.constant 0 : index
    %35 = vector.load %arg7[%c0_43, %c0_44, %c0_45] : memref<18x18x4xf32, #tpu.memory_space<vmem>>, vector<16x16x4xf32>
    %36 = vector.shape_cast %35 : vector<16x16x4xf32> to vector<256x4xf32>
    %c0_46 = arith.constant 0 : index
    %c1_47 = arith.constant 1 : index
    %c0_48 = arith.constant 0 : index
    %37 = vector.load %arg7[%c0_46, %c1_47, %c0_48] : memref<18x18x4xf32, #tpu.memory_space<vmem>>, vector<16x16x4xf32>
    %38 = vector.shape_cast %37 : vector<16x16x4xf32> to vector<256x4xf32>
    %c0_49 = arith.constant 0 : index
    %c2_50 = arith.constant 2 : index
    %c0_51 = arith.constant 0 : index
    %39 = vector.load %arg7[%c0_49, %c2_50, %c0_51] : memref<18x18x4xf32, #tpu.memory_space<vmem>>, vector<16x16x4xf32>
    %40 = vector.shape_cast %39 : vector<16x16x4xf32> to vector<256x4xf32>
    %c1_52 = arith.constant 1 : index
    %c0_53 = arith.constant 0 : index
    %c0_54 = arith.constant 0 : index
    %41 = vector.load %arg7[%c1_52, %c0_53, %c0_54] : memref<18x18x4xf32, #tpu.memory_space<vmem>>, vector<16x16x4xf32>
    %42 = vector.shape_cast %41 : vector<16x16x4xf32> to vector<256x4xf32>
    %c1_55 = arith.constant 1 : index
    %c1_56 = arith.constant 1 : index
    %c0_57 = arith.constant 0 : index
    %43 = vector.load %arg7[%c1_55, %c1_56, %c0_57] : memref<18x18x4xf32, #tpu.memory_space<vmem>>, vector<16x16x4xf32>
    %44 = vector.shape_cast %43 : vector<16x16x4xf32> to vector<256x4xf32>
    %c1_58 = arith.constant 1 : index
    %c2_59 = arith.constant 2 : index
    %c0_60 = arith.constant 0 : index
    %45 = vector.load %arg7[%c1_58, %c2_59, %c0_60] : memref<18x18x4xf32, #tpu.memory_space<vmem>>, vector<16x16x4xf32>
    %46 = vector.shape_cast %45 : vector<16x16x4xf32> to vector<256x4xf32>
    %c2_61 = arith.constant 2 : index
    %c0_62 = arith.constant 0 : index
    %c0_63 = arith.constant 0 : index
    %47 = vector.load %arg7[%c2_61, %c0_62, %c0_63] : memref<18x18x4xf32, #tpu.memory_space<vmem>>, vector<16x16x4xf32>
    %48 = vector.shape_cast %47 : vector<16x16x4xf32> to vector<256x4xf32>
    %c2_64 = arith.constant 2 : index
    %c1_65 = arith.constant 1 : index
    %c0_66 = arith.constant 0 : index
    %49 = vector.load %arg7[%c2_64, %c1_65, %c0_66] : memref<18x18x4xf32, #tpu.memory_space<vmem>>, vector<16x16x4xf32>
    %50 = vector.shape_cast %49 : vector<16x16x4xf32> to vector<256x4xf32>
    %c2_67 = arith.constant 2 : index
    %c2_68 = arith.constant 2 : index
    %c0_69 = arith.constant 0 : index
    %51 = vector.load %arg7[%c2_67, %c2_68, %c0_69] : memref<18x18x4xf32, #tpu.memory_space<vmem>>, vector<16x16x4xf32>
    %52 = vector.shape_cast %51 : vector<16x16x4xf32> to vector<256x4xf32>
    %53 = tpu.concatenate %36, %38, %40, %42, %44, %46, %48, %50, %52 in 1 : vector<256x4xf32>, vector<256x4xf32>, vector<256x4xf32>, vector<256x4xf32>, vector<256x4xf32>, vector<256x4xf32>, vector<256x4xf32>, vector<256x4xf32>, vector<256x4xf32> -> vector<256x36xf32>
    %c0_70 = arith.constant 0 : index
    %c0_71 = arith.constant 0 : index
    %54 = vector.load %arg4[%c0_70, %c0_71] : memref<36x4xf32, #tpu.memory_space<vmem>>, vector<36x4xf32>
    %cst_72 = arith.constant dense<0.000000e+00> : vector<256x4xf32>
    %55 = tpu.matmul %53, %54, %cst_72 {dimension_numbers = #tpu.dot_dimension_numbers<[1], [0], [0], [1], [0, 0, 1, 1], [], []>} : vector<256x36xf32>, vector<36x4xf32>, vector<256x4xf32> -> vector<256x4xf32>
    %c0_73 = arith.constant 0 : index
    %c0_74 = arith.constant 0 : index
    %56 = vector.load %arg5[%c0_73, %c0_74] : memref<1x4xf32, #tpu.memory_space<vmem>>, vector<1x4xf32>
    %57 = vector.shape_cast %56 : vector<1x4xf32> to vector<4xf32>
    %58 = vector.shape_cast %57 : vector<4xf32> to vector<1x4xf32>
    %59 = vector.broadcast %58 : vector<1x4xf32> to vector<256x4xf32>
    %60 = arith.addf %55, %59 : vector<256x4xf32>
    %c0_75 = arith.constant 0 : index
    %c0_76 = arith.constant 0 : index
    %c0_77 = arith.constant 0 : index
    %c0_78 = arith.constant 0 : index
    %61 = vector.load %arg1[%c0_75, %c0_76, %c0_77, %c0_78] : memref<1x16x16x4xf32, #tpu.memory_space<vmem>>, vector<1x16x16x4xf32>
    %62 = vector.shape_cast %61 : vector<1x16x16x4xf32> to vector<16x16x4xf32>
    %63 = vector.shape_cast %62 : vector<16x16x4xf32> to vector<256x4xf32>
    %64 = arith.addf %60, %63 : vector<256x4xf32>
    %cst_79 = arith.constant 0.000000e+00 : f32
    %65 = vector.broadcast %cst_79 : f32 to vector<256x4xf32>
    %66 = arith.maximumf %64, %65 : vector<256x4xf32>
    %c0_80 = arith.constant 0 : index
    %c0_81 = arith.constant 0 : index
    %c0_82 = arith.constant 0 : index
    %67 = vector.load %arg6[%c0_80, %c0_81, %c0_82] : memref<1x256x4xf32, #tpu.memory_space<vmem>>, vector<1x256x4xf32>
    %68 = vector.shape_cast %67 : vector<1x256x4xf32> to vector<256x4xf32>
    %69 = vector.shape_cast %66 : vector<256x4xf32> to vector<1x256x4xf32>
    tpu.vector_store %arg6[%c0_80, %c0_81, %c0_82], %69 {strides = array<i32>} : memref<1x256x4xf32, #tpu.memory_space<vmem>>, vector<1x256x4xf32>,
    return
  }
  func.func @transform_0(%arg0: i32) -> (i32, i32, i32, i32) {
    %c0_i32 = arith.constant 0 : i32
    %c0_i32_0 = arith.constant 0 : i32
    %c0_i32_1 = arith.constant 0 : i32
    %c0_i32_2 = arith.constant 0 : i32
    return %arg0, %c0_i32, %c0_i32_0, %c0_i32_1 : i32, i32, i32, i32
  }
  func.func @transform_1(%arg0: i32) -> (i32, i32) {
    %c0_i32 = arith.constant 0 : i32
    %c0_i32_0 = arith.constant 0 : i32
    %c0_i32_1 = arith.constant 0 : i32
    return %c0_i32, %c0_i32_0 : i32, i32
  }
  func.func @transform_2(%arg0: i32) -> (i32, i32) {
    %c0_i32 = arith.constant 0 : i32
    %c0_i32_0 = arith.constant 0 : i32
    %c0_i32_1 = arith.constant 0 : i32
    return %c0_i32, %c0_i32_0 : i32, i32
  }
  func.func @transform_3(%arg0: i32) -> (i32, i32) {
    %c0_i32 = arith.constant 0 : i32
    %c0_i32_0 = arith.constant 0 : i32
    %c0_i32_1 = arith.constant 0 : i32
    return %c0_i32, %c0_i32_0 : i32, i32
  }
  func.func @transform_4(%arg0: i32) -> (i32, i32) {
    %c0_i32 = arith.constant 0 : i32
    %c0_i32_0 = arith.constant 0 : i32
    %c0_i32_1 = arith.constant 0 : i32
    return %c0_i32, %c0_i32_0 : i32, i32
  }
  func.func @transform_5(%arg0: i32) -> (i32, i32, i32) {
    %c0_i32 = arith.constant 0 : i32
    %c0_i32_0 = arith.constant 0 : i32
    %c0_i32_1 = arith.constant 0 : i32
    return %arg0, %c0_i32, %c0_i32_0 : i32, i32, i32
  }
}

</mosaic_0001>

<bundles_post_ra>
// kernel: tpu_custom_call.1
= control target key start
LH: loop header
LB: loop body
LE: loop exit
PB: predicated region body
PF: predicated region fallthrough
CT: control target
= control target key end

     0   :  { %s4378_s18 = smov 0   ;;  %s7751_s0 = inlined_call_operand.vmem [shape: f32[2,16,16,4], index: 0, kind: input, shape index: {}]   ;;  %s7752_s1 = inlined_call_operand.vmem [shape: f32[36,4], index: 1, kind: input, shape index: {}]   ;;  %s7753_s2 = inlined_call_operand.vmem [shape: f32[1,4], index: 2, kind: input, shape index: {}]   ;;  %s7754_s3 = inlined_call_operand.vmem [shape: f32[36,4], index: 3, kind: input, shape index: {}]   ;;  %s7755_s4 = inlined_call_operand.vmem [shape: f32[1,4], index: 4, kind: input, shape index: {}]   ;;  %s7756_s5 = inlined_call_operand.vmem [shape: f32[2,256,4], index: 5, kind: output, shape index: {}]  }
   0x1 LB: > { %s4181_s19 = sadd.s32 4294967295, %s4337_s18   ;;  %p4185_p0 = scmp.ge.s32.totalorder %s4337_s18, 1  ;;  %s4337_s18 = sphi %s4378_s18, %s15_s18  }
   0x2   : > { %p187_p1 = scmp.lt.s32.totalorder %s4337_s18, 3 }
   0x4   : > { %p188_p2 = pnand %p4185_p0, %p187_p1 }
   0x6   : > { %191 = sbr.rel (%p188_p2) target bundleno = 1911 (0x777), region = 40 }
   0xb   : > { %vm225_vm0 = vcmask 31744   ;;  %v4339_v0 = vmov 0.0   ;;  %s4340_s20 = smov 4   ;;  %p215_p3 = scmp.lt.s32.totalorder %s4181_s19, 1  ;;  %vm228_vm1 = vcmask 25600   ;;  %vm2028_vm2 = vcmask 1043456  }
   0xc   : > { %226 = vst.msk [vmem:[#allocation2] sm:$0xff] %vm225_vm0, %v4339_v0  ;;  %s4341_s25 = smov 8   ;;  %s4342_s26 = smov 12   ;;  %vm1691_vm3 = vcmask 64512   ;;  %vm1724_vm4 = vcmask 97280   ;;  %vm1790_vm5 = vcmask 162816  }
   0xd   : > { %227 = vst.msk [vmem:[#allocation2 + $0x8] sm:$0xff] %vm225_vm0, %v4339_v0  ;;  %s8395_s19 = smov (!%p215_p3, %s4181_s19), 1  ;;  %s4343_s27 = smov 16   ;;  %vm1757_vm6 = vcmask 130048   ;;  %vm1823_vm7 = vcmask 195584   ;;  %vm1889_vm8 = vcmask 261120  }
   0xe   : > { %230 = vst.msk [vmem:[#allocation2 + $0x18] sm:$0xff] %vm225_vm0, %v4339_v0  ;;  %s4258_s21 = sshll.u32 %s8395_s19, 8  ;;  %s4344_s28 = smov 20   ;;  %vm1856_vm9 = vcmask 228352   ;;  %vm1931_vm10 = vcmask 293888  }
   0xf   : > { %231 = vst.msk [vmem:[#allocation2 + $0x20] sm:$0xff] %vm225_vm0, %v4339_v0  ;;  %s4461_s24 = scalar_lea.vmem %s7751_s0, %s4258_s21  ;;  %s4345_s29 = smov 24  }
  0x10   : > { %233 = vst.msk [vmem:[#allocation2 + $0x30] sm:$0xff] %vm225_vm0, %v4339_v0  ;;  %v283_v2 = vld [vmem:[%s4461_s24 + $0x10] sm:$0xff]  ;;  %v281_v3 = vld [vmem:[%s4461_s24] sm:$0xff]  ;;  %v284_v7 = vld [vmem:[%s4461_s24 + $0x18] sm:$0xff]  ;;  %s4346_s30 = smov 28   ;;  %s4347_s6 = smov 32  }
  0x11   : > { %234 = vst.msk [vmem:[#allocation2 + $0x38] sm:$0xff] %vm225_vm0, %v4339_v0  ;;  %v282_v8 = vld [vmem:[%s4461_s24 + $0x8] sm:$0xff]  ;;  %v285_v9 = vld [vmem:[%s4461_s24 + $0x20] sm:$0xff]  ;;  %v287_v10 = vld [vmem:[%s4461_s24 + $0x30] sm:$0xff]  ;;  %s7490_s15 = scalar_lea.vmem %s7756_s5, %s4258_s21 }
  0x12   : > { %236 = vst.msk [vmem:[#allocation2 + $0x48] sm:$0xff] %vm225_vm0, %v4339_v0  ;;  %v286_v11 = vld [vmem:[%s4461_s24 + $0x28] sm:$0xff]  ;;  %v288_v12 = vld [vmem:[%s4461_s24 + $0x38] sm:$0xff]  ;;  %v289_v14 = vld [vmem:[%s4461_s24 + $0x40] sm:$0xff] }
  0x13   : > { %237 = vst.msk [vmem:[#allocation2 + $0x50] sm:$0xff] %vm225_vm0, %v4339_v0  ;;  %v290_v13 = vld [vmem:[%s4461_s24 + $0x48] sm:$0xff]  ;;  %v291_v15 = vld [vmem:[%s4461_s24 + $0x50] sm:$0xff]  ;;  %v293_v16 = vld [vmem:[%s4461_s24 + $0x60] sm:$0xff] }
  0x14   : > { %v378_v1 = vld [vmem:[#allocation2 + $0x1] sm:$0xff]  ;;  %239 = vst.msk [vmem:[#allocation2 + $0x60] sm:$0xff] %vm225_vm0, %v4339_v0  ;;  %v292_v18 = vld [vmem:[%s4461_s24 + $0x58] sm:$0xff]  ;;  %v295_v23 = vld [vmem:[%s4461_s24 + $0x70] sm:$0xff] }
  0x15   : > { %667 = vrot.lane.b32.xlu0 %v378_v1, %s4340_s20  ;;  %240 = vst.msk [vmem:[#allocation2 + $0x68] sm:$0xff] %vm225_vm0, %v4339_v0  ;;  %v294_v20 = vld [vmem:[%s4461_s24 + $0x68] sm:$0xff]  ;;  %v296_v22 = vld [vmem:[%s4461_s24 + $0x78] sm:$0xff]  ;;  %v297_v24 = vld [vmem:[%s4461_s24 + $0x80] sm:$0xff] }
  0x16   : > { %242 = vst.msk [vmem:[#allocation2 + $0x78] sm:$0xff] %vm225_vm0, %v4339_v0  ;;  %v299_v25 = vld [vmem:[%s4461_s24 + $0x90] sm:$0xff]  ;;  %v298_v27 = vld [vmem:[%s4461_s24 + $0x88] sm:$0xff]  ;;  %v300_v29 = vld [vmem:[%s4461_s24 + $0x98] sm:$0xff] }
  0x17   : > { %243 = vst.msk [vmem:[#allocation2 + $0x80] sm:$0xff] %vm225_vm0, %v4339_v0  ;;  %v302_v31 = vld [vmem:[%s4461_s24 + $0xa8] sm:$0xff]  ;;  %v301_v32 = vld [vmem:[%s4461_s24 + $0xa0] sm:$0xff]  ;;  %v303_v33 = vld [vmem:[%s4461_s24 + $0xb0] sm:$0xff] }
  0x18   : > { %245 = vst.msk [vmem:[#allocation2 + $0x90] sm:$0xff] %vm225_vm0, %v4339_v0  ;;  %v305_v37 = vld [vmem:[%s4461_s24 + $0xc0] sm:$0xff]  ;;  %v304_v38 = vld [vmem:[%s4461_s24 + $0xb8] sm:$0xff]  ;;  %v306_v39 = vld [vmem:[%s4461_s24 + $0xc8] sm:$0xff] }
  0x19   : > { %246 = vst.msk [vmem:[#allocation2 + $0x98] sm:$0xff] %vm225_vm0, %v4339_v0  ;;  %v308_v43 = vld [vmem:[%s4461_s24 + $0xd8] sm:$0xff]  ;;  %v307_v44 = vld [vmem:[%s4461_s24 + $0xd0] sm:$0xff]  ;;  %v309_v45 = vld [vmem:[%s4461_s24 + $0xe0] sm:$0xff] }
  0x1a   : > { %248 = vst.msk [vmem:[#allocation2 + $0xa8] sm:$0xff] %vm225_vm0, %v4339_v0  ;;  %v310_v49 = vld [vmem:[%s4461_s24 + $0xe8] sm:$0xff] }
  0x1b   : > { %249 = vst.msk [vmem:[#allocation2 + $0xb0] sm:$0xff] %vm225_vm0, %v4339_v0  ;;  %v410_v62 = vld [vmem:[#allocation2 + $0x2] sm:$0xff] }
  0x1c   : > { %251 = vst.msk [vmem:[#allocation2 + $0xc0] sm:$0xff] %vm225_vm0, %v4339_v0 }
  0x1d   : > { %252 = vst.msk [vmem:[#allocation2 + $0xc8] sm:$0xff] %vm225_vm0, %v4339_v0 }
  0x1e   : > { %254 = vst.msk [vmem:[#allocation2 + $0xd8] sm:$0xff] %vm225_vm0, %v4339_v0 }
  0x1f   : > { %255 = vst.msk [vmem:[#allocation2 + $0xe0] sm:$0xff] %vm225_vm0, %v4339_v0 }
  0x20   : > { %257 = vst.msk [vmem:[#allocation2 + $0xf0] sm:$0xff] %vm225_vm0, %v4339_v0 }
  0x21   : > { %258 = vst.msk [vmem:[#allocation2 + $0xf8] sm:$0xff] %vm225_vm0, %v4339_v0 }
  0x22   : > { %260 = vst.msk [vmem:[#allocation2 + $0x108] sm:$0xff] %vm225_vm0, %v4339_v0 }
  0x23   : > { %261 = vst.msk [vmem:[#allocation2 + $0x110] sm:$0xff] %vm225_vm0, %v4339_v0 }
  0x24   : > { %263 = vst.msk [vmem:[#allocation2 + $0x120] sm:$0xff] %vm225_vm0, %v4339_v0 }
  0x25   : > { %264 = vst.msk [vmem:[#allocation2 + $0x128] sm:$0xff] %vm225_vm0, %v4339_v0 }
  0x26   : > { %266 = vst.msk [vmem:[#allocation2 + $0x138] sm:$0xff] %vm225_vm0, %v4339_v0 }
  0x27   : > { %267 = vst.msk [vmem:[#allocation2 + $0x140] sm:$0xff] %vm225_vm0, %v4339_v0 }
  0x28   : > { %269 = vst.msk [vmem:[#allocation2 + $0x150] sm:$0xff] %vm225_vm0, %v4339_v0 }
  0x29   : > { %270 = vst.msk [vmem:[#allocation2 + $0x158] sm:$0xff] %vm225_vm0, %v4339_v0 }
  0x2a   : > { %272 = vst.msk [vmem:[#allocation2 + $0x168] sm:$0xff] %vm225_vm0, %v4339_v0 }
  0x2b   : > { %273 = vst.msk [vmem:[#allocation2 + $0x170] sm:$0xff] %vm225_vm0, %v4339_v0 }
  0x2c   : > { %275 = vst.msk [vmem:[#allocation2 + $0x180] sm:$0xff] %vm225_vm0, %v4339_v0 }
  0x2d   : > { %276 = vst.msk [vmem:[#allocation2 + $0x188] sm:$0xff] %vm225_vm0, %v4339_v0 }
  0x2e   : > { %278 = vst.msk [vmem:[#allocation2 + $0x198] sm:$0xff] %vm225_vm0, %v4339_v0 }
  0x2f   : > { %279 = vst.msk [vmem:[#allocation2 + $0x1a0] sm:$0xff] %vm225_vm0, %v4339_v0 }
  0x30   : > { %316 = vst.msk [vmem:[#allocation2 + $0x31] sm:$0xff] %vm225_vm0, %v283_v2 }
  0x31   : > { %314 = vst.msk [vmem:[#allocation2 + $0x19] sm:$0xff] %vm225_vm0, %v281_v3 }
  0x32   : > { %229 = vst.msk [vmem:[#allocation2 + $0x10] sm:$0x3] %vm228_vm1, %v4339_v0 }
  0x33   : > { %232 = vst.msk [vmem:[#allocation2 + $0x28] sm:$0x3] %vm228_vm1, %v4339_v0 }
  0x34   : > { %235 = vst.msk [vmem:[#allocation2 + $0x40] sm:$0x3] %vm228_vm1, %v4339_v0 }
  0x35   : > { %238 = vst.msk [vmem:[#allocation2 + $0x58] sm:$0x3] %vm228_vm1, %v4339_v0 }
  0x36   : > { %241 = vst.msk [vmem:[#allocation2 + $0x70] sm:$0x3] %vm228_vm1, %v4339_v0 }
  0x37   : > { %v4487_v4 = vld [vmem:[#allocation2 + $0x31] sm:$0xff]  ;;  %244 = vst.msk [vmem:[#allocation2 + $0x88] sm:$0x3] %vm228_vm1, %v4339_v0 }
  0x38   : > { %675 = vrot.lane.b32.xlu2 %v4487_v4, %s4340_s20  ;;  %v4493_v5 = vld [vmem:[#allocation2 + $0x19] sm:$0xff]  ;;  %247 = vst.msk [vmem:[#allocation2 + $0xa0] sm:$0x3] %vm228_vm1, %v4339_v0 }
  0x39   : > { %671 = vrot.lane.b32.xlu1 %v4493_v5, %s4340_s20  ;;  %v379_v6 = vld [vmem:[#allocation2 + $0x9] sm:$0xff]  ;;  %250 = vst.msk [vmem:[#allocation2 + $0xb8] sm:$0x3] %vm228_vm1, %v4339_v0 }
  0x3a   : > { %669 = vrot.lane.b32.xlu0 %v379_v6, %s4340_s20  ;;  %253 = vst.msk [vmem:[#allocation2 + $0xd0] sm:$0x3] %vm228_vm1, %v4339_v0 }
  0x3b   : > { %256 = vst.msk [vmem:[#allocation2 + $0xe8] sm:$0x3] %vm228_vm1, %v4339_v0 }
  0x3c   : > { %259 = vst.msk [vmem:[#allocation2 + $0x100] sm:$0x3] %vm228_vm1, %v4339_v0 }
  0x3d   : > { %262 = vst.msk [vmem:[#allocation2 + $0x118] sm:$0x3] %vm228_vm1, %v4339_v0 }
  0x3e   : > { %265 = vst.msk [vmem:[#allocation2 + $0x130] sm:$0x3] %vm228_vm1, %v4339_v0 }
  0x3f   : > { %268 = vst.msk [vmem:[#allocation2 + $0x148] sm:$0x3] %vm228_vm1, %v4339_v0 }
  0x40   : > { %271 = vst.msk [vmem:[#allocation2 + $0x160] sm:$0x3] %vm228_vm1, %v4339_v0 }
  0x41   : > { %274 = vst.msk [vmem:[#allocation2 + $0x178] sm:$0x3] %vm228_vm1, %v4339_v0 }
  0x42   : > { %277 = vst.msk [vmem:[#allocation2 + $0x190] sm:$0x3] %vm228_vm1, %v4339_v0 }
  0x43   : > { %280 = vst.msk [vmem:[#allocation2 + $0x1a8] sm:$0x3] %vm228_vm1, %v4339_v0  ;;  %v411_v0 = vld [vmem:[#allocation2 + $0xa] sm:$0xff] }
  0x44   : > { %317 = vst.msk [vmem:[#allocation2 + $0x39] sm:$0xff] %vm225_vm0, %v284_v7 }
  0x45   : > { %315 = vst.msk [vmem:[#allocation2 + $0x21] sm:$0xff] %vm225_vm0, %v282_v8 }
  0x46   : > { %318 = vst.msk [vmem:[#allocation2 + $0x49] sm:$0xff] %vm225_vm0, %v285_v9 }
  0x47   : > { %320 = vst.msk [vmem:[#allocation2 + $0x61] sm:$0xff] %vm225_vm0, %v287_v10 }
  0x48   : > { %319 = vst.msk [vmem:[#allocation2 + $0x51] sm:$0xff] %vm225_vm0, %v286_v11 }
  0x49   : > { %321 = vst.msk [vmem:[#allocation2 + $0x69] sm:$0xff] %vm225_vm0, %v288_v12 }
  0x4a   : > { %323 = vst.msk [vmem:[#allocation2 + $0x81] sm:$0xff] %vm225_vm0, %v290_v13 }
  0x4b   : > { %v4539_v17 = vld [vmem:[#allocation2 + $0x39] sm:$0xff]  ;;  %322 = vst.msk [vmem:[#allocation2 + $0x79] sm:$0xff] %vm225_vm0, %v289_v14 }
  0x4c   : > { %677 = vrot.lane.b32.xlu2 %v4539_v17, %s4340_s20  ;;  %v4545_v19 = vld [vmem:[#allocation2 + $0x21] sm:$0xff]  ;;  %324 = vst.msk [vmem:[#allocation2 + $0x91] sm:$0xff] %vm225_vm0, %v291_v15  ;;  %v4696_v3 = vld [vmem:[#allocation2 + $0x32] sm:$0xff] }
  0x4d   : > { %673 = vrot.lane.b32.xlu1 %v4545_v19, %s4340_s20  ;;  %v4551_v21 = vld [vmem:[#allocation2 + $0x49] sm:$0xff]  ;;  %326 = vst.msk [vmem:[#allocation2 + $0xa9] sm:$0xff] %vm225_vm0, %v293_v16  ;;  %v4694_v2 = vld [vmem:[#allocation2 + $0x1a] sm:$0xff] }
  0x4e   : > { %679 = vrot.lane.b32.xlu0 %v4551_v21, %s4340_s20  ;;  %325 = vst.msk [vmem:[#allocation2 + $0x99] sm:$0xff] %vm225_vm0, %v292_v18  ;;  %v4563_v26 = vld [vmem:[#allocation2 + $0x61] sm:$0xff] }
  0x4f   : > { %327 = vst.msk [vmem:[#allocation2 + $0xb1] sm:$0xff] %vm225_vm0, %v294_v20  ;;  %v4567_v28 = vld [vmem:[#allocation2 + $0x51] sm:$0xff]  ;;  %v4692_v1 = vld [vmem:[#allocation2 + $0x22] sm:$0xff]  ;;  %v4708_v8 = vld [vmem:[#allocation2 + $0x3a] sm:$0xff] }
  0x50   : > { %329 = vst.msk [vmem:[#allocation2 + $0xc9] sm:$0xff] %vm225_vm0, %v296_v22  ;;  %v4571_v30 = vld [vmem:[#allocation2 + $0x69] sm:$0xff]  ;;  %v4710_v9 = vld [vmem:[#allocation2 + $0x52] sm:$0xff] }
  0x51   : > { %328 = vst.msk [vmem:[#allocation2 + $0xc1] sm:$0xff] %vm225_vm0, %v295_v23  ;;  %v4588_v34 = vld [vmem:[#allocation2 + $0x81] sm:$0xff]  ;;  %v4706_v7 = vld [vmem:[#allocation2 + $0x4a] sm:$0xff] }
  0x52   : > { %330 = vst.msk [vmem:[#allocation2 + $0xd9] sm:$0xff] %vm225_vm0, %v297_v24  ;;  %v4590_v35 = vld [vmem:[#allocation2 + $0x79] sm:$0xff]  ;;  %v4720_v11 = vld [vmem:[#allocation2 + $0x6a] sm:$0xff]  ;;  %v4722_v12 = vld [vmem:[#allocation2 + $0x62] sm:$0xff] }
  0x53   : > { %332 = vst.msk [vmem:[#allocation2 + $0xf1] sm:$0xff] %vm225_vm0, %v299_v25  ;;  %v4592_v36 = vld [vmem:[#allocation2 + $0x91] sm:$0xff]  ;;  %v4724_v13 = vld [vmem:[#allocation2 + $0x7a] sm:$0xff]  ;;  %v4738_v18 = vld [vmem:[#allocation2 + $0x82] sm:$0xff] }
  0x54   : > { %683 = vrot.lane.b32.xlu2 %v4563_v26, %s4340_s20  ;;  %331 = vst.msk [vmem:[#allocation2 + $0xe1] sm:$0xff] %vm225_vm0, %v298_v27  ;;  %v4606_v40 = vld [vmem:[#allocation2 + $0xa9] sm:$0xff] }
  0x55   : > { %681 = vrot.lane.b32.xlu1 %v4567_v28, %s4340_s20  ;;  %333 = vst.msk [vmem:[#allocation2 + $0xf9] sm:$0xff] %vm225_vm0, %v300_v29  ;;  %v4608_v41 = vld [vmem:[#allocation2 + $0x99] sm:$0xff] }
  0x56   : > { %685 = vrot.lane.b32.xlu0 %v4571_v30, %s4340_s20  ;;  %335 = vst.msk [vmem:[#allocation2 + $0x111] sm:$0xff] %vm225_vm0, %v302_v31  ;;  %v4610_v42 = vld [vmem:[#allocation2 + $0xb1] sm:$0xff]  ;;  %v4740_v20 = vld [vmem:[#allocation2 + $0x9a] sm:$0xff] }
  0x57   : > { %334 = vst.msk [vmem:[#allocation2 + $0x109] sm:$0xff] %vm225_vm0, %v301_v32  ;;  %v4624_v46 = vld [vmem:[#allocation2 + $0xc9] sm:$0xff]  ;;  %v4736_v16 = vld [vmem:[#allocation2 + $0x92] sm:$0xff] }
  0x58   : > { %336 = vst.msk [vmem:[#allocation2 + $0x121] sm:$0xff] %vm225_vm0, %v303_v33  ;;  %v4626_v47 = vld [vmem:[#allocation2 + $0xc1] sm:$0xff]  ;;  %v4754_v25 = vld [vmem:[#allocation2 + $0xb2] sm:$0xff]  ;;  %v4756_v27 = vld [vmem:[#allocation2 + $0xaa] sm:$0xff] }
  0x59   : > { %338 = vst.msk [vmem:[#allocation2 + $0x139] sm:$0xff] %vm225_vm0, %v305_v37  ;;  %v4628_v48 = vld [vmem:[#allocation2 + $0xd9] sm:$0xff]  ;;  %v4758_v29 = vld [vmem:[#allocation2 + $0xc2] sm:$0xff] }
  0x5a   : > { %337 = vst.msk [vmem:[#allocation2 + $0x129] sm:$0xff] %vm225_vm0, %v304_v38  ;;  %v4638_v50 = vld [vmem:[#allocation2 + $0xf1] sm:$0xff] }
  0x5b   : > { %339 = vst.msk [vmem:[#allocation2 + $0x141] sm:$0xff] %vm225_vm0, %v306_v39  ;;  %v4640_v51 = vld [vmem:[#allocation2 + $0xe1] sm:$0xff]  ;;  %v4774_v38 = vld [vmem:[#allocation2 + $0xca] sm:$0xff] }
  0x5c   : > { %689 = vrot.lane.b32.xlu2 %v4588_v34, %s4340_s20  ;;  %341 = vst.msk [vmem:[#allocation2 + $0x159] sm:$0xff] %vm225_vm0, %v308_v43  ;;  %v4642_v52 = vld [vmem:[#allocation2 + $0xf9] sm:$0xff]  ;;  %v4776_v39 = vld [vmem:[#allocation2 + $0xe2] sm:$0xff] }
  0x5d   : > { %687 = vrot.lane.b32.xlu1 %v4590_v35, %s4340_s20  ;;  %340 = vst.msk [vmem:[#allocation2 + $0x151] sm:$0xff] %vm225_vm0, %v307_v44  ;;  %v4650_v53 = vld [vmem:[#allocation2 + $0x111] sm:$0xff]  ;;  %v4772_v37 = vld [vmem:[#allocation2 + $0xda] sm:$0xff] }
  0x5e   : > { %691 = vrot.lane.b32.xlu0 %v4592_v36, %s4340_s20  ;;  %342 = vst.msk [vmem:[#allocation2 + $0x169] sm:$0xff] %vm225_vm0, %v309_v45  ;;  %v4652_v54 = vld [vmem:[#allocation2 + $0x109] sm:$0xff] }
  0x5f   : > { %343 = vst.msk [vmem:[#allocation2 + $0x171] sm:$0xff] %vm225_vm0, %v310_v49  ;;  %v4654_v55 = vld [vmem:[#allocation2 + $0x121] sm:$0xff] }
  0x60   : > { %v4662_v56 = vld [vmem:[#allocation2 + $0x139] sm:$0xff] }
  0x61   : > { %v4664_v57 = vld [vmem:[#allocation2 + $0x129] sm:$0xff]  ;;  %v4790_v49 = vld [vmem:[#allocation2 + $0xfa] sm:$0xff] }
  0x62   : > { %v4666_v58 = vld [vmem:[#allocation2 + $0x141] sm:$0xff] }
  0x63   : > { %v4674_v59 = vld [vmem:[#allocation2 + $0x159] sm:$0xff] }
  0x64   : > { %695 = vrot.lane.b32.xlu2 %v4606_v40, %s4340_s20  ;;  %v4676_v60 = vld [vmem:[#allocation2 + $0x151] sm:$0xff] }
  0x65   : > { %693 = vrot.lane.b32.xlu1 %v4608_v41, %s4340_s20  ;;  %v4678_v61 = vld [vmem:[#allocation2 + $0x169] sm:$0xff] }
  0x66   : > { %697 = vrot.lane.b32.xlu0 %v4610_v42, %s4340_s20  ;;  %v4686_v63 = vld [vmem:[#allocation2 + $0x171] sm:$0xff] }
  0x6c   : > { %701 = vrot.lane.b32.xlu2 %v4624_v46, %s4340_s20 }
  0x6d   : > { %699 = vrot.lane.b32.xlu1 %v4626_v47, %s4340_s20 }
  0x6e   : > { %703 = vrot.lane.b32.xlu0 %v4628_v48, %s4340_s20 }
  0x74   : > { %707 = vrot.lane.b32.xlu2 %v4638_v50, %s4340_s20 }
  0x75   : > { %705 = vrot.lane.b32.xlu1 %v4640_v51, %s4340_s20 }
  0x76   : > { %709 = vrot.lane.b32.xlu0 %v4642_v52, %s4340_s20 }
  0x7c   : > { %713 = vrot.lane.b32.xlu2 %v4650_v53, %s4340_s20 }
  0x7d   : > { %711 = vrot.lane.b32.xlu1 %v4652_v54, %s4340_s20 }
  0x7e   : > { %715 = vrot.lane.b32.xlu0 %v4654_v55, %s4340_s20 }
  0x84   : > { %719 = vrot.lane.b32.xlu2 %v4662_v56, %s4340_s20 }
  0x85   : > { %717 = vrot.lane.b32.xlu1 %v4664_v57, %s4340_s20 }
  0x86   : > { %721 = vrot.lane.b32.xlu0 %v4666_v58, %s4340_s20 }
  0x87   : > { %v4728_v14 = vpop.permute.xlu0 %667 }
  0x88   : > { %7810 = vst [vmem:[#allocation5_spill] sm:$0xff] %v4728_v14  ;;  %v349_v14 = vld [vmem:[#allocation2 + $0x20] sm:$0xff] }
  0x8c   : > { %725 = vrot.lane.b32.xlu2 %v4674_v59, %s4340_s20 }
  0x8d   : > { %723 = vrot.lane.b32.xlu1 %v4676_v60, %s4340_s20 }
  0x8e   : > { %727 = vrot.lane.b32.xlu0 %v4678_v61, %s4340_s20 }
  0x92   : > { %v4700_v6 = vpop.permute.xlu2 %675 }
  0x93   : > { %7808 = vst [vmem:[#allocation3_spill] sm:$0xff] %v4700_v6  ;;  %v4830_v6 = vld [vmem:[#allocation2 + $0x152] sm:$0xff] }
  0x94   : > { %795 = vrot.lane.b32.xlu2 %v410_v62, %s4341_s25  ;;  %v4792_v62 = vld [vmem:[#allocation2 + $0xf2] sm:$0xff]  ;;  %7829 = vst [vmem:[#allocation24_spill] sm:$0xff] %v4830_v6 }
  0x95   : > { %729 = vrot.lane.b32.xlu1 %v4686_v63, %s4340_s20 }
  0x96   : > { %797 = vrot.lane.b32.xlu0 %v411_v0, %s4341_s25  ;;  %v4794_v0 = vld [vmem:[#allocation2 + $0x10a] sm:$0xff] }
  0x9c   : > { %801 = vrot.lane.b32.xlu2 %v4692_v1, %s4341_s25 }
  0x9d   : > { %799 = vrot.lane.b32.xlu1 %v4694_v2, %s4341_s25 }
  0x9e   : > { %803 = vrot.lane.b32.xlu0 %v4696_v3, %s4341_s25 }
  0xa4   : > { %807 = vrot.lane.b32.xlu2 %v4706_v7, %s4341_s25 }
  0xa5   : > { %805 = vrot.lane.b32.xlu1 %v4708_v8, %s4341_s25 }
  0xa6   : > { %809 = vrot.lane.b32.xlu0 %v4710_v9, %s4341_s25  ;;  %v4718_v10 = vpop.permute.xlu2 %677 }
  0xa7   : > { %7809 = vst [vmem:[#allocation4_spill] sm:$0xff] %v4718_v10  ;;  %v4828_v10 = vld [vmem:[#allocation2 + $0x13a] sm:$0xff] }
  0xab   : > { %v4746_v22 = vpop.permute.xlu1 %671 }
  0xac   : > { %813 = vrot.lane.b32.xlu2 %v4720_v11, %s4341_s25  ;;  %7812 = vst [vmem:[#allocation7_spill] sm:$0xff] %v4746_v22  ;;  %v4752_v24 = vpop.permute.xlu0 %669  ;;  %v4846_v22 = vld [vmem:[#allocation2 + $0x15a] sm:$0xff] }
  0xad   : > { %811 = vrot.lane.b32.xlu1 %v4722_v12, %s4341_s25  ;;  %7814 = vst [vmem:[#allocation9_spill] sm:$0xff] %v4752_v24  ;;  %v4848_v24 = vld [vmem:[#allocation2 + $0x172] sm:$0xff] }
  0xae   : > { %815 = vrot.lane.b32.xlu0 %v4724_v13, %s4341_s25  ;;  %v4734_v15 = vpop.permute.xlu2 %683  ;;  %7834 = vst [vmem:[#allocation29_spill] sm:$0xff] %v4846_v22 }
  0xaf   : > { %7811 = vst [vmem:[#allocation6_spill] sm:$0xff] %v4734_v15  ;;  %v4808_v15 = vld [vmem:[#allocation2 + $0x122] sm:$0xff] }
  0xb0   : > { %7835 = vst [vmem:[#allocation30_spill] sm:$0xff] %v4848_v24 }
  0xb4   : > { %819 = vrot.lane.b32.xlu2 %v4736_v16, %s4341_s25 }
  0xb5   : > { %817 = vrot.lane.b32.xlu1 %v4738_v18, %s4341_s25 }
  0xb6   : > { %821 = vrot.lane.b32.xlu0 %v4740_v20, %s4341_s25  ;;  %v4750_v23 = vpop.permute.xlu2 %689 }
  0xb7   : > { %7813 = vst [vmem:[#allocation8_spill] sm:$0xff] %v4750_v23 }
  0xbc   : > { %825 = vrot.lane.b32.xlu2 %v4754_v25, %s4341_s25 }
  0xbd   : > { %823 = vrot.lane.b32.xlu1 %v4756_v27, %s4341_s25 }
  0xbe   : > { %827 = vrot.lane.b32.xlu0 %v4758_v29, %s4341_s25  ;;  %v4766_v31 = vpop.permute.xlu2 %695 }
  0xbf   : > { %7815 = vst [vmem:[#allocation10_spill] sm:$0xff] %v4766_v31  ;;  %v4768_v32 = vpop.permute.xlu1 %673 }
  0xc0   : > { %7816 = vst [vmem:[#allocation11_spill] sm:$0xff] %v4768_v32  ;;  %v4770_v33 = vpop.permute.xlu0 %679  ;;  %v4844_v32 = vld [vmem:[#allocation2 + $0x16a] sm:$0xff] }
  0xc1   : > { %7817 = vst [vmem:[#allocation12_spill] sm:$0xff] %v4770_v33  ;;  %v4826_v33 = vld [vmem:[#allocation2 + $0x142] sm:$0xff] }
  0xc2   : > { %7828 = vst [vmem:[#allocation23_spill] sm:$0xff] %v4826_v33 }
  0xc3   : > { %7833 = vst [vmem:[#allocation28_spill] sm:$0xff] %v4844_v32 }
  0xc4   : > { %831 = vrot.lane.b32.xlu2 %v4772_v37, %s4341_s25 }
  0xc5   : > { %829 = vrot.lane.b32.xlu1 %v4774_v38, %s4341_s25 }
  0xc6   : > { %833 = vrot.lane.b32.xlu0 %v4776_v39, %s4341_s25  ;;  %v4784_v43 = vpop.permute.xlu2 %701 }
  0xc7   : > { %7818 = vst [vmem:[#allocation13_spill] sm:$0xff] %v4784_v43  ;;  %v4786_v44 = vpop.permute.xlu1 %681  ;;  %v4812_v43 = vld [vmem:[#allocation2 + $0x12a] sm:$0xff] }
  0xc8   : > { %7819 = vst [vmem:[#allocation14_spill] sm:$0xff] %v4786_v44  ;;  %v4788_v45 = vpop.permute.xlu0 %685  ;;  %v4810_v44 = vld [vmem:[#allocation2 + $0x112] sm:$0xff] }
  0xc9   : > { %7820 = vst [vmem:[#allocation15_spill] sm:$0xff] %v4788_v45 }
  0xca   : > { %7824 = vst [vmem:[#allocation19_spill] sm:$0xff] %v4812_v43 }
  0xcc   : > { %837 = vrot.lane.b32.xlu2 %v4790_v49, %s4341_s25 }
  0xcd   : > { %835 = vrot.lane.b32.xlu1 %v4792_v62, %s4341_s25 }
  0xce   : > { %839 = vrot.lane.b32.xlu0 %v4794_v0, %s4341_s25  ;;  %v4802_v31 = vpop.permute.xlu2 %707 }
  0xcf   : > { %7821 = vst [vmem:[#allocation16_spill] sm:$0xff] %v4802_v31  ;;  %v4804_v23 = vpop.permute.xlu1 %687 }
  0xd0   : > { %7822 = vst [vmem:[#allocation17_spill] sm:$0xff] %v4804_v23  ;;  %v4806_v45 = vpop.permute.xlu0 %691 }
  0xd1   : > { %7823 = vst [vmem:[#allocation18_spill] sm:$0xff] %v4806_v45 }
  0xd4   : > { %843 = vrot.lane.b32.xlu2 %v4808_v15, %s4341_s25 }
  0xd5   : > { %841 = vrot.lane.b32.xlu1 %v4810_v44, %s4341_s25 }
  0xd6   : > { %845 = vrot.lane.b32.xlu0 %v4812_v43, %s4341_s25  ;;  %v4820_v31 = vpop.permute.xlu2 %713  ;;  %v4937_v43 = vld [vmem:[#allocation2 + $0xe0] sm:$0xff] }
  0xd7   : > { %7825 = vst [vmem:[#allocation20_spill] sm:$0xff] %v4820_v31  ;;  %v4822_v23 = vpop.permute.xlu1 %693 }
  0xd8   : > { %7826 = vst [vmem:[#allocation21_spill] sm:$0xff] %v4822_v23  ;;  %v4824_v45 = vpop.permute.xlu0 %697 }
  0xd9   : > { %7827 = vst [vmem:[#allocation22_spill] sm:$0xff] %v4824_v45 }
  0xdc   : > { %849 = vrot.lane.b32.xlu2 %v4826_v33, %s4341_s25  ;;  %v350_v33 = vld [vmem:[#allocation2 + $0x30] sm:$0xff] }
  0xdd   : > { %847 = vrot.lane.b32.xlu1 %v4828_v10, %s4341_s25 }
  0xde   : > { %851 = vrot.lane.b32.xlu0 %v4830_v6, %s4341_s25  ;;  %v4838_v31 = vpop.permute.xlu2 %719  ;;  %v348_v6 = vld [vmem:[#allocation2 + $0x18] sm:$0xff] }
  0xdf   : > { %7830 = vst [vmem:[#allocation25_spill] sm:$0xff] %v4838_v31  ;;  %v4840_v23 = vpop.permute.xlu1 %699 }
  0xe0   : > { %7831 = vst [vmem:[#allocation26_spill] sm:$0xff] %v4840_v23  ;;  %v4842_v45 = vpop.permute.xlu0 %703 }
  0xe1   : > { %7832 = vst [vmem:[#allocation27_spill] sm:$0xff] %v4842_v45 }
  0xe4   : > { %855 = vrot.lane.b32.xlu2 %v4844_v32, %s4341_s25 }
  0xe5   : > { %853 = vrot.lane.b32.xlu1 %v4846_v22, %s4341_s25 }
  0xe6   : > { %857 = vrot.lane.b32.xlu0 %v4848_v24, %s4341_s25  ;;  %v4856_v31 = vpop.permute.xlu2 %725 }
  0xe7   : > { %7836 = vst [vmem:[#allocation31_spill] sm:$0xff] %v4856_v31  ;;  %v4858_v23 = vpop.permute.xlu1 %705  ;;  %v4871_v31 = vld [vmem:[#allocation2 + $0x48] sm:$0xff] }
  0xe8   : > { %7837 = vst [vmem:[#allocation32_spill] sm:$0xff] %v4858_v23  ;;  %v4860_v45 = vpop.permute.xlu0 %709  ;;  %v351_v23 = vld [vmem:[#allocation2 + $0x38] sm:$0xff] }
  0xe9   : > { %7838 = vst [vmem:[#allocation33_spill] sm:$0xff] %v4860_v45  ;;  %v4875_v45 = vld [vmem:[#allocation2 + $0x50] sm:$0xff] }
  0xea   : > { %7842 = vst [vmem:[#allocation37_spill] sm:$0xff] %v4871_v31 }
  0xeb   : > { %7843 = vst [vmem:[#allocation38_spill] sm:$0xff] %v4875_v45 }
  0xec   : > { %925 = vrot.lane.b32.xlu2 %v349_v14, %s4342_s26 }
  0xed   : > { %923 = vrot.lane.b32.xlu1 %v348_v6, %s4342_s26 }
  0xee   : > { %927 = vrot.lane.b32.xlu0 %v350_v33, %s4342_s26  ;;  %v4865_v32 = vpop.permute.xlu2 %795 }
  0xef   : > { %7839 = vst [vmem:[#allocation34_spill] sm:$0xff] %v4865_v32  ;;  %v4867_v22 = vpop.permute.xlu1 %711  ;;  %v4890_v32 = vld [vmem:[#allocation2 + $0x78] sm:$0xff] }
  0xf0   : > { %7840 = vst [vmem:[#allocation35_spill] sm:$0xff] %v4867_v22  ;;  %v4869_v24 = vpop.permute.xlu0 %715  ;;  %v354_v22 = vld [vmem:[#allocation2 + $0x60] sm:$0xff] }
  0xf1   : > { %7841 = vst [vmem:[#allocation36_spill] sm:$0xff] %v4869_v24  ;;  %v4886_v24 = vld [vmem:[#allocation2 + $0x68] sm:$0xff] }
  0xf2   : > { %7847 = vst [vmem:[#allocation42_spill] sm:$0xff] %v4886_v24 }
  0xf3   : > { %7848 = vst [vmem:[#allocation43_spill] sm:$0xff] %v4890_v32 }
  0xf4   : > { %931 = vrot.lane.b32.xlu2 %v4871_v31, %s4342_s26  ;;  %v312_v31 = vld [vmem:[%s4461_s24 + $0xf8] sm:$0xff] }
  0xf5   : > { %929 = vrot.lane.b32.xlu1 %v351_v23, %s4342_s26  ;;  %345 = vst.msk [vmem:[#allocation2 + $0x189] sm:$0xff] %vm225_vm0, %v312_v31 }
  0xf6   : > { %933 = vrot.lane.b32.xlu0 %v4875_v45, %s4342_s26  ;;  %v4880_v6 = vpop.permute.xlu2 %801  ;;  %v357_v45 = vld [vmem:[#allocation2 + $0x80] sm:$0xff] }
  0xf7   : > { %7844 = vst [vmem:[#allocation39_spill] sm:$0xff] %v4880_v6  ;;  %v4882_v14 = vpop.permute.xlu1 %717 }
  0xf8   : > { %7845 = vst [vmem:[#allocation40_spill] sm:$0xff] %v4882_v14  ;;  %v4884_v33 = vpop.permute.xlu0 %721 }
  0xf9   : > { %7846 = vst [vmem:[#allocation41_spill] sm:$0xff] %v4884_v33  ;;  %v4901_v33 = vld [vmem:[#allocation2 + $0x90] sm:$0xff] }
  0xfa   : > { %7852 = vst [vmem:[#allocation47_spill] sm:$0xff] %v4901_v33 }
  0xfc   : > { %937 = vrot.lane.b32.xlu2 %v4886_v24, %s4342_s26  ;;  %v4905_v24 = vld [vmem:[#allocation2 + $0x98] sm:$0xff] }
  0xfd   : > { %935 = vrot.lane.b32.xlu1 %v354_v22, %s4342_s26  ;;  %7853 = vst [vmem:[#allocation48_spill] sm:$0xff] %v4905_v24 }
  0xfe   : > { %939 = vrot.lane.b32.xlu0 %v4890_v32, %s4342_s26  ;;  %v4895_v23 = vpop.permute.xlu2 %807  ;;  %v360_v32 = vld [vmem:[#allocation2 + $0xa8] sm:$0xff] }
  0xff   : > { %7849 = vst [vmem:[#allocation44_spill] sm:$0xff] %v4895_v23  ;;  %v4897_v6 = vpop.permute.xlu1 %723  ;;  %v4916_v23 = vld [vmem:[#allocation2 + $0xb0] sm:$0xff] }
 0x100   : > { %7850 = vst [vmem:[#allocation45_spill] sm:$0xff] %v4897_v6  ;;  %v4899_v14 = vpop.permute.xlu0 %727 }
 0x101   : > { %7851 = vst [vmem:[#allocation46_spill] sm:$0xff] %v4899_v14 }
 0x102   : > { %7857 = vst [vmem:[#allocation52_spill] sm:$0xff] %v4916_v23 }
 0x104   : > { %943 = vrot.lane.b32.xlu2 %v4901_v33, %s4342_s26  ;;  %v4920_v33 = vld [vmem:[#allocation2 + $0xc0] sm:$0xff] }
 0x105   : > { %941 = vrot.lane.b32.xlu1 %v357_v45, %s4342_s26 }
 0x106   : > { %945 = vrot.lane.b32.xlu0 %v4905_v24, %s4342_s26  ;;  %v4910_v22 = vpop.permute.xlu2 %813  ;;  %v363_v24 = vld [vmem:[#allocation2 + $0xc8] sm:$0xff] }
 0x107   : > { %7854 = vst [vmem:[#allocation49_spill] sm:$0xff] %v4910_v22  ;;  %v4912_v6 = vpop.permute.xlu1 %729 }
 0x108   : > { %7855 = vst [vmem:[#allocation50_spill] sm:$0xff] %v4912_v6  ;;  %v4914_v14 = vpop.permute.xlu0 %797 }
 0x109   : > { %7856 = vst [vmem:[#allocation51_spill] sm:$0xff] %v4914_v14  ;;  %v4931_v14 = vld [vmem:[#allocation2 + $0xd8] sm:$0xff] }
 0x10a   : > { %7861 = vst [vmem:[#allocation56_spill] sm:$0xff] %v4931_v14 }
 0x10c   : > { %949 = vrot.lane.b32.xlu2 %v4916_v23, %s4342_s26  ;;  %v311_v23 = vld [vmem:[%s4461_s24 + $0xf0] sm:$0xff] }
 0x10d   : > { %947 = vrot.lane.b32.xlu1 %v360_v32, %s4342_s26  ;;  %344 = vst.msk [vmem:[#allocation2 + $0x181] sm:$0xff] %vm225_vm0, %v311_v23 }
 0x10e   : > { %951 = vrot.lane.b32.xlu0 %v4920_v33, %s4342_s26  ;;  %v4925_v45 = vpop.permute.xlu2 %819 }
 0x10f   : > { %7858 = vst [vmem:[#allocation53_spill] sm:$0xff] %v4925_v45  ;;  %v4927_v22 = vpop.permute.xlu1 %799 }
 0x110   : > { %7859 = vst [vmem:[#allocation54_spill] sm:$0xff] %v4927_v22  ;;  %v4929_v6 = vpop.permute.xlu0 %803  ;;  %v4950_v22 = vld [vmem:[#allocation2 + $0xf8] sm:$0xff] }
 0x111   : > { %7860 = vst [vmem:[#allocation55_spill] sm:$0xff] %v4929_v6 }
 0x112   : > { %7865 = vst [vmem:[#allocation60_spill] sm:$0xff] %v4950_v22 }
 0x114   : > { %955 = vrot.lane.b32.xlu2 %v4931_v14, %s4342_s26  ;;  %v366_v14 = vld [vmem:[#allocation2 + $0xf0] sm:$0xff] }
 0x115   : > { %953 = vrot.lane.b32.xlu1 %v363_v24, %s4342_s26  ;;  %v4954_v24 = vld [vmem:[#allocation2 + $0x108] sm:$0xff] }
 0x116   : > { %957 = vrot.lane.b32.xlu0 %v4937_v43, %s4342_s26  ;;  %v4943_v32 = vpop.permute.xlu2 %825  ;;  %7866 = vst [vmem:[#allocation61_spill] sm:$0xff] %v4954_v24 }
 0x117   : > { %7862 = vst [vmem:[#allocation57_spill] sm:$0xff] %v4943_v32  ;;  %v4946_v45 = vpop.permute.xlu1 %805 }
 0x118   : > { %7863 = vst [vmem:[#allocation58_spill] sm:$0xff] %v4946_v45  ;;  %v4948_v6 = vpop.permute.xlu0 %809  ;;  %v369_v45 = vld [vmem:[#allocation2 + $0x110] sm:$0xff] }
 0x119   : > { %7864 = vst [vmem:[#allocation59_spill] sm:$0xff] %v4948_v6  ;;  %v4965_v6 = vld [vmem:[#allocation2 + $0x120] sm:$0xff] }
 0x11a   : > { %7870 = vst [vmem:[#allocation65_spill] sm:$0xff] %v4965_v6 }
 0x11c   : > { %961 = vrot.lane.b32.xlu2 %v4950_v22, %s4342_s26  ;;  %v4969_v22 = vld [vmem:[#allocation2 + $0x128] sm:$0xff] }
 0x11d   : > { %959 = vrot.lane.b32.xlu1 %v366_v14, %s4342_s26  ;;  %7871 = vst [vmem:[#allocation66_spill] sm:$0xff] %v4969_v22 }
 0x11e   : > { %963 = vrot.lane.b32.xlu0 %v4954_v24, %s4342_s26  ;;  %v4959_v23 = vpop.permute.xlu2 %831  ;;  %v4982_v24 = vld [vmem:[#allocation2 + $0x138] sm:$0xff] }
 0x11f   : > { %7867 = vst [vmem:[#allocation62_spill] sm:$0xff] %v4959_v23  ;;  %v4961_v31 = vpop.permute.xlu1 %811 }
 0x120   : > { %7868 = vst [vmem:[#allocation63_spill] sm:$0xff] %v4961_v31  ;;  %v4963_v32 = vpop.permute.xlu0 %815 }
 0x121   : > { %7869 = vst [vmem:[#allocation64_spill] sm:$0xff] %v4963_v32  ;;  %v4980_v32 = vld [vmem:[#allocation2 + $0x140] sm:$0xff] }
 0x122   : > { %7875 = vst [vmem:[#allocation70_spill] sm:$0xff] %v4980_v32 }
 0x123   : > { %7876 = vst [vmem:[#allocation71_spill] sm:$0xff] %v4982_v24 }
 0x124   : > { %967 = vrot.lane.b32.xlu2 %v4965_v6, %s4342_s26  ;;  %v4986_v6 = vld [vmem:[#allocation2 + $0x150] sm:$0xff] }
 0x125   : > { %965 = vrot.lane.b32.xlu1 %v369_v45, %s4342_s26  ;;  %7877 = vst [vmem:[#allocation72_spill] sm:$0xff] %v4986_v6 }
 0x126   : > { %969 = vrot.lane.b32.xlu0 %v4969_v22, %s4342_s26  ;;  %v4974_v14 = vpop.permute.xlu2 %837  ;;  %v5000_v22 = vld [vmem:[#allocation2 + $0x158] sm:$0xff] }
 0x127   : > { %7872 = vst [vmem:[#allocation67_spill] sm:$0xff] %v4974_v14  ;;  %v4976_v23 = vpop.permute.xlu1 %817  ;;  %v4998_v14 = vld [vmem:[#allocation2 + $0x168] sm:$0xff] }
 0x128   : > { %7873 = vst [vmem:[#allocation68_spill] sm:$0xff] %v4976_v23  ;;  %v4978_v31 = vpop.permute.xlu0 %821 }
 0x129   : > { %7874 = vst [vmem:[#allocation69_spill] sm:$0xff] %v4978_v31 }
 0x12a   : > { %7881 = vst [vmem:[#allocation76_spill] sm:$0xff] %v4998_v14 }
 0x12c   : > { %973 = vrot.lane.b32.xlu2 %v4980_v32, %s4342_s26  ;;  %v5004_v32 = vld [vmem:[#allocation2 + $0x170] sm:$0xff] }
 0x12d   : > { %971 = vrot.lane.b32.xlu1 %v4982_v24, %s4342_s26  ;;  %v5018_v24 = vld [vmem:[#allocation2 + $0x180] sm:$0xff] }
 0x12e   : > { %975 = vrot.lane.b32.xlu0 %v4986_v6, %s4342_s26  ;;  %v4992_v45 = vpop.permute.xlu2 %843  ;;  %v5016_v6 = vld [vmem:[#allocation2 + $0x188] sm:$0xff] }
 0x12f   : > { %7878 = vst [vmem:[#allocation73_spill] sm:$0xff] %v4992_v45  ;;  %v4994_v23 = vpop.permute.xlu1 %823 }
 0x130   : > { %7879 = vst [vmem:[#allocation74_spill] sm:$0xff] %v4994_v23  ;;  %v4996_v31 = vpop.permute.xlu0 %827 }
 0x131   : > { %7880 = vst [vmem:[#allocation75_spill] sm:$0xff] %v4996_v31 }
 0x132   : > { %7885 = vst [vmem:[#allocation80_spill] sm:$0xff] %v5016_v6 }
 0x134   : > { %979 = vrot.lane.b32.xlu2 %v4998_v14, %s4342_s26 }
 0x135   : > { %977 = vrot.lane.b32.xlu1 %v5000_v22, %s4342_s26 }
 0x136   : > { %981 = vrot.lane.b32.xlu0 %v5004_v32, %s4342_s26  ;;  %v5010_v45 = vpop.permute.xlu2 %849 }
 0x137   : > { %7882 = vst [vmem:[#allocation77_spill] sm:$0xff] %v5010_v45  ;;  %v5012_v23 = vpop.permute.xlu1 %829 }
 0x138   : > { %7883 = vst [vmem:[#allocation78_spill] sm:$0xff] %v5012_v23  ;;  %v5014_v31 = vpop.permute.xlu0 %833 }
 0x139   : > { %7884 = vst [vmem:[#allocation79_spill] sm:$0xff] %v5014_v31 }
 0x13c   : > { %985 = vrot.lane.b32.xlu2 %v5016_v6, %s4342_s26 }
 0x13d   : > { %983 = vrot.lane.b32.xlu1 %v5018_v24, %s4342_s26 }
 0x13e   : > { %v5024_v14 = vpop.permute.xlu2 %855  ;;  %1051 = vrot.lane.b32.xlu0 %v4493_v5, %s4343_s27 }
 0x13f   : > { %7886 = vst [vmem:[#allocation81_spill] sm:$0xff] %v5024_v14  ;;  %v5028_v45 = vpop.permute.xlu1 %835 }
 0x140   : > { %7887 = vst [vmem:[#allocation82_spill] sm:$0xff] %v5028_v45  ;;  %v5030_v23 = vpop.permute.xlu0 %839  ;;  %v593_v45 = vld [vmem:[#allocation2 + $0x139] sm:$0xff] }
 0x141   : > { %7888 = vst [vmem:[#allocation83_spill] sm:$0xff] %v5030_v23 }
 0x144   : > { %1055 = vrot.lane.b32.xlu2 %v4487_v4, %s4343_s27 }
 0x145   : > { %1053 = vrot.lane.b32.xlu1 %v4545_v19, %s4343_s27 }
 0x146   : > { %1057 = vrot.lane.b32.xlu0 %v4539_v17, %s4343_s27  ;;  %v5038_v31 = vpop.permute.xlu2 %925 }
 0x147   : > { %v5040_v14 = vpop.permute.xlu1 %841 }
 0x148   : > { %7889 = vst [vmem:[#allocation84_spill] sm:$0xff] %v5040_v14  ;;  %v5042_v6 = vpop.permute.xlu0 %845  ;;  %v558_v14 = vld [vmem:[#allocation2 + $0x110] sm:$0xff] }
 0x149   : > { %7890 = vst [vmem:[#allocation85_spill] sm:$0xff] %v5042_v6 }
 0x14c   : > { %1061 = vrot.lane.b32.xlu2 %v4567_v28, %s4343_s27 }
 0x14d   : > { %1059 = vrot.lane.b32.xlu1 %v4551_v21, %s4343_s27 }
 0x14e   : > { %1063 = vrot.lane.b32.xlu0 %v4563_v26, %s4343_s27  ;;  %v5050_v4 = vpop.permute.xlu2 %931 }
 0x14f   : > { %v5052_v5 = vpop.permute.xlu1 %847 }
 0x150   : > { %7891 = vst [vmem:[#allocation86_spill] sm:$0xff] %v5052_v5  ;;  %v5054_v17 = vpop.permute.xlu0 %851  ;;  %v5278_v5 = vld [vmem:[#allocation2 + $0x18a] sm:$0xff] }
 0x151   : > { %7892 = vst [vmem:[#allocation87_spill] sm:$0xff] %v5054_v17  ;;  %v7927_v17 = vld [vmem:[#allocation24_spill] sm:$0xff] }
 0x154   : > { %1067 = vrot.lane.b32.xlu2 %v4590_v35, %s4343_s27 }
 0x155   : > { %1065 = vrot.lane.b32.xlu1 %v4571_v30, %s4343_s27 }
 0x156   : > { %1069 = vrot.lane.b32.xlu0 %v4588_v34, %s4343_s27  ;;  %v5062_v19 = vpop.permute.xlu2 %937 }
 0x157   : > { %v5064_v21 = vpop.permute.xlu1 %853 }
 0x158   : > { %7893 = vst [vmem:[#allocation88_spill] sm:$0xff] %v5064_v21  ;;  %v5066_v26 = vpop.permute.xlu0 %857 }
 0x159   : > { %7894 = vst [vmem:[#allocation89_spill] sm:$0xff] %v5066_v26  ;;  %v5154_v26 = vld [vmem:[#allocation2 + $0x189] sm:$0xff] }
 0x15c   : > { %1073 = vrot.lane.b32.xlu2 %v4608_v41, %s4343_s27 }
 0x15d   : > { %1071 = vrot.lane.b32.xlu1 %v4592_v36, %s4343_s27 }
 0x15e   : > { %1075 = vrot.lane.b32.xlu0 %v4606_v40, %s4343_s27  ;;  %v5074_v28 = vpop.permute.xlu2 %943 }
 0x15f   : > { %7895 = vst [vmem:[#allocation90_spill] sm:$0xff] %v5074_v28  ;;  %v5076_v30 = vpop.permute.xlu1 %923  ;;  %v594_v28 = vld [vmem:[#allocation2 + $0x141] sm:$0xff] }
 0x160   : > { %v5078_v34 = vpop.permute.xlu0 %927 }
 0x164   : > { %1079 = vrot.lane.b32.xlu2 %v4626_v47, %s4343_s27 }
 0x165   : > { %1077 = vrot.lane.b32.xlu1 %v4610_v42, %s4343_s27 }
 0x166   : > { %1081 = vrot.lane.b32.xlu0 %v4624_v46, %s4343_s27  ;;  %v5086_v35 = vpop.permute.xlu2 %949 }
 0x167   : > { %7896 = vst [vmem:[#allocation91_spill] sm:$0xff] %v5086_v35  ;;  %v5088_v36 = vpop.permute.xlu1 %929  ;;  %v552_v35 = vld [vmem:[#allocation2 + $0xc8] sm:$0xff] }
 0x168   : > { %v5090_v40 = vpop.permute.xlu0 %933 }
 0x16c   : > { %1085 = vrot.lane.b32.xlu2 %v4640_v51, %s4343_s27 }
 0x16d   : > { %1083 = vrot.lane.b32.xlu1 %v4628_v48, %s4343_s27 }
 0x16e   : > { %1087 = vrot.lane.b32.xlu0 %v4638_v50, %s4343_s27  ;;  %v5098_v41 = vpop.permute.xlu2 %955 }
 0x16f   : > { %v5100_v42 = vpop.permute.xlu1 %935 }
 0x170   : > { %v5102_v46 = vpop.permute.xlu0 %939 }
 0x174   : > { %1091 = vrot.lane.b32.xlu2 %v4652_v54, %s4343_s27 }
 0x175   : > { %1089 = vrot.lane.b32.xlu1 %v4642_v52, %s4343_s27 }
 0x176   : > { %1093 = vrot.lane.b32.xlu0 %v4650_v53, %s4343_s27  ;;  %v5110_v47 = vpop.permute.xlu2 %961 }
 0x177   : > { %7897 = vst [vmem:[#allocation92_spill] sm:$0xff] %v5110_v47  ;;  %v5112_v48 = vpop.permute.xlu1 %941  ;;  %v620_v47 = vld [vmem:[#allocation2 + $0xfa] sm:$0xff] }
 0x178   : > { %7898 = vst [vmem:[#allocation93_spill] sm:$0xff] %v5112_v48  ;;  %v5114_v50 = vpop.permute.xlu0 %945  ;;  %v617_v48 = vld [vmem:[#allocation2 + $0xda] sm:$0xff] }
 0x179   : > { %7899 = vst [vmem:[#allocation94_spill] sm:$0xff] %v5114_v50  ;;  %v578_v50 = vld [vmem:[#allocation2 + $0x81] sm:$0xff] }
 0x17c   : > { %1097 = vrot.lane.b32.xlu2 %v4664_v57, %s4343_s27  ;;  %v5140_v57 = vld [vmem:[#allocation2 + $0x181] sm:$0xff] }
 0x17d   : > { %1095 = vrot.lane.b32.xlu1 %v4654_v55, %s4343_s27 }
 0x17e   : > { %1099 = vrot.lane.b32.xlu0 %v4662_v56, %s4343_s27  ;;  %v5122_v51 = vpop.permute.xlu2 %967 }
 0x17f   : > { %7900 = vst [vmem:[#allocation95_spill] sm:$0xff] %v5122_v51  ;;  %v5124_v52 = vpop.permute.xlu1 %947  ;;  %v7965_v51 = vld [vmem:[#allocation72_spill] sm:$0xff] }
 0x180   : > { %7901 = vst [vmem:[#allocation96_spill] sm:$0xff] %v5124_v52  ;;  %v5126_v53 = vpop.permute.xlu0 %951 }
 0x181   : > { %7902 = vst [vmem:[#allocation97_spill] sm:$0xff] %v5126_v53  ;;  %v7939_v53 = vld [vmem:[#allocation42_spill] sm:$0xff] }
 0x184   : > { %1103 = vrot.lane.b32.xlu2 %v4676_v60, %s4343_s27 }
 0x185   : > { %1101 = vrot.lane.b32.xlu1 %v4666_v58, %s4343_s27 }
 0x186   : > { %1105 = vrot.lane.b32.xlu0 %v4674_v59, %s4343_s27  ;;  %v5134_v54 = vpop.permute.xlu2 %973 }
 0x187   : > { %7903 = vst [vmem:[#allocation98_spill] sm:$0xff] %v5134_v54  ;;  %v5136_v55 = vpop.permute.xlu1 %953  ;;  %v7935_v54 = vld [vmem:[#allocation37_spill] sm:$0xff] }
 0x188   : > { %7904 = vst [vmem:[#allocation99_spill] sm:$0xff] %v5136_v55  ;;  %v5138_v56 = vpop.permute.xlu0 %957  ;;  %v539_v55 = vld [vmem:[#allocation2 + $0x30] sm:$0xff] }
 0x18c   : > { %1109 = vrot.lane.b32.xlu2 %v4686_v63, %s4343_s27 }
 0x18d   : > { %1107 = vrot.lane.b32.xlu1 %v4678_v61, %s4343_s27 }
 0x18e   : > { %1111 = vrot.lane.b32.xlu0 %v5140_v57, %s4343_s27  ;;  %v5148_v58 = vpop.permute.xlu2 %979 }
 0x18f   : > { %7905 = vst [vmem:[#allocation100_spill] sm:$0xff] %v5148_v58  ;;  %v5150_v59 = vpop.permute.xlu1 %959 }
 0x190   : > { %v5152_v60 = vpop.permute.xlu0 %963 }
 0x191   : > { %7906 = vst [vmem:[#allocation101_spill] sm:$0xff] %v5152_v60  ;;  %v592_v60 = vld [vmem:[#allocation2 + $0x129] sm:$0xff] }
 0x194   : > { %1179 = vrot.lane.b32.xlu2 %v4694_v2, %s4344_s28 }
 0x195   : > { %1113 = vrot.lane.b32.xlu1 %v5154_v26, %s4343_s27 }
 0x196   : > { %1181 = vrot.lane.b32.xlu0 %v4692_v1, %s4344_s28  ;;  %v5162_v61 = vpop.permute.xlu2 %985 }
 0x197   : > { %7907 = vst [vmem:[#allocation102_spill] sm:$0xff] %v5162_v61  ;;  %v5164_v63 = vpop.permute.xlu1 %965  ;;  %v7921_v61 = vld [vmem:[#allocation19_spill] sm:$0xff] }
 0x198   : > { %7908 = vst [vmem:[#allocation103_spill] sm:$0xff] %v5164_v63  ;;  %v5166_v21 = vpop.permute.xlu0 %969  ;;  %v577_v63 = vld [vmem:[#allocation2 + $0x79] sm:$0xff] }
 0x199   : > { %7909 = vst [vmem:[#allocation104_spill] sm:$0xff] %v5166_v21  ;;  %v549_v21 = vld [vmem:[#allocation2 + $0xa8] sm:$0xff] }
 0x19c   : > { %1185 = vrot.lane.b32.xlu2 %v4708_v8, %s4344_s28 }
 0x19d   : > { %1183 = vrot.lane.b32.xlu1 %v4696_v3, %s4344_s28 }
 0x19e   : > { %1187 = vrot.lane.b32.xlu0 %v4706_v7, %s4344_s28  ;;  %v5174_v2 = vpop.permute.xlu2 %1055 }
 0x19f   : > { %v5176_v58 = vpop.permute.xlu1 %971 }
 0x1a0   : > { %7910 = vst [vmem:[#allocation105_spill] sm:$0xff] %v5176_v58  ;;  %v5178_v1 = vpop.permute.xlu0 %975  ;;  %v7938_v58 = vld [vmem:[#allocation38_spill] sm:$0xff] }
 0x1a1   : > { %7911 = vst [vmem:[#allocation106_spill] sm:$0xff] %v5178_v1  ;;  %v5276_v1 = vld [vmem:[#allocation2 + $0x182] sm:$0xff] }
 0x1a4   : > { %1191 = vrot.lane.b32.xlu2 %v4722_v12, %s4344_s28 }
 0x1a5   : > { %1189 = vrot.lane.b32.xlu1 %v4710_v9, %s4344_s28 }
 0x1a6   : > { %1193 = vrot.lane.b32.xlu0 %v4720_v11, %s4344_s28  ;;  %v5186_v8 = vpop.permute.xlu2 %1061 }
 0x1a7   : > { %v5188_v3 = vpop.permute.xlu1 %977 }
 0x1a8   : > { %7912 = vst [vmem:[#allocation107_spill] sm:$0xff] %v5188_v3  ;;  %v5190_v7 = vpop.permute.xlu0 %981 }
 0x1a9   : > { %7913 = vst [vmem:[#allocation108_spill] sm:$0xff] %v5190_v7  ;;  %v7926_v7 = vld [vmem:[#allocation29_spill] sm:$0xff] }
 0x1ac   : > { %1197 = vrot.lane.b32.xlu2 %v4738_v18, %s4344_s28 }
 0x1ad   : > { %1195 = vrot.lane.b32.xlu1 %v4724_v13, %s4344_s28 }
 0x1ae   : > { %1199 = vrot.lane.b32.xlu0 %v4736_v16, %s4344_s28  ;;  %v5198_v12 = vpop.permute.xlu2 %1067 }
 0x1af   : > { %v5200_v9 = vpop.permute.xlu1 %983 }
 0x1b0   : > { %7914 = vst [vmem:[#allocation109_spill] sm:$0xff] %v5200_v9  ;;  %v5202_v11 = vpop.permute.xlu0 %1051 }
 0x1b4   : > { %1203 = vrot.lane.b32.xlu2 %v4756_v27, %s4344_s28 }
 0x1b5   : > { %1201 = vrot.lane.b32.xlu1 %v4740_v20, %s4344_s28 }
 0x1b6   : > { %1205 = vrot.lane.b32.xlu0 %v4754_v25, %s4344_s28  ;;  %v5210_v18 = vpop.permute.xlu2 %1073 }
 0x1b7   : > { %7915 = vst [vmem:[#allocation110_spill] sm:$0xff] %v5210_v18  ;;  %v5212_v13 = vpop.permute.xlu1 %1053  ;;  %v575_v18 = vld [vmem:[#allocation2 + $0x61] sm:$0xff] }
 0x1b8   : > { %v5214_v16 = vpop.permute.xlu0 %1057 }
 0x1bc   : > { %1209 = vrot.lane.b32.xlu2 %v4774_v38, %s4344_s28 }
 0x1bd   : > { %1207 = vrot.lane.b32.xlu1 %v4758_v29, %s4344_s28 }
 0x1be   : > { %1211 = vrot.lane.b32.xlu0 %v4772_v37, %s4344_s28  ;;  %v5222_v27 = vpop.permute.xlu2 %1079 }
 0x1bf   : > { %7916 = vst [vmem:[#allocation111_spill] sm:$0xff] %v5222_v27  ;;  %v5224_v20 = vpop.permute.xlu1 %1059 }
 0x1c0   : > { %v5226_v25 = vpop.permute.xlu0 %1063 }
 0x1c4   : > { %1215 = vrot.lane.b32.xlu2 %v4792_v62, %s4344_s28 }
 0x1c5   : > { %1213 = vrot.lane.b32.xlu1 %v4776_v39, %s4344_s28 }
 0x1c6   : > { %1217 = vrot.lane.b32.xlu0 %v4790_v49, %s4344_s28  ;;  %v5234_v38 = vpop.permute.xlu2 %1085 }
 0x1c7   : > { %v5236_v29 = vpop.permute.xlu1 %1065 }
 0x1c8   : > { %v5238_v37 = vpop.permute.xlu0 %1069 }
 0x1c9   : > { %7917 = vst [vmem:[#allocation112_spill] sm:$0xff] %v5238_v37  ;;  %v614_v37 = vld [vmem:[#allocation2 + $0xb2] sm:$0xff] }
 0x1cc   : > { %1221 = vrot.lane.b32.xlu2 %v4810_v44, %s4344_s28  ;;  %v7922_v44 = vld [vmem:[#allocation23_spill] sm:$0xff] }
 0x1cd   : > { %1219 = vrot.lane.b32.xlu1 %v4794_v0, %s4344_s28 }
 0x1ce   : > { %1223 = vrot.lane.b32.xlu0 %v4808_v15, %s4344_s28  ;;  %v5246_v62 = vpop.permute.xlu2 %1091 }
 0x1cf   : > { %7918 = vst [vmem:[#allocation113_spill] sm:$0xff] %v5246_v62  ;;  %v5248_v39 = vpop.permute.xlu1 %1071  ;;  %v590_v62 = vld [vmem:[#allocation2 + $0x111] sm:$0xff] }
 0x1d0   : > { %7919 = vst [vmem:[#allocation114_spill] sm:$0xff] %v5248_v39  ;;  %v5250_v49 = vpop.permute.xlu0 %1075  ;;  %v589_v39 = vld [vmem:[#allocation2 + $0x109] sm:$0xff] }
 0x1d1   : > { %7920 = vst [vmem:[#allocation115_spill] sm:$0xff] %v5250_v49  ;;  %v7960_v49 = vld [vmem:[#allocation66_spill] sm:$0xff] }
 0x1d4   : > { %1227 = vrot.lane.b32.xlu2 %v4828_v10, %s4344_s28  ;;  %v7928_v10 = vld [vmem:[#allocation28_spill] sm:$0xff] }
 0x1d5   : > { %1225 = vrot.lane.b32.xlu1 %v7921_v61, %s4344_s28 }
 0x1d6   : > { %1229 = vrot.lane.b32.xlu0 %v7922_v44, %s4344_s28  ;;  %v5258_v9 = vpop.permute.xlu2 %1097 }
 0x1d7   : > { %7923 = vst [vmem:[#allocation19_spill] sm:$0xff] %v5258_v9  ;;  %v5260_v0 = vpop.permute.xlu1 %1077 }
 0x1d8   : > { %7924 = vst [vmem:[#allocation23_spill] sm:$0xff] %v5260_v0  ;;  %v5262_v15 = vpop.permute.xlu0 %1081  ;;  %v546_v0 = vld [vmem:[#allocation2 + $0x80] sm:$0xff] }
 0x1d9   : > { %7925 = vst [vmem:[#allocation116_spill] sm:$0xff] %v5262_v15  ;;  %v540_v15 = vld [vmem:[#allocation2 + $0x38] sm:$0xff] }
 0x1dc   : > { %1233 = vrot.lane.b32.xlu2 %v7926_v7, %s4344_s28  ;;  %v7931_v7 = vld [vmem:[#allocation30_spill] sm:$0xff] }
 0x1dd   : > { %1231 = vrot.lane.b32.xlu1 %v7927_v17, %s4344_s28 }
 0x1de   : > { %1235 = vrot.lane.b32.xlu0 %v7928_v10, %s4344_s28  ;;  %v5270_v3 = vpop.permute.xlu2 %1103 }
 0x1df   : > { %7929 = vst [vmem:[#allocation29_spill] sm:$0xff] %v5270_v3  ;;  %v5272_v61 = vpop.permute.xlu1 %1083 }
 0x1e0   : > { %v5274_v44 = vpop.permute.xlu0 %1087 }
 0x1e1   : > { %7930 = vst [vmem:[#allocation24_spill] sm:$0xff] %v5274_v44  ;;  %v626_v44 = vld [vmem:[#allocation2 + $0x142] sm:$0xff] }
 0x1e4   : > { %1239 = vrot.lane.b32.xlu2 %v5276_v1, %s4344_s28 }
 0x1e5   : > { %1237 = vrot.lane.b32.xlu1 %v7931_v7, %s4344_s28 }
 0x1e6   : > { %1241 = vrot.lane.b32.xlu0 %v5278_v5, %s4344_s28  ;;  %v5286_v17 = vpop.permute.xlu2 %1109 }
 0x1e7   : > { %7932 = vst [vmem:[#allocation28_spill] sm:$0xff] %v5286_v17  ;;  %v5288_v10 = vpop.permute.xlu1 %1089  ;;  %v543_v17 = vld [vmem:[#allocation2 + $0x60] sm:$0xff] }
 0x1e8   : > { %7933 = vst [vmem:[#allocation30_spill] sm:$0xff] %v5288_v10  ;;  %v5290_v3 = vpop.permute.xlu0 %1093  ;;  %v611_v10 = vld [vmem:[#allocation2 + $0x92] sm:$0xff] }
 0x1e9   : > { %7934 = vst [vmem:[#allocation117_spill] sm:$0xff] %v5290_v3  ;;  %v574_v3 = vld [vmem:[#allocation2 + $0x51] sm:$0xff] }
 0x1ec   : > { %1309 = vrot.lane.b32.xlu2 %v540_v15, %s4345_s29 }
 0x1ed   : > { %1307 = vrot.lane.b32.xlu1 %v539_v55, %s4345_s29 }
 0x1ee   : > { %1311 = vrot.lane.b32.xlu0 %v7935_v54, %s4345_s29  ;;  %v5296_v7 = vpop.permute.xlu2 %1179 }
 0x1ef   : > { %v5298_v6 = vpop.permute.xlu1 %1095 }
 0x1f0   : > { %7936 = vst [vmem:[#allocation37_spill] sm:$0xff] %v5298_v6  ;;  %v5300_v27 = vpop.permute.xlu0 %1099 }
 0x1f1   : > { %7937 = vst [vmem:[#allocation118_spill] sm:$0xff] %v5300_v27  ;;  %v7942_v27 = vld [vmem:[#allocation43_spill] sm:$0xff] }
 0x1f4   : > { %1315 = vrot.lane.b32.xlu2 %v543_v17, %s4345_s29  ;;  %v7943_v17 = vld [vmem:[#allocation47_spill] sm:$0xff] }
 0x1f5   : > { %1313 = vrot.lane.b32.xlu1 %v7938_v58, %s4345_s29 }
 0x1f6   : > { %1317 = vrot.lane.b32.xlu0 %v7939_v53, %s4345_s29  ;;  %v5307_v15 = vpop.permute.xlu2 %1185 }
 0x1f7   : > { %v5309_v55 = vpop.permute.xlu1 %1101 }
 0x1f8   : > { %7940 = vst [vmem:[#allocation38_spill] sm:$0xff] %v5309_v55  ;;  %v5311_v54 = vpop.permute.xlu0 %1105 }
 0x1f9   : > { %7941 = vst [vmem:[#allocation42_spill] sm:$0xff] %v5311_v54  ;;  %v7946_v54 = vld [vmem:[#allocation48_spill] sm:$0xff] }
 0x1fc   : > { %1321 = vrot.lane.b32.xlu2 %v546_v0, %s4345_s29  ;;  %v7947_v0 = vld [vmem:[#allocation52_spill] sm:$0xff] }
 0x1fd   : > { %1319 = vrot.lane.b32.xlu1 %v7942_v27, %s4345_s29 }
 0x1fe   : > { %1323 = vrot.lane.b32.xlu0 %v7943_v17, %s4345_s29  ;;  %v5318_v9 = vpop.permute.xlu2 %1191 }
 0x1ff   : > { %v5320_v58 = vpop.permute.xlu1 %1107 }
 0x200   : > { %7944 = vst [vmem:[#allocation43_spill] sm:$0xff] %v5320_v58  ;;  %v5322_v53 = vpop.permute.xlu0 %1111  ;;  %v555_v58 = vld [vmem:[#allocation2 + $0xf0] sm:$0xff] }
 0x201   : > { %7945 = vst [vmem:[#allocation47_spill] sm:$0xff] %v5322_v53 }
 0x204   : > { %1327 = vrot.lane.b32.xlu2 %v549_v21, %s4345_s29  ;;  %v7950_v21 = vld [vmem:[#allocation56_spill] sm:$0xff] }
 0x205   : > { %1325 = vrot.lane.b32.xlu1 %v7946_v54, %s4345_s29 }
 0x206   : > { %1329 = vrot.lane.b32.xlu0 %v7947_v0, %s4345_s29  ;;  %v5329_v55 = vpop.permute.xlu2 %1197 }
 0x207   : > { %7948 = vst [vmem:[#allocation48_spill] sm:$0xff] %v5329_v55  ;;  %v5331_v27 = vpop.permute.xlu1 %1113  ;;  %v596_v55 = vld [vmem:[#allocation2 + $0x159] sm:$0xff] }
 0x208   : > { %7949 = vst [vmem:[#allocation52_spill] sm:$0xff] %v5331_v27  ;;  %v5333_v17 = vpop.permute.xlu0 %1181 }
 0x20c   : > { %1333 = vrot.lane.b32.xlu2 %v552_v35, %s4345_s29  ;;  %v7952_v35 = vld [vmem:[#allocation60_spill] sm:$0xff] }
 0x20d   : > { %1331 = vrot.lane.b32.xlu1 %v4920_v33, %s4345_s29 }
 0x20e   : > { %1335 = vrot.lane.b32.xlu0 %v7950_v21, %s4345_s29  ;;  %v5340_v53 = vpop.permute.xlu2 %1203 }
 0x20f   : > { %7951 = vst [vmem:[#allocation56_spill] sm:$0xff] %v5340_v53  ;;  %v5342_v54 = vpop.permute.xlu1 %1183  ;;  %v7954_v53 = vld [vmem:[#allocation61_spill] sm:$0xff] }
 0x210   : > { %v5344_v0 = vpop.permute.xlu0 %1187 }
 0x214   : > { %1339 = vrot.lane.b32.xlu2 %v555_v58, %s4345_s29  ;;  %v7955_v58 = vld [vmem:[#allocation65_spill] sm:$0xff] }
 0x215   : > { %1337 = vrot.lane.b32.xlu1 %v4937_v43, %s4345_s29 }
 0x216   : > { %1341 = vrot.lane.b32.xlu0 %v7952_v35, %s4345_s29  ;;  %v5351_v27 = vpop.permute.xlu2 %1209 }
 0x217   : > { %7953 = vst [vmem:[#allocation60_spill] sm:$0xff] %v5351_v27  ;;  %v5353_v33 = vpop.permute.xlu1 %1189  ;;  %v7959_v27 = vld [vmem:[#allocation71_spill] sm:$0xff] }
 0x218   : > { %v5355_v21 = vpop.permute.xlu0 %1193 }
 0x21c   : > { %1345 = vrot.lane.b32.xlu2 %v558_v14, %s4345_s29  ;;  %v7961_v14 = vld [vmem:[#allocation70_spill] sm:$0xff] }
 0x21d   : > { %1343 = vrot.lane.b32.xlu1 %v7954_v53, %s4345_s29 }
 0x21e   : > { %1347 = vrot.lane.b32.xlu0 %v7955_v58, %s4345_s29  ;;  %v5362_v6 = vpop.permute.xlu2 %1215 }
 0x21f   : > { %7956 = vst [vmem:[#allocation61_spill] sm:$0xff] %v5362_v6  ;;  %v5364_v43 = vpop.permute.xlu1 %1195 }
 0x220   : > { %7957 = vst [vmem:[#allocation65_spill] sm:$0xff] %v5364_v43  ;;  %v5366_v35 = vpop.permute.xlu0 %1199 }
 0x221   : > { %7958 = vst [vmem:[#allocation119_spill] sm:$0xff] %v5366_v35  ;;  %v584_v35 = vld [vmem:[#allocation2 + $0xc9] sm:$0xff] }
 0x224   : > { %1351 = vrot.lane.b32.xlu2 %v7959_v27, %s4345_s29  ;;  %v7966_v27 = vld [vmem:[#allocation76_spill] sm:$0xff] }
 0x225   : > { %1349 = vrot.lane.b32.xlu1 %v7960_v49, %s4345_s29 }
 0x226   : > { %1353 = vrot.lane.b32.xlu0 %v7961_v14, %s4345_s29  ;;  %v5374_v52 = vpop.permute.xlu2 %1221 }
 0x227   : > { %7962 = vst [vmem:[#allocation71_spill] sm:$0xff] %v5374_v52  ;;  %v5376_v53 = vpop.permute.xlu1 %1201  ;;  %v572_v52 = vld [vmem:[#allocation2 + $0x39] sm:$0xff] }
 0x228   : > { %7963 = vst [vmem:[#allocation66_spill] sm:$0xff] %v5376_v53  ;;  %v5378_v58 = vpop.permute.xlu0 %1205  ;;  %v569_v53 = vld [vmem:[#allocation2 + $0x198] sm:$0xff] }
 0x229   : > { %7964 = vst [vmem:[#allocation70_spill] sm:$0xff] %v5378_v58 }
 0x22c   : > { %1357 = vrot.lane.b32.xlu2 %v5000_v22, %s4345_s29  ;;  %v7969_v22 = vld [vmem:[#allocation80_spill] sm:$0xff] }
 0x22d   : > { %1355 = vrot.lane.b32.xlu1 %v7965_v51, %s4345_s29 }
 0x22e   : > { %1359 = vrot.lane.b32.xlu0 %v7966_v27, %s4345_s29  ;;  %v5386_v23 = vpop.permute.xlu2 %1227 }
 0x22f   : > { %7967 = vst [vmem:[#allocation72_spill] sm:$0xff] %v5386_v23  ;;  %v5388_v49 = vpop.permute.xlu1 %1207  ;;  %v570_v23 = vld [vmem:[#allocation2 + $0x1a0] sm:$0xff] }
 0x230   : > { %7968 = vst [vmem:[#allocation76_spill] sm:$0xff] %v5388_v49  ;;  %v5390_v14 = vpop.permute.xlu0 %1211  ;;  %v571_v49 = vld [vmem:[#allocation2 + $0x31] sm:$0xff] }
 0x234   : > { %1363 = vrot.lane.b32.xlu2 %v5018_v24, %s4345_s29 }
 0x235   : > { %1361 = vrot.lane.b32.xlu1 %v5004_v32, %s4345_s29 }
 0x236   : > { %1365 = vrot.lane.b32.xlu0 %v7969_v22, %s4345_s29  ;;  %v5398_v58 = vpop.permute.xlu2 %1233 }
 0x237   : > { %7970 = vst [vmem:[#allocation80_spill] sm:$0xff] %v5398_v58  ;;  %v5400_v51 = vpop.permute.xlu1 %1213  ;;  %v573_v58 = vld [vmem:[#allocation2 + $0x49] sm:$0xff] }
 0x238   : > { %v5402_v27 = vpop.permute.xlu0 %1217 }
 0x239   : > { %7971 = vst [vmem:[#allocation120_spill] sm:$0xff] %v5402_v27  ;;  %v595_v27 = vld [vmem:[#allocation2 + $0x151] sm:$0xff] }
 0x23c   : > { %1369 = vrot.lane.b32.xlu2 %v570_v23, %s4345_s29 }
 0x23d   : > { %1367 = vrot.lane.b32.xlu1 %v569_v53, %s4345_s29 }
 0x23e   : > { %1435 = vrot.lane.b32.xlu0 %v571_v49, %s4346_s30  ;;  %v5407_v32 = vpop.permute.xlu2 %1239 }
 0x23f   : > { %7972 = vst [vmem:[#allocation121_spill] sm:$0xff] %v5407_v32  ;;  %v5409_v24 = vpop.permute.xlu1 %1219  ;;  %v576_v32 = vld [vmem:[#allocation2 + $0x69] sm:$0xff] }
 0x240   : > { %7973 = vst [vmem:[#allocation122_spill] sm:$0xff] %v5409_v24  ;;  %v5411_v22 = vpop.permute.xlu0 %1223  ;;  %v581_v24 = vld [vmem:[#allocation2 + $0xa9] sm:$0xff] }
 0x241   : > { %7974 = vst [vmem:[#allocation123_spill] sm:$0xff] %v5411_v22  ;;  %v579_v22 = vld [vmem:[#allocation2 + $0x91] sm:$0xff] }
 0x244   : > { %1439 = vrot.lane.b32.xlu2 %v573_v58, %s4346_s30 }
 0x245   : > { %1437 = vrot.lane.b32.xlu1 %v572_v52, %s4346_s30 }
 0x246   : > { %1441 = vrot.lane.b32.xlu0 %v574_v3, %s4346_s30  ;;  %v5416_v23 = vpop.permute.xlu2 %1309 }
 0x247   : > { %v5418_v53 = vpop.permute.xlu1 %1225 }
 0x248   : > { %7975 = vst [vmem:[#allocation124_spill] sm:$0xff] %v5418_v53  ;;  %v5420_v49 = vpop.permute.xlu0 %1229  ;;  %v580_v53 = vld [vmem:[#allocation2 + $0x99] sm:$0xff] }
 0x249   : > { %7976 = vst [vmem:[#allocation125_spill] sm:$0xff] %v5420_v49  ;;  %v582_v49 = vld [vmem:[#allocation2 + $0xb1] sm:$0xff] }
 0x24c   : > { %1445 = vrot.lane.b32.xlu2 %v576_v32, %s4346_s30 }
 0x24d   : > { %1443 = vrot.lane.b32.xlu1 %v575_v18, %s4346_s30 }
 0x24e   : > { %1447 = vrot.lane.b32.xlu0 %v577_v63, %s4346_s30  ;;  %v5425_v58 = vpop.permute.xlu2 %1315 }
 0x24f   : > { %v5427_v52 = vpop.permute.xlu1 %1231 }
 0x250   : > { %7977 = vst [vmem:[#allocation126_spill] sm:$0xff] %v5427_v52  ;;  %v5429_v3 = vpop.permute.xlu0 %1235  ;;  %v583_v52 = vld [vmem:[#allocation2 + $0xc1] sm:$0xff] }
 0x251   : > { %7978 = vst [vmem:[#allocation127_spill] sm:$0xff] %v5429_v3  ;;  %v585_v3 = vld [vmem:[#allocation2 + $0xd9] sm:$0xff] }
 0x254   : > { %1451 = vrot.lane.b32.xlu2 %v579_v22, %s4346_s30 }
 0x255   : > { %1449 = vrot.lane.b32.xlu1 %v578_v50, %s4346_s30 }
 0x256   : > { %1453 = vrot.lane.b32.xlu0 %v580_v53, %s4346_s30  ;;  %v5434_v32 = vpop.permute.xlu2 %1321 }
 0x257   : > { %v5436_v18 = vpop.permute.xlu1 %1237 }
 0x258   : > { %7979 = vst [vmem:[#allocation128_spill] sm:$0xff] %v5436_v18  ;;  %v5438_v63 = vpop.permute.xlu0 %1241  ;;  %v586_v18 = vld [vmem:[#allocation2 + $0xe1] sm:$0xff] }
 0x259   : > { %7980 = vst [vmem:[#allocation129_spill] sm:$0xff] %v5438_v63  ;;  %v588_v63 = vld [vmem:[#allocation2 + $0xf9] sm:$0xff] }
 0x25c   : > { %1457 = vrot.lane.b32.xlu2 %v582_v49, %s4346_s30 }
 0x25d   : > { %1455 = vrot.lane.b32.xlu1 %v581_v24, %s4346_s30 }
 0x25e   : > { %1459 = vrot.lane.b32.xlu0 %v583_v52, %s4346_s30  ;;  %v5443_v22 = vpop.permute.xlu2 %1327 }
 0x25f   : > { %7981 = vst [vmem:[#allocation130_spill] sm:$0xff] %v5443_v22  ;;  %v5445_v50 = vpop.permute.xlu1 %1307  ;;  %v587_v22 = vld [vmem:[#allocation2 + $0xf1] sm:$0xff] }
 0x260   : > { %v5447_v53 = vpop.permute.xlu0 %1311 }
 0x264   : > { %1463 = vrot.lane.b32.xlu2 %v585_v3, %s4346_s30 }
 0x265   : > { %1461 = vrot.lane.b32.xlu1 %v584_v35, %s4346_s30 }
 0x266   : > { %1465 = vrot.lane.b32.xlu0 %v586_v18, %s4346_s30  ;;  %v5452_v49 = vpop.permute.xlu2 %1333 }
 0x267   : > { %7982 = vst [vmem:[#allocation131_spill] sm:$0xff] %v5452_v49  ;;  %v5454_v24 = vpop.permute.xlu1 %1313  ;;  %v591_v49 = vld [vmem:[#allocation2 + $0x121] sm:$0xff] }
 0x268   : > { %v5456_v52 = vpop.permute.xlu0 %1317 }
 0x26c   : > { %1469 = vrot.lane.b32.xlu2 %v588_v63, %s4346_s30 }
 0x26d   : > { %1467 = vrot.lane.b32.xlu1 %v587_v22, %s4346_s30 }
 0x26e   : > { %1471 = vrot.lane.b32.xlu0 %v589_v39, %s4346_s30  ;;  %v5461_v3 = vpop.permute.xlu2 %1339 }
 0x26f   : > { %v5463_v35 = vpop.permute.xlu1 %1319 }
 0x270   : > { %v5465_v18 = vpop.permute.xlu0 %1323 }
 0x271   : > { %7983 = vst [vmem:[#allocation132_spill] sm:$0xff] %v5465_v18  ;;  %v625_v18 = vld [vmem:[#allocation2 + $0x13a] sm:$0xff] }
 0x274   : > { %1475 = vrot.lane.b32.xlu2 %v591_v49, %s4346_s30 }
 0x275   : > { %1473 = vrot.lane.b32.xlu1 %v590_v62, %s4346_s30 }
 0x276   : > { %1477 = vrot.lane.b32.xlu0 %v592_v60, %s4346_s30  ;;  %v5470_v63 = vpop.permute.xlu2 %1345 }
 0x277   : > { %7984 = vst [vmem:[#allocation133_spill] sm:$0xff] %v5470_v63  ;;  %v5472_v22 = vpop.permute.xlu1 %1325  ;;  %v597_v63 = vld [vmem:[#allocation2 + $0x169] sm:$0xff] }
 0x278   : > { %7985 = vst [vmem:[#allocation134_spill] sm:$0xff] %v5472_v22  ;;  %v5474_v39 = vpop.permute.xlu0 %1329  ;;  %v598_v22 = vld [vmem:[#allocation2 + $0x171] sm:$0xff] }
 0x279   : > { %7986 = vst [vmem:[#allocation135_spill] sm:$0xff] %v5474_v39  ;;  %v607_v39 = vld [vmem:[#allocation2 + $0x62] sm:$0xff] }
 0x27c   : > { %1481 = vrot.lane.b32.xlu2 %v594_v28, %s4346_s30 }
 0x27d   : > { %1479 = vrot.lane.b32.xlu1 %v593_v45, %s4346_s30 }
 0x27e   : > { %1483 = vrot.lane.b32.xlu0 %v595_v27, %s4346_s30  ;;  %v5479_v49 = vpop.permute.xlu2 %1351 }
 0x27f   : > { %7987 = vst [vmem:[#allocation136_spill] sm:$0xff] %v5479_v49  ;;  %v5481_v62 = vpop.permute.xlu1 %1331  ;;  %v601_v49 = vld [vmem:[#allocation2 + $0x199] sm:$0xff] }
 0x280   : > { %7988 = vst [vmem:[#allocation137_spill] sm:$0xff] %v5481_v62  ;;  %v5483_v60 = vpop.permute.xlu0 %1335  ;;  %v605_v62 = vld [vmem:[#allocation2 + $0x4a] sm:$0xff] }
 0x281   : > { %7989 = vst [vmem:[#allocation138_spill] sm:$0xff] %v5483_v60  ;;  %v602_v60 = vld [vmem:[#allocation2 + $0x1a1] sm:$0xff] }
 0x284   : > { %1487 = vrot.lane.b32.xlu2 %v597_v63, %s4346_s30 }
 0x285   : > { %1485 = vrot.lane.b32.xlu1 %v596_v55, %s4346_s30 }
 0x286   : > { %1489 = vrot.lane.b32.xlu0 %v598_v22, %s4346_s30  ;;  %v5488_v28 = vpop.permute.xlu2 %1357 }
 0x287   : > { %7990 = vst [vmem:[#allocation139_spill] sm:$0xff] %v5488_v28  ;;  %v5490_v45 = vpop.permute.xlu1 %1337  ;;  %v603_v28 = vld [vmem:[#allocation2 + $0x32] sm:$0xff] }
 0x288   : > { %7991 = vst [vmem:[#allocation140_spill] sm:$0xff] %v5490_v45  ;;  %v5492_v27 = vpop.permute.xlu0 %1341  ;;  %v604_v45 = vld [vmem:[#allocation2 + $0x3a] sm:$0xff] }
 0x28c   : > { %1493 = vrot.lane.b32.xlu2 %v5154_v26, %s4346_s30 }
 0x28d   : > { %1491 = vrot.lane.b32.xlu1 %v5140_v57, %s4346_s30 }
 0x28e   : > { %1495 = vrot.lane.b32.xlu0 %v601_v49, %s4346_s30  ;;  %v5499_v63 = vpop.permute.xlu2 %1363 }
 0x28f   : > { %7992 = vst [vmem:[#allocation141_spill] sm:$0xff] %v5499_v63  ;;  %v5501_v55 = vpop.permute.xlu1 %1343  ;;  %v606_v63 = vld [vmem:[#allocation2 + $0x52] sm:$0xff] }
 0x290   : > { %7993 = vst [vmem:[#allocation142_spill] sm:$0xff] %v5501_v55  ;;  %v5503_v22 = vpop.permute.xlu0 %1347  ;;  %v623_v55 = vld [vmem:[#allocation2 + $0x122] sm:$0xff] }
 0x291   : > { %7994 = vst [vmem:[#allocation143_spill] sm:$0xff] %v5503_v22  ;;  %v608_v22 = vld [vmem:[#allocation2 + $0x6a] sm:$0xff] }
 0x294   : > { %1563 = vrot.lane.b32.xlu2 %v603_v28, %s4347_s6 }
 0x295   : > { %1497 = vrot.lane.b32.xlu1 %v602_v60, %s4346_s30 }
 0x296   : > { %1565 = vrot.lane.b32.xlu0 %v604_v45, %s4347_s6  ;;  %v5508_v26 = vpop.permute.xlu2 %1369 }
 0x297   : > { %7995 = vst [vmem:[#allocation144_spill] sm:$0xff] %v5508_v26  ;;  %v5510_v57 = vpop.permute.xlu1 %1349  ;;  %v609_v26 = vld [vmem:[#allocation2 + $0x7a] sm:$0xff] }
 0x298   : > { %7996 = vst [vmem:[#allocation145_spill] sm:$0xff] %v5510_v57  ;;  %v5512_v49 = vpop.permute.xlu0 %1353  ;;  %v610_v57 = vld [vmem:[#allocation2 + $0x82] sm:$0xff] }
 0x299   : > { %7997 = vst [vmem:[#allocation146_spill] sm:$0xff] %v5512_v49  ;;  %v612_v49 = vld [vmem:[#allocation2 + $0x9a] sm:$0xff] }
 0x29c   : > { %1569 = vrot.lane.b32.xlu2 %v606_v63, %s4347_s6 }
 0x29d   : > { %1567 = vrot.lane.b32.xlu1 %v605_v62, %s4347_s6 }
 0x29e   : > { %1571 = vrot.lane.b32.xlu0 %v607_v39, %s4347_s6  ;;  %v5517_v28 = vpop.permute.xlu2 %1439 }
 0x29f   : > { %v5519_v60 = vpop.permute.xlu1 %1355 }
 0x2a0   : > { %7998 = vst [vmem:[#allocation147_spill] sm:$0xff] %v5519_v60  ;;  %v5521_v45 = vpop.permute.xlu0 %1359  ;;  %v613_v60 = vld [vmem:[#allocation2 + $0xaa] sm:$0xff] }
 0x2a1   : > { %7999 = vst [vmem:[#allocation148_spill] sm:$0xff] %v5521_v45  ;;  %v615_v45 = vld [vmem:[#allocation2 + $0xc2] sm:$0xff] }
 0x2a4   : > { %1575 = vrot.lane.b32.xlu2 %v609_v26, %s4347_s6 }
 0x2a5   : > { %1573 = vrot.lane.b32.xlu1 %v608_v22, %s4347_s6 }
 0x2a6   : > { %1577 = vrot.lane.b32.xlu0 %v610_v57, %s4347_s6  ;;  %v5526_v63 = vpop.permute.xlu2 %1445 }
 0x2a7   : > { %v5528_v62 = vpop.permute.xlu1 %1361 }
 0x2a8   : > { %8000 = vst [vmem:[#allocation149_spill] sm:$0xff] %v5528_v62  ;;  %v5530_v39 = vpop.permute.xlu0 %1365  ;;  %v616_v62 = vld [vmem:[#allocation2 + $0xca] sm:$0xff] }
 0x2a9   : > { %8001 = vst [vmem:[#allocation150_spill] sm:$0xff] %v5530_v39  ;;  %v618_v39 = vld [vmem:[#allocation2 + $0xe2] sm:$0xff] }
 0x2ac   : > { %1581 = vrot.lane.b32.xlu2 %v612_v49, %s4347_s6 }
 0x2ad   : > { %1579 = vrot.lane.b32.xlu1 %v611_v10, %s4347_s6 }
 0x2ae   : > { %1583 = vrot.lane.b32.xlu0 %v613_v60, %s4347_s6  ;;  %v5535_v26 = vpop.permute.xlu2 %1451 }
 0x2af   : > { %8002 = vst [vmem:[#allocation151_spill] sm:$0xff] %v5535_v26  ;;  %v5537_v22 = vpop.permute.xlu1 %1367  ;;  %v622_v26 = vld [vmem:[#allocation2 + $0x112] sm:$0xff] }
 0x2b0   : > { %8003 = vst [vmem:[#allocation152_spill] sm:$0xff] %v5537_v22  ;;  %v5539_v57 = vpop.permute.xlu0 %1435  ;;  %v619_v22 = vld [vmem:[#allocation2 + $0xf2] sm:$0xff] }
 0x2b4   : > { %1587 = vrot.lane.b32.xlu2 %v615_v45, %s4347_s6 }
 0x2b5   : > { %1585 = vrot.lane.b32.xlu1 %v614_v37, %s4347_s6 }
 0x2b6   : > { %1589 = vrot.lane.b32.xlu0 %v616_v62, %s4347_s6  ;;  %v5544_v49 = vpop.permute.xlu2 %1457 }
 0x2b7   : > { %8004 = vst [vmem:[#allocation153_spill] sm:$0xff] %v5544_v49  ;;  %v5546_v10 = vpop.permute.xlu1 %1437  ;;  %v621_v49 = vld [vmem:[#allocation2 + $0x10a] sm:$0xff] }
 0x2b8   : > { %v5548_v60 = vpop.permute.xlu0 %1441 }
 0x2bc   : > { %1593 = vrot.lane.b32.xlu2 %v618_v39, %s4347_s6 }
 0x2bd   : > { %1591 = vrot.lane.b32.xlu1 %v617_v48, %s4347_s6 }
 0x2be   : > { %1595 = vrot.lane.b32.xlu0 %v619_v22, %s4347_s6  ;;  %v5553_v45 = vpop.permute.xlu2 %1463  ;;  %v1926_v22 = vld [vmem:[%s7752_s1 + $0x20] sm:$0xf] }
 0x2bf   : > { %8005 = vst [vmem:[#allocation154_spill] sm:$0xff] %v5553_v45  ;;  %v5555_v37 = vpop.permute.xlu1 %1443  ;;  %4190 = vmatpush.msk.msra.mxu0 %vm2028_vm2, %v1926_v22  ;;  %4260 = vmatpush.msk.msra.mxu2 %vm2028_vm2, %v1926_v22 }
 0x2c0   : > { %v5557_v62 = vpop.permute.xlu0 %1447 }
 0x2c4   : > { %1599 = vrot.lane.b32.xlu2 %v621_v49, %s4347_s6  ;;  %v624_v49 = vld [vmem:[#allocation2 + $0x12a] sm:$0xff] }
 0x2c5   : > { %1597 = vrot.lane.b32.xlu1 %v620_v47, %s4347_s6  ;;  %v1925_v47 = vld [vmem:[%s7752_s1 + $0x18] sm:$0xff] }
 0x2c6   : > { %1601 = vrot.lane.b32.xlu0 %v622_v26, %s4347_s6  ;;  %v5562_v39 = vpop.permute.xlu2 %1469  ;;  %v1924_v26 = vld [vmem:[%s7752_s1 + $0x10] sm:$0xff]  ;;  %2044 = vmatpush.msra.mxu0 %v1925_v47 }
 0x2c7   : > { %v5564_v48 = vpop.permute.xlu1 %1449  ;;  %4261 = vmatpush.msra.mxu2 %v1925_v47  ;;  %v1922_v47 = vld [vmem:[%s7752_s1] sm:$0xff] }
 0x2c8   : > { %v5569_v45 = vpop.permute.xlu0 %1453  ;;  %2045 = vmatpush.msra.mxu0 %v1924_v26 }
 0x2c9   : > { %8006 = vst [vmem:[#allocation155_spill] sm:$0xff] %v5569_v45  ;;  %v1923_v45 = vld [vmem:[%s7752_s1 + $0x8] sm:$0xff]  ;;  %4262 = vmatpush.msra.mxu2 %v1924_v26 }
 0x2ca   : > { %2046 = vmatpush.msra.mxu0 %v1923_v45 }
 0x2cb   : > { %4263 = vmatpush.msra.mxu2 %v1923_v45  ;;  %v630_v45 = vld [vmem:[#allocation2 + $0x172] sm:$0xff] }
 0x2cc   : > { %1605 = vrot.lane.b32.xlu2 %v624_v49, %s4347_s6  ;;  %2047 = vmatpush.msra.mxu0 %v1922_v47  ;;  %v627_v49 = vld [vmem:[#allocation2 + $0x152] sm:$0xff] }
 0x2cd   : > { %1603 = vrot.lane.b32.xlu1 %v623_v55, %s4347_s6  ;;  %4264 = vmatpush.msra.mxu2 %v1922_v47  ;;  %v628_v55 = vld [vmem:[#allocation2 + $0x15a] sm:$0xff] }
 0x2ce   : > { %1607 = vrot.lane.b32.xlu0 %v625_v18, %s4347_s6  ;;  %v5585_v22 = vpop.permute.xlu2 %1475 }
 0x2cf   : > { %8007 = vst [vmem:[#allocation156_spill] sm:$0xff] %v5585_v22  ;;  %v5587_v43 = vpop.permute.xlu1 %1455  ;;  %v629_v22 = vld [vmem:[#allocation2 + $0x16a] sm:$0xff] }
 0x2d0   : > { %8008 = vst [vmem:[#allocation157_spill] sm:$0xff] %v5587_v43  ;;  %v5592_v6 = vpop.permute.xlu0 %1459 }
 0x2d1   : > { %8009 = vst [vmem:[#allocation158_spill] sm:$0xff] %v5592_v6  ;;  %v8017_v6 = vld [vmem:[#allocation34_spill] sm:$0xff] }
 0x2d4   : > { %1611 = vrot.lane.b32.xlu2 %v627_v49, %s4347_s6 }
 0x2d5   : > { %1609 = vrot.lane.b32.xlu1 %v626_v44, %s4347_s6 }
 0x2d6   : > { %1613 = vrot.lane.b32.xlu0 %v628_v55, %s4347_s6  ;;  %v5597_v18 = vpop.permute.xlu2 %1481  ;;  %v633_v55 = vld [vmem:[#allocation2 + $0x19a] sm:$0xff] }
 0x2d7   : > { %8010 = vst [vmem:[#allocation159_spill] sm:$0xff] %v5597_v18  ;;  %v5599_v26 = vpop.permute.xlu1 %1461  ;;  %v634_v18 = vld [vmem:[#allocation2 + $0x1a2] sm:$0xff] }
 0x2d8   : > { %8011 = vst [vmem:[#allocation160_spill] sm:$0xff] %v5599_v26  ;;  %v5601_v43 = vpop.permute.xlu0 %1465 }
 0x2d9   : > { %8012 = vst [vmem:[#allocation161_spill] sm:$0xff] %v5601_v43  ;;  %v346_v43 = vld [vmem:[#allocation2] sm:$0xff] }
 0x2dc   : > { %1617 = vrot.lane.b32.xlu2 %v630_v45, %s4347_s6  ;;  %v8016_v45 = vld [vmem:[#allocation5_spill] sm:$0xff] }
 0x2dd   : > { %1615 = vrot.lane.b32.xlu1 %v629_v22, %s4347_s6 }
 0x2de   : > { %1619 = vrot.lane.b32.xlu0 %v5276_v1, %s4347_s6  ;;  %v5607_v47 = vpop.permute.xlu2 %1487 }
 0x2df   : > { %8013 = vst [vmem:[#allocation162_spill] sm:$0xff] %v5607_v47  ;;  %v5609_v44 = vpop.permute.xlu1 %1467  ;;  %v1659_v47 = vsel %vm225_vm0, %v346_v43, %v8016_v45 }
 0x2e0   : > { %v5611_v49 = vpop.permute.xlu0 %1471 }
 0x2e1   : > { %8014 = vst [vmem:[#allocation163_spill] sm:$0xff] %v5611_v49  ;;  %v1692_v49 = vsel %vm1691_vm3, %v1659_v47, %v8017_v6 }
 0x2e4   : > { %1623 = vrot.lane.b32.xlu2 %v633_v55, %s4347_s6 }
 0x2e5   : > { %1621 = vrot.lane.b32.xlu1 %v5278_v5, %s4347_s6  ;;  %v1725_v5 = vsel %vm1724_vm4, %v1692_v49, %v5076_v30 }
 0x2e6   : > { %1625 = vrot.lane.b32.xlu0 %v634_v18, %s4347_s6  ;;  %v5617_v22 = vpop.permute.xlu2 %1493  ;;  %v1758_v18 = vsel %vm1757_vm6, %v1725_v5, %v5202_v11  ;;  %v347_v5 = vld [vmem:[#allocation2 + $0x8] sm:$0xff] }
 0x2e7   : > { %8015 = vst [vmem:[#allocation164_spill] sm:$0xff] %v5617_v22  ;;  %v5619_v1 = vpop.permute.xlu1 %1473  ;;  %v1791_v55 = vsel %vm1790_vm5, %v1758_v18, %v5296_v7 }
 0x2e8   : > { %v5623_v26 = vpop.permute.xlu0 %1477  ;;  %v1824_v43 = vsel %vm1823_vm7, %v1791_v55, %v5445_v50  ;;  %v8021_v55 = vld [vmem:[#allocation9_spill] sm:$0xff] }
 0x2e9   : > { %v1857_v6 = vsel %vm1856_vm9, %v1824_v43, %v5539_v57  ;;  %v1660_v57 = vsel %vm225_vm0, %v347_v5, %v8021_v55  ;;  %v8022_v43 = vld [vmem:[#allocation51_spill] sm:$0xff] }
 0x2ea   : > { %v1693_v22 = vsel %vm1691_vm3, %v1660_v57, %v8022_v43  ;;  %v4289_v43 = vld [vmem:[#allocation2 + $0x18] sm:$0xff] }
 0x2ee   : > { %v1564_v47 = vpop.permute.xlu2 %1563 }
 0x2ef   : > { %v5637_v45 = vpop.permute.xlu1 %1479  ;;  %v1890_v30 = vsel %vm1889_vm8, %v1857_v6, %v1564_v47  ;;  %v1726_v6 = vsel %vm1724_vm4, %v1693_v22, %v5038_v31 }
 0x2f0   : > { %v5640_v49 = vpop.permute.xlu0 %1483  ;;  %4191 = vmatmul.msk.f32.vlgmr.msra.gmra.mxu0 %vm1931_vm10, %v1890_v30  ;;  %v1759_v47 = vsel %vm1757_vm6, %v1726_v6, %v5212_v13  ;;  %v8024_v13 = vld [vmem:[#allocation54_spill] sm:$0xff] }
 0x2f1   : > { %v1792_v30 = vsel %vm1790_vm5, %v1759_v47, %v5333_v17 }
 0x2f6   : > { %v1570_v22 = vpop.permute.xlu2 %1569 }
 0x2f7   : > { %v5643_v11 = vpop.permute.xlu1 %1485 }
 0x2f8   : > { %v5645_v7 = vpop.permute.xlu0 %1489 }
 0x2f9   : > { %8018 = vst [vmem:[#allocation5_spill] sm:$0xff] %v5645_v7 }
 0x2ff   : > { %v5647_v50 = vpop.permute.xlu1 %1491 }
 0x300   : > { %8019 = vst [vmem:[#allocation34_spill] sm:$0xff] %v5647_v50  ;;  %v5649_v18 = vpop.permute.xlu0 %1495  ;;  %v1825_v50 = vsel %vm1823_vm7, %v1792_v30, %v5416_v23 }
 0x301   : > { %8020 = vst [vmem:[#allocation165_spill] sm:$0xff] %v5649_v18  ;;  %v1858_v5 = vsel %vm1856_vm9, %v1825_v50, %v5546_v10  ;;  %v8023_v18 = vld [vmem:[#allocation7_spill] sm:$0xff] }
 0x302   : > { %v1661_v31 = vsel %vm225_vm0, %v4289_v43, %v8023_v18 }
 0x303   : > { %v1694_v17 = vsel %vm1691_vm3, %v1661_v31, %v8024_v13  ;;  %v1576_v31 = vpop.permute.xlu2 %1575 }
 0x304   : > { %v1727_v23 = vsel %vm1724_vm4, %v1694_v17, %v5078_v34 }
 0x305   : > { %v1760_v6 = vsel %vm1757_vm6, %v1727_v23, %v5174_v2  ;;  %v8026_v2 = vld [vmem:[#allocation39_spill] sm:$0xff] }
 0x306   : > { %v1793_v10 = vsel %vm1790_vm5, %v1760_v6, %v5342_v54 }
 0x307   : > { %v5663_v7 = vpop.permute.xlu1 %1497  ;;  %v1826_v50 = vsel %vm1823_vm7, %v1793_v10, %v5447_v53 }
 0x308   : > { %v1566_v55 = vpop.permute.xlu0 %1565  ;;  %v1859_v18 = vsel %vm1856_vm9, %v1826_v50, %v5517_v28  ;;  %v4291_v50 = vld [vmem:[#allocation2 + $0x30] sm:$0xff] }
 0x309   : > { %v1891_v57 = vsel %vm1889_vm8, %v1858_v5, %v1566_v55  ;;  %v4290_v55 = vld [vmem:[#allocation2 + $0x20] sm:$0xff] }
 0x30a   : > { %4192 = vmatmul.msk.f32.gmra.mxu0 %vm1931_vm10, %v1891_v57  ;;  %v8025_v57 = vld [vmem:[#allocation11_spill] sm:$0xff] }
 0x30b   : > { %v1662_v34 = vsel %vm225_vm0, %v4290_v55, %v8025_v57  ;;  %v5719_v57 = vpop.permute.xlu2 %1581 }
 0x30c   : > { %v1695_v43 = vsel %vm1691_vm3, %v1662_v34, %v8026_v2  ;;  %v4292_v2 = vld [vmem:[#allocation2 + $0x38] sm:$0xff] }
 0x30d   : > { %v1728_v54 = vsel %vm1724_vm4, %v1695_v43, %v5088_v36  ;;  %v8027_v36 = vld [vmem:[#allocation3_spill] sm:$0xff]  ;;  %v8029_v43 = vld [vmem:[#allocation4_spill] sm:$0xff] }
 0x30e   : > { %v1761_v53 = vsel %vm1757_vm6, %v1728_v54, %v5214_v16  ;;  %v8028_v16 = vld [vmem:[#allocation55_spill] sm:$0xff] }
 0x30f   : > { %v1568_v47 = vpop.permute.xlu1 %1567  ;;  %v1794_v28 = vsel %vm1790_vm5, %v1761_v53, %v5307_v15 }
 0x310   : > { %v1572_v30 = vpop.permute.xlu0 %1571  ;;  %v1892_v5 = vsel %vm1889_vm8, %v1859_v18, %v1568_v47  ;;  %v1827_v13 = vsel %vm1823_vm7, %v1794_v28, %v5454_v24  ;;  %v1663_v47 = vsel %vm225_vm0, %v4291_v50, %v8027_v36  ;;  %v4293_v50 = vld [vmem:[#allocation2 + $0x48] sm:$0xff] }
 0x311   : > { %v1860_v23 = vsel %vm1856_vm9, %v1827_v13, %v5548_v60  ;;  %v1696_v15 = vsel %vm1691_vm3, %v1663_v47, %v8028_v16  ;;  %v8032_v47 = vld [vmem:[#allocation26_spill] sm:$0xff] }
 0x312   : > { %4193 = vmatmul.msk.f32.gmra.mxu0 %vm1931_vm10, %v1892_v5  ;;  %v1893_v10 = vsel %vm1889_vm8, %v1860_v23, %v1570_v22  ;;  %v1729_v24 = vsel %vm1724_vm4, %v1696_v15, %v5050_v4 }
 0x313   : > { %v1762_v18 = vsel %vm1757_vm6, %v1729_v24, %v5224_v20  ;;  %v1664_v20 = vsel %vm225_vm0, %v4292_v2, %v8029_v43  ;;  %v5748_v16 = vpop.permute.xlu2 %1587 }
 0x314   : > { %v1795_v60 = vsel %vm1790_vm5, %v1762_v18, %v5344_v0  ;;  %v8030_v0 = vld [vmem:[#allocation58_spill] sm:$0xff] }
 0x315   : > { %v1828_v22 = vsel %vm1823_vm7, %v1795_v60, %v5425_v58  ;;  %v1697_v58 = vsel %vm1691_vm3, %v1664_v20, %v8030_v0  ;;  %v8035_v0 = vld [vmem:[#allocation13_spill] sm:$0xff] }
 0x316   : > { %v1861_v55 = vsel %vm1856_vm9, %v1828_v22, %v5555_v37  ;;  %v1730_v54 = vsel %vm1724_vm4, %v1697_v58, %v5090_v40  ;;  %v8031_v40 = vld [vmem:[#allocation12_spill] sm:$0xff]  ;;  %v4296_v58 = vld [vmem:[#allocation2 + $0x50] sm:$0xff] }
 0x317   : > { %v1574_v17 = vpop.permute.xlu1 %1573  ;;  %v1894_v4 = vsel %vm1889_vm8, %v1861_v55, %v1572_v30  ;;  %v1763_v37 = vsel %vm1757_vm6, %v1730_v54, %v5186_v8  ;;  %v1665_v36 = vsel %vm225_vm0, %v4293_v50, %v8031_v40  ;;  %v4294_v8 = vld [vmem:[#allocation2 + $0xc0] sm:$0xff]  ;;  %v8036_v54 = vld [vmem:[#allocation14_spill] sm:$0xff] }
 0x318   : > { %v5699_v6 = vpop.permute.xlu0 %1577  ;;  %v1796_v53 = vsel %vm1790_vm5, %v1763_v37, %v5353_v33  ;;  %v1675_v33 = vsel %vm225_vm0, %v4294_v8, %v8032_v47  ;;  %v8038_v37 = vld [vmem:[#allocation78_spill] sm:$0xff] }
 0x319   : > { %v1829_v30 = vsel %vm1823_vm7, %v1796_v53, %v5456_v52  ;;  %v8033_v52 = vld [vmem:[#allocation44_spill] sm:$0xff] }
 0x31a   : > { %4194 = vmatmul.msk.f32.gmra.mxu0 %vm1931_vm10, %v1893_v10  ;;  %v1862_v13 = vsel %vm1856_vm9, %v1829_v30, %v5526_v63  ;;  %v1698_v15 = vsel %vm1691_vm3, %v1665_v36, %v8033_v52  ;;  %v8034_v63 = vld [vmem:[#allocation75_spill] sm:$0xff] }
 0x31b   : > { %v1895_v10 = vsel %vm1889_vm8, %v1862_v13, %v1574_v17  ;;  %v1708_v24 = vsel %vm1691_vm3, %v1675_v33, %v8034_v63  ;;  %v1731_v18 = vsel %vm1724_vm4, %v1698_v15, %v5100_v42  ;;  %v5793_v13 = vpop.permute.xlu2 %1593  ;;  %v4297_v33 = vld [vmem:[#allocation2 + $0x60] sm:$0xff]  ;;  %v8040_v15 = vld [vmem:[#allocation27_spill] sm:$0xff] }
 0x31c   : > { %v1741_v17 = vsel %vm1724_vm4, %v1708_v24, %v5098_v41  ;;  %v1764_v60 = vsel %vm1757_vm6, %v1731_v18, %v5226_v25  ;;  %v8042_v63 = vld [vmem:[#allocation63_spill] sm:$0xff] }
 0x31d   : > { %v1774_v22 = vsel %vm1757_vm6, %v1741_v17, %v5272_v61  ;;  %v1797_v55 = vsel %vm1790_vm5, %v1764_v60, %v5318_v9  ;;  %v8043_v60 = vld [vmem:[#allocation24_spill] sm:$0xff] }
 0x31e   : > { %v1830_v41 = vsel %vm1823_vm7, %v1797_v55, %v5463_v35  ;;  %v1666_v35 = vsel %vm225_vm0, %v4296_v58, %v8036_v54  ;;  %v8044_v55 = vld [vmem:[#allocation61_spill] sm:$0xff]  ;;  %v4299_v58 = vld [vmem:[#allocation2 + $0x68] sm:$0xff]  ;;  %v8050_v54 = vld [vmem:[#allocation15_spill] sm:$0xff] }
 0x31f   : > { %v5715_v5 = vpop.permute.xlu1 %1579  ;;  %v1863_v42 = vsel %vm1856_vm9, %v1830_v41, %v5557_v62  ;;  %v8037_v62 = vld [vmem:[#allocation59_spill] sm:$0xff] }
 0x320   : > { %v5721_v34 = vpop.permute.xlu0 %1583  ;;  %v1896_v9 = vsel %vm1889_vm8, %v1863_v42, %v1576_v31 }
 0x322   : > { %4195 = vmatmul.msk.f32.gmra.mxu0 %vm1931_vm10, %v1894_v4  ;;  %v1807_v4 = vsel %vm1790_vm5, %v1774_v22, %v5390_v14  ;;  %v4295_v14 = vld [vmem:[#allocation2 + $0xc8] sm:$0xff] }
 0x323   : > { %v1840_v2 = vsel %vm1823_vm7, %v1807_v4, %v5461_v3  ;;  %v1676_v3 = vsel %vm225_vm0, %v4295_v14, %v8035_v0  ;;  %v1600_v42 = vpop.permute.xlu2 %1599 }
 0x324   : > { %v1873_v25 = vsel %vm1856_vm9, %v1840_v2, %v5609_v44  ;;  %v1699_v44 = vsel %vm1691_vm3, %v1666_v35, %v8037_v62  ;;  %v1709_v31 = vsel %vm1691_vm3, %v1676_v3, %v8038_v37  ;;  %v8045_v2 = vld [vmem:[#allocation65_spill] sm:$0xff]  ;;  %v1668_v35 = vsel %vm225_vm0, %v4299_v58, %v8050_v54 }
 0x325   : > { %v1732_v53 = vsel %vm1724_vm4, %v1699_v44, %v5062_v19  ;;  %v1742_v30 = vsel %vm1724_vm4, %v1709_v31, %v5138_v56  ;;  %v4300_v62 = vld [vmem:[#allocation2 + $0xe0] sm:$0xff]  ;;  %v8051_v44 = vld [vmem:[#allocation32_spill] sm:$0xff] }
 0x326   : > { %v1765_v50 = vsel %vm1757_vm6, %v1732_v53, %v5236_v29  ;;  %v1678_v37 = vsel %vm225_vm0, %v4300_v62, %v8051_v44  ;;  %v8052_v31 = vld [vmem:[#allocation49_spill] sm:$0xff]  ;;  %v8074_v44 = vld [vmem:[#allocation143_spill] sm:$0xff] }
 0x327   : > { %v5737_v28 = vpop.permute.xlu1 %1585  ;;  %v1798_v40 = vsel %vm1790_vm5, %v1765_v50, %v5355_v21  ;;  %v1701_v53 = vsel %vm1691_vm3, %v1668_v35, %v8052_v31  ;;  %v8073_v35 = vld [vmem:[#allocation130_spill] sm:$0xff]  ;;  %v8075_v31 = vld [vmem:[#allocation156_spill] sm:$0xff] }
 0x328   : > { %v5741_v23 = vpop.permute.xlu0 %1589  ;;  %v1831_v19 = vsel %vm1823_vm7, %v1798_v40, %v5434_v32  ;;  %v4298_v32 = vld [vmem:[#allocation2 + $0xd8] sm:$0xff]  ;;  %v8055_v40 = vld [vmem:[#allocation93_spill] sm:$0xff] }
 0x32a   : > { %4196 = vmatmul.msk.f32.gmra.mxu0 %vm1931_vm10, %v1895_v10  ;;  %v1775_v10 = vsel %vm1757_vm6, %v1742_v30, %v5234_v38  ;;  %v1864_v38 = vsel %vm1856_vm9, %v1831_v19, %v5564_v48  ;;  %v8053_v30 = vld [vmem:[#allocation79_spill] sm:$0xff]  ;;  %v8056_v19 = vld [vmem:[#allocation112_spill] sm:$0xff] }
 0x32b   : > { %v1808_v36 = vsel %vm1790_vm5, %v1775_v10, %v5400_v51  ;;  %v1897_v29 = vsel %vm1889_vm8, %v1864_v38, %v5699_v6  ;;  %v8039_v51 = vld [vmem:[#allocation6_spill] sm:$0xff]  ;;  %v8054_v10 = vld [vmem:[#allocation92_spill] sm:$0xff] }
 0x32c   : > { %v1841_v56 = vsel %vm1823_vm7, %v1808_v36, %v5492_v27  ;;  %v1667_v52 = vsel %vm225_vm0, %v4297_v33, %v8039_v51  ;;  %v1677_v27 = vsel %vm225_vm0, %v4298_v32, %v8040_v15  ;;  %v1734_v36 = vsel %vm1724_vm4, %v1701_v53, %v8055_v40  ;;  %v8058_v38 = vld [vmem:[#allocation48_spill] sm:$0xff]  ;;  %v8061_v15 = vld [vmem:[#allocation134_spill] sm:$0xff]  ;;  %v4303_v40 = vld [vmem:[#allocation2 + $0x80] sm:$0xff] }
 0x32d   : > { %v1874_v47 = vsel %vm1856_vm9, %v1841_v56, %v5562_v39  ;;  %v8041_v39 = vld [vmem:[#allocation62_spill] sm:$0xff]  ;;  %v1700_v6 = vsel %vm1691_vm3, %v1667_v52, %v8042_v63  ;;  %v1767_v56 = vsel %vm1757_vm6, %v1734_v36, %v8056_v19  ;;  %v8060_v52 = vld [vmem:[#allocation133_spill] sm:$0xff]  ;;  %v8077_v36 = vld [vmem:[#allocation8_spill] sm:$0xff] }
 0x32e   : > { %v1710_v48 = vsel %vm1691_vm3, %v1677_v27, %v8041_v39  ;;  %v1733_v24 = vsel %vm1724_vm4, %v1700_v6, %v5102_v46  ;;  %v8047_v46 = vld [vmem:[#allocation142_spill] sm:$0xff]  ;;  %v8062_v39 = vld [vmem:[#allocation155_spill] sm:$0xff]  ;;  %v1670_v19 = vsel %vm225_vm0, %v4303_v40, %v8077_v36  ;;  %v8101_v36 = vld [vmem:[#allocation137_spill] sm:$0xff] }
 0x32f   : > { %v5771_v43 = vpop.permute.xlu1 %1591  ;;  %v1743_v17 = vsel %vm1724_vm4, %v1710_v48, %v5150_v59  ;;  %v1766_v18 = vsel %vm1757_vm6, %v1733_v24, %v5198_v12  ;;  %v8048_v59 = vld [vmem:[#allocation151_spill] sm:$0xff] }
 0x330   : > { %v1596_v61 = vpop.permute.xlu0 %1595  ;;  %v1776_v22 = vsel %vm1757_vm6, %v1743_v17, %v8043_v60  ;;  %v1799_v41 = vsel %vm1790_vm5, %v1766_v18, %v8045_v2  ;;  %v8049_v12 = vld [vmem:[#allocation163_spill] sm:$0xff]  ;;  %v8063_v18 = vld [vmem:[#allocation16_spill] sm:$0xff] }
 0x331   : > { %v1906_v20 = vsel %vm1889_vm8, %v1873_v25, %v1596_v61  ;;  %v1809_v4 = vsel %vm1790_vm5, %v1776_v22, %v8044_v55  ;;  %v8046_v25 = vld [vmem:[#allocation132_spill] sm:$0xff]  ;;  %v4301_v17 = vld [vmem:[#allocation2 + $0xf0] sm:$0xff]  ;;  %v8064_v55 = vld [vmem:[#allocation17_spill] sm:$0xff] }
 0x332   : > { %4197 = vmatmul.msk.f32.gmra.mxu0 %vm1931_vm10, %v1896_v9  ;;  %4207 = vmatmul.msk.f32.vlgmr.msra.gmra.mxu2 %vm1931_vm10, %v1906_v20  ;;  %v1832_v61 = vsel %vm1823_vm7, %v1799_v41, %v8046_v25  ;;  %v1842_v9 = vsel %vm1823_vm7, %v1809_v4, %v8047_v46  ;;  %v1679_v60 = vsel %vm225_vm0, %v4301_v17, %v8063_v18  ;;  %v4302_v22 = vld [vmem:[#allocation2 + $0x78] sm:$0xff]  ;;  %v8066_v41 = vld [vmem:[#allocation82_spill] sm:$0xff]  ;;  %v1606_v18 = vpop.permute.xlu2 %1605 }
 0x333   : > { %v1865_v20 = vsel %vm1856_vm9, %v1832_v61, %v8048_v59  ;;  %v1875_v14 = vsel %vm1856_vm9, %v1842_v9, %v8049_v12  ;;  %v1669_v4 = vsel %vm225_vm0, %v4302_v22, %v8064_v55  ;;  %v8065_v2 = vld [vmem:[#allocation64_spill] sm:$0xff]  ;;  %v8068_v61 = vld [vmem:[#allocation101_spill] sm:$0xff] }
 0x334   : > { %v1898_v0 = vsel %vm1889_vm8, %v1865_v20, %v5715_v5  ;;  %v1908_v3 = vsel %vm1889_vm8, %v1875_v14, %v1600_v42  ;;  %v1711_v5 = vsel %vm1691_vm3, %v1678_v37, %v8053_v30  ;;  %v8067_v42 = vld [vmem:[#allocation90_spill] sm:$0xff]  ;;  %v8069_v9 = vld [vmem:[#allocation113_spill] sm:$0xff]  ;;  %v8071_v14 = vld [vmem:[#allocation119_spill] sm:$0xff] }
 0x335   : > { %v1744_v50 = vsel %vm1724_vm4, %v1711_v5, %v8054_v10  ;;  %v8070_v20 = vld [vmem:[#allocation114_spill] sm:$0xff]  ;;  %v8076_v30 = vld [vmem:[#allocation157_spill] sm:$0xff] }
 0x336   : > { %v8088_v55 = vld [vmem:[#allocation145_spill] sm:$0xff] }
 0x337   : > { %v1598_v8 = vpop.permute.xlu1 %1597 }
 0x338   : > { %v1907_v21 = vsel %vm1889_vm8, %v1874_v47, %v1598_v8  ;;  %v8057_v8 = vld [vmem:[#allocation30_spill] sm:$0xff]  ;;  %v1602_v51 = vpop.permute.xlu0 %1601 }
 0x339   : > { %v1777_v47 = vsel %vm1757_vm6, %v1744_v50, %v8057_v8  ;;  %v8078_v8 = vld [vmem:[#allocation33_spill] sm:$0xff] }
 0x33a   : > { %4198 = vmatmul.msk.f32.gmra.mxu0 %vm1931_vm10, %v1897_v29  ;;  %4208 = vmatmul.msk.f32.gmra.mxu2 %vm1931_vm10, %v1907_v21  ;;  %v1800_v29 = vsel %vm1790_vm5, %v1767_v56, %v8058_v38  ;;  %v8059_v21 = vld [vmem:[#allocation120_spill] sm:$0xff]  ;;  %v8079_v38 = vld [vmem:[#allocation67_spill] sm:$0xff] }
 0x33b   : > { %v1810_v33 = vsel %vm1790_vm5, %v1777_v47, %v8059_v21  ;;  %v1833_v27 = vsel %vm1823_vm7, %v1800_v29, %v8061_v15  ;;  %v4304_v56 = vld [vmem:[#allocation2 + $0xf8] sm:$0xff]  ;;  %v8083_v15 = vld [vmem:[#allocation110_spill] sm:$0xff] }
 0x33c   : > { %v1843_v32 = vsel %vm1823_vm7, %v1810_v33, %v8060_v52  ;;  %v1866_v48 = vsel %vm1856_vm9, %v1833_v27, %v8062_v39  ;;  %v1680_v47 = vsel %vm225_vm0, %v4304_v56, %v8078_v8  ;;  %v8080_v21 = vld [vmem:[#allocation68_spill] sm:$0xff]  ;;  %v8081_v33 = vld [vmem:[#allocation94_spill] sm:$0xff]  ;;  %v8082_v52 = vld [vmem:[#allocation103_spill] sm:$0xff] }
 0x33d   : > { %v1876_v63 = vsel %vm1856_vm9, %v1843_v32, %v5619_v1  ;;  %v1899_v6 = vsel %vm1889_vm8, %v1866_v48, %v5719_v57  ;;  %v1702_v1 = vsel %vm1691_vm3, %v1669_v4, %v8065_v2  ;;  %v1712_v57 = vsel %vm1691_vm3, %v1679_v60, %v8066_v41  ;;  %v8084_v39 = vld [vmem:[#allocation117_spill] sm:$0xff]  ;;  %v8087_v60 = vld [vmem:[#allocation135_spill] sm:$0xff]  ;;  %v8102_v56 = vld [vmem:[#allocation158_spill] sm:$0xff] }
 0x33e   : > { %v1909_v24 = vsel %vm1889_vm8, %v1876_v63, %v1602_v51  ;;  %v1735_v25 = vsel %vm1724_vm4, %v1702_v1, %v8067_v42  ;;  %v1745_v46 = vsel %vm1724_vm4, %v1712_v57, %v8068_v61  ;;  %v1713_v29 = vsel %vm1691_vm3, %v1680_v47, %v8079_v38  ;;  %v8085_v63 = vld [vmem:[#allocation71_spill] sm:$0xff]  ;;  %v8089_v2 = vld [vmem:[#allocation153_spill] sm:$0xff]  ;;  %v8090_v61 = vld [vmem:[#allocation18_spill] sm:$0xff] }
 0x33f   : > { %v1778_v59 = vsel %vm1757_vm6, %v1745_v46, %v8069_v9  ;;  %v1768_v12 = vsel %vm1757_vm6, %v1735_v25, %v8070_v20  ;;  %v1604_v54 = vpop.permute.xlu1 %1603  ;;  %v1746_v32 = vsel %vm1724_vm4, %v1713_v29, %v8082_v52  ;;  %v4305_v25 = vld [vmem:[#allocation2 + $0x90] sm:$0xff]  ;;  %v4306_v9 = vld [vmem:[#allocation2 + $0x108] sm:$0xff]  ;;  %v8104_v52 = vld [vmem:[#allocation21_spill] sm:$0xff] }
 0x340   : > { %v1779_v48 = vsel %vm1757_vm6, %v1746_v32, %v8084_v39  ;;  %v1671_v46 = vsel %vm225_vm0, %v4305_v25, %v8090_v61  ;;  %v8107_v39 = vld [vmem:[#allocation91_spill] sm:$0xff] }
 0x341   : > { %v8115_v61 = vld [vmem:[#allocation159_spill] sm:$0xff] }
 0x342   : > { %4199 = vmatmul.msk.f32.gmra.mxu0 %vm1931_vm10, %v1898_v0  ;;  %4209 = vmatmul.msk.f32.gmra.mxu2 %vm1931_vm10, %v1908_v3  ;;  %v1801_v0 = vsel %vm1790_vm5, %v1768_v12, %v8071_v14  ;;  %v8072_v3 = vld [vmem:[#allocation122_spill] sm:$0xff]  ;;  %v8092_v12 = vld [vmem:[#allocation53_spill] sm:$0xff]  ;;  %v8093_v14 = vld [vmem:[#allocation83_spill] sm:$0xff] }
 0x343   : > { %v1811_v58 = vsel %vm1790_vm5, %v1778_v59, %v8072_v3  ;;  %v1834_v62 = vsel %vm1823_vm7, %v1801_v0, %v8073_v35  ;;  %v8091_v59 = vld [vmem:[#allocation35_spill] sm:$0xff] }
 0x344   : > { %v1844_v37 = vsel %vm1823_vm7, %v1811_v58, %v8074_v44  ;;  %v1867_v5 = vsel %vm1856_vm9, %v1834_v62, %v8076_v30  ;;  %v1681_v20 = vsel %vm225_vm0, %v4306_v9, %v8091_v59  ;;  %v8094_v0 = vld [vmem:[#allocation95_spill] sm:$0xff]  ;;  %v8095_v58 = vld [vmem:[#allocation96_spill] sm:$0xff]  ;;  %v8097_v44 = vld [vmem:[#allocation37_spill] sm:$0xff] }
 0x345   : > { %v1877_v53 = vsel %vm1856_vm9, %v1844_v37, %v8075_v31  ;;  %v1900_v10 = vsel %vm1889_vm8, %v1867_v5, %v5721_v34  ;;  %v1703_v34 = vsel %vm1691_vm3, %v1670_v19, %v8080_v21  ;;  %v8096_v35 = vld [vmem:[#allocation115_spill] sm:$0xff]  ;;  %v8098_v31 = vld [vmem:[#allocation56_spill] sm:$0xff] }
 0x346   : > { %v1910_v50 = vsel %vm1889_vm8, %v1877_v53, %v1604_v54  ;;  %v1736_v51 = vsel %vm1724_vm4, %v1703_v34, %v8081_v33  ;;  %v8099_v30 = vld [vmem:[#allocation123_spill] sm:$0xff]  ;;  %v8103_v34 = vld [vmem:[#allocation20_spill] sm:$0xff] }
 0x347   : > { %v1769_v27 = vsel %vm1757_vm6, %v1736_v51, %v8083_v15  ;;  %v4307_v21 = vld [vmem:[#allocation2 + $0x110] sm:$0xff]  ;;  %v4308_v51 = vld [vmem:[#allocation2 + $0x98] sm:$0xff]  ;;  %v8105_v15 = vld [vmem:[#allocation69_spill] sm:$0xff] }
 0x348   : > { %v1682_v33 = vsel %vm225_vm0, %v4307_v21, %v8103_v34  ;;  %v1672_v32 = vsel %vm225_vm0, %v4308_v51, %v8104_v52  ;;  %v8116_v9 = vld [vmem:[#allocation160_spill] sm:$0xff]  ;;  %v8127_v34 = vld [vmem:[#allocation138_spill] sm:$0xff]  ;;  %v8128_v51 = vld [vmem:[#allocation147_spill] sm:$0xff] }
 0x34a   : > { %4200 = vmatmul.msk.f32.gmra.mxu0 %vm1931_vm10, %v1899_v6  ;;  %4210 = vmatmul.msk.f32.gmra.mxu2 %vm1931_vm10, %v1909_v24  ;;  %v1812_v6 = vsel %vm1790_vm5, %v1779_v48, %v8085_v63  ;;  %v8086_v24 = vld [vmem:[#allocation66_spill] sm:$0xff]  ;;  %v8108_v63 = vld [vmem:[#allocation104_spill] sm:$0xff] }
 0x34b   : > { %v1802_v17 = vsel %vm1790_vm5, %v1769_v27, %v8086_v24  ;;  %v1845_v4 = vsel %vm1823_vm7, %v1812_v6, %v8088_v55  ;;  %v8106_v27 = vld [vmem:[#allocation84_spill] sm:$0xff]  ;;  %v8109_v24 = vld [vmem:[#allocation19_spill] sm:$0xff] }
 0x34c   : > { %v1835_v22 = vsel %vm1823_vm7, %v1802_v17, %v8087_v60  ;;  %v1878_v41 = vsel %vm1856_vm9, %v1845_v4, %v5623_v26  ;;  %v1704_v26 = vsel %vm1691_vm3, %v1671_v46, %v8092_v12  ;;  %v8112_v4 = vld [vmem:[#allocation124_spill] sm:$0xff] }
 0x34d   : > { %v1868_v1 = vsel %vm1856_vm9, %v1835_v22, %v8089_v2  ;;  %v1911_v42 = vsel %vm1889_vm8, %v1878_v41, %v1606_v18  ;;  %v1737_v54 = vsel %vm1724_vm4, %v1704_v26, %v8095_v58  ;;  %v8110_v18 = vld [vmem:[#allocation23_spill] sm:$0xff]  ;;  %v8111_v22 = vld [vmem:[#allocation70_spill] sm:$0xff] }
 0x34e   : > { %v1901_v57 = vsel %vm1889_vm8, %v1868_v1, %v5737_v28  ;;  %v1714_v28 = vsel %vm1691_vm3, %v1681_v20, %v8093_v14  ;;  %v1770_v62 = vsel %vm1757_vm6, %v1737_v54, %v8096_v35  ;;  %v1610_v1 = vpop.permute.xlu1 %1609  ;;  %v8113_v41 = vld [vmem:[#allocation131_spill] sm:$0xff]  ;;  %v4309_v26 = vld [vmem:[#allocation2 + $0xa8] sm:$0xff]  ;;  %v6021_v54 = vld [vmem:[%s7753_s2] ss:$0 sm:$0xff] }
 0x34f   : > { %v1747_v3 = vsel %vm1724_vm4, %v1714_v28, %v8094_v0  ;;  %v1803_v53 = vsel %vm1790_vm5, %v1770_v62, %v8098_v31  ;;  %v8117_v14 = vld [vmem:[#allocation10_spill] sm:$0xff]  ;;  %v4310_v0 = vld [vmem:[#allocation2 + $0x120] sm:$0xff] }
 0x350   : > { %v1780_v37 = vsel %vm1757_vm6, %v1747_v3, %v8097_v44  ;;  %v1836_v19 = vsel %vm1823_vm7, %v1803_v53, %v8101_v36  ;;  %v1673_v28 = vsel %vm225_vm0, %v4309_v26, %v8117_v14  ;;  %v8118_v3 = vld [vmem:[#allocation36_spill] sm:$0xff]  ;;  %v8120_v62 = vld [vmem:[#allocation74_spill] sm:$0xff]  ;;  %v8122_v53 = vld [vmem:[#allocation105_spill] sm:$0xff] }
 0x351   : > { %v1813_v5 = vsel %vm1790_vm5, %v1780_v37, %v8099_v30  ;;  %v1869_v8 = vsel %vm1856_vm9, %v1836_v19, %v8102_v56  ;;  %v1683_v58 = vsel %vm225_vm0, %v4310_v0, %v8118_v3  ;;  %v1706_v44 = vsel %vm1691_vm3, %v1673_v28, %v8120_v62  ;;  %v8121_v37 = vld [vmem:[#allocation97_spill] sm:$0xff]  ;;  %v8125_v56 = vld [vmem:[#allocation72_spill] sm:$0xff]  ;;  %v8140_v26 = vld [vmem:[#allocation139_spill] sm:$0xff] }
 0x352   : > { %4201 = vmatmul.msk.f32.gmra.mxu0 %vm1931_vm10, %v1900_v10  ;;  %4211 = vmatmul.msk.f32.gmra.mxu2 %vm1931_vm10, %v1910_v50  ;;  %v1608_v10 = vpop.permute.xlu0 %1607  ;;  %v8100_v50 = vld [vmem:[#allocation136_spill] sm:$0xff]  ;;  %v1902_v38 = vsel %vm1889_vm8, %v1869_v8, %v5748_v16  ;;  %v1715_v16 = vsel %vm1691_vm3, %v1682_v33, %v8106_v27  ;;  %v1739_v31 = vsel %vm1724_vm4, %v1706_v44, %v8121_v37  ;;  %v8143_v37 = vld [vmem:[#allocation25_spill] sm:$0xff] }
 0x353   : > { %v1846_v40 = vsel %vm1823_vm7, %v1813_v5, %v8100_v50  ;;  %v1748_v6 = vsel %vm1724_vm4, %v1715_v16, %v8108_v63  ;;  %v2241_v5 = vld [vmem:[#allocation2 + $0x1] sm:$0xff]  ;;  %v8130_v63 = vld [vmem:[#allocation40_spill] sm:$0xff] }
 0x354   : > { %v1879_v47 = vsel %vm1856_vm9, %v1846_v40, %v5637_v45  ;;  %v1705_v45 = vsel %vm1691_vm3, %v1672_v32, %v8105_v15  ;;  %v1781_v17 = vsel %vm1757_vm6, %v1748_v6, %v8109_v24  ;;  %v8124_v40 = vld [vmem:[#allocation118_spill] sm:$0xff]  ;;  %2529 = vrot.lane.b32.xlu1 %v2241_v5, %s4340_s20  ;;  %v4312_v24 = vld [vmem:[#allocation2 + $0xb0] sm:$0xff]  ;;  %v8141_v28 = vld [vmem:[#allocation140_spill] sm:$0xff] }
 0x355   : > { %v1912_v29 = vsel %vm1889_vm8, %v1879_v47, %v1608_v10  ;;  %v1738_v48 = vsel %vm1724_vm4, %v1705_v45, %v8107_v39  ;;  %v1814_v2 = vsel %vm1790_vm5, %v1781_v17, %v8112_v4  ;;  %v8123_v10 = vld [vmem:[#allocation111_spill] sm:$0xff]  ;;  %v8126_v47 = vld [vmem:[#allocation76_spill] sm:$0xff]  ;;  %v8129_v32 = vld [vmem:[#allocation154_spill] sm:$0xff] }
 0x356   : > { %v1771_v60 = vsel %vm1757_vm6, %v1738_v48, %v8110_v18  ;;  %v1772_v50 = vsel %vm1757_vm6, %v1739_v31, %v8123_v10  ;;  %v4311_v48 = vld [vmem:[#allocation2 + $0x128] sm:$0xff]  ;;  %v8132_v18 = vld [vmem:[#allocation85_spill] sm:$0xff]  ;;  %v4313_v44 = vld [vmem:[#allocation2 + $0x138] sm:$0xff] }
 0x357   : > { %v1804_v55 = vsel %vm1790_vm5, %v1771_v60, %v8111_v22  ;;  %v1684_v6 = vsel %vm225_vm0, %v4311_v48, %v8130_v63  ;;  %v8131_v17 = vld [vmem:[#allocation22_spill] sm:$0xff]  ;;  %v1685_v31 = vsel %vm225_vm0, %v4313_v44, %v8143_v37  ;;  %v8155_v63 = vld [vmem:[#allocation149_spill] sm:$0xff]  ;;  %v8165_v44 = vld [vmem:[#allocation88_spill] sm:$0xff] }
 0x358   : > { %v1717_v60 = vsel %vm1691_vm3, %v1684_v6, %v8132_v18  ;;  %v8145_v5 = vld [vmem:[#allocation106_spill] sm:$0xff] }
 0x35a   : > { %4202 = vmatmul.msk.f32.gmra.mxu0 %vm1931_vm10, %v1901_v57  ;;  %4212 = vmatmul.msk.f32.gmra.mxu2 %vm1931_vm10, %v1911_v42  ;;  %v1837_v57 = vsel %vm1823_vm7, %v1804_v55, %v8113_v41  ;;  %v8114_v42 = vld [vmem:[#allocation146_spill] sm:$0xff] }
 0x35b   : > { %v1847_v25 = vsel %vm1823_vm7, %v1814_v2, %v8114_v42  ;;  %v1870_v59 = vsel %vm1856_vm9, %v1837_v57, %v8116_v9  ;;  %v8134_v55 = vld [vmem:[#allocation98_spill] sm:$0xff] }
 0x35c   : > { %v1880_v46 = vsel %vm1856_vm9, %v1847_v25, %v8115_v61  ;;  %v1903_v20 = vsel %vm1889_vm8, %v1870_v59, %v5741_v23  ;;  %v8119_v23 = vld [vmem:[#allocation73_spill] sm:$0xff]  ;;  %v1750_v4 = vsel %vm1724_vm4, %v1717_v60, %v8134_v55  ;;  %v2242_v2 = vld [vmem:[#allocation2 + $0x9] sm:$0xff]  ;;  %v8137_v25 = vld [vmem:[#allocation116_spill] sm:$0xff]  ;;  %v1614_v59 = vpop.permute.xlu0 %1613 }
 0x35d   : > { %v1913_v12 = vsel %vm1889_vm8, %v1880_v46, %v1610_v1  ;;  %v1716_v35 = vsel %vm1691_vm3, %v1683_v58, %v8119_v23  ;;  %v8135_v1 = vld [vmem:[#allocation99_spill] sm:$0xff]  ;;  %v8136_v57 = vld [vmem:[#allocation38_spill] sm:$0xff]  ;;  %2531 = vrot.lane.b32.xlu2 %v2242_v2, %s4340_s20  ;;  %v8138_v46 = vld [vmem:[#allocation125_spill] sm:$0xff] }
 0x35e   : > { %v1749_v30 = vsel %vm1724_vm4, %v1716_v35, %v8122_v53  ;;  %v1783_v42 = vsel %vm1757_vm6, %v1750_v4, %v8136_v57  ;;  %v8142_v58 = vld [vmem:[#allocation161_spill] sm:$0xff]  ;;  %v8158_v2 = vld [vmem:[#allocation87_spill] sm:$0xff] }
 0x35f   : > { %v1782_v36 = vsel %vm1757_vm6, %v1749_v30, %v8124_v40  ;;  %v1816_v9 = vsel %vm1790_vm5, %v1783_v42, %v8138_v46  ;;  %v8160_v42 = vld [vmem:[#allocation43_spill] sm:$0xff] }
 0x360   : > { %v1815_v8 = vsel %vm1790_vm5, %v1782_v36, %v8125_v56  ;;  %v1849_v14 = vsel %vm1823_vm7, %v1816_v9, %v8140_v26  ;;  %v8147_v36 = vld [vmem:[#allocation126_spill] sm:$0xff]  ;;  %v1616_v56 = vpop.permute.xlu1 %1615 }
 0x361   : > { %v1848_v52 = vsel %vm1823_vm7, %v1815_v8, %v8128_v51  ;;  %v1882_v3 = vsel %vm1856_vm9, %v1849_v14, %v5643_v11  ;;  %v8144_v11 = vld [vmem:[#allocation86_spill] sm:$0xff]  ;;  %v8148_v8 = vld [vmem:[#allocation148_spill] sm:$0xff]  ;;  %v8151_v51 = vld [vmem:[#allocation77_spill] sm:$0xff] }
 0x362   : > { %4203 = vmatmul.msk.f32.gmra.mxu0 %vm1931_vm10, %v1902_v38  ;;  %4213 = vmatmul.msk.f32.gmra.mxu2 %vm1931_vm10, %v1912_v29  ;;  %v1805_v38 = vsel %vm1790_vm5, %v1772_v50, %v8126_v47  ;;  %v1612_v29 = vpop.permute.xlu2 %1611  ;;  %v1881_v45 = vsel %vm1856_vm9, %v1848_v52, %v5640_v49  ;;  %v1674_v49 = vsel %vm225_vm0, %v4312_v24, %v8131_v17  ;;  %v8146_v50 = vld [vmem:[#allocation29_spill] sm:$0xff]  ;;  %v8163_v26 = vld [vmem:[#allocation34_spill] sm:$0xff] }
 0x363   : > { %v1838_v33 = vsel %vm1823_vm7, %v1805_v38, %v8127_v34  ;;  %v1914_v39 = vsel %vm1889_vm8, %v1881_v45, %v1612_v29  ;;  %v1915_v35 = vsel %vm1889_vm8, %v1882_v3, %v1614_v59  ;;  %v1718_v30 = vsel %vm1691_vm3, %v1685_v31, %v8144_v11  ;;  %v8149_v38 = vld [vmem:[#allocation162_spill] sm:$0xff]  ;;  %v8150_v34 = vld [vmem:[#allocation41_spill] sm:$0xff]  ;;  %v4316_v3 = vld [vmem:[#allocation2 + $0x158] sm:$0xff] }
 0x364   : > { %v1871_v15 = vsel %vm1856_vm9, %v1838_v33, %v8129_v32  ;;  %v1751_v10 = vsel %vm1724_vm4, %v1718_v30, %v8145_v5  ;;  %v8152_v32 = vld [vmem:[#allocation107_spill] sm:$0xff]  ;;  %v8153_v45 = vld [vmem:[#allocation42_spill] sm:$0xff]  ;;  %v8156_v17 = vld [vmem:[#allocation5_spill] sm:$0xff]  ;;  %v1620_v9 = vpop.permute.xlu0 %1619 }
 0x365   : > { %v1904_v16 = vsel %vm1889_vm8, %v1871_v15, %v5771_v43  ;;  %v8133_v43 = vld [vmem:[#allocation57_spill] sm:$0xff]  ;;  %v1784_v40 = vsel %vm1757_vm6, %v1751_v10, %v8146_v50  ;;  %v8167_v30 = vld [vmem:[#allocation28_spill] sm:$0xff] }
 0x366   : > { %v1707_v22 = vsel %vm1691_vm3, %v1674_v49, %v8133_v43  ;;  %v4315_v43 = vld [vmem:[#allocation2 + $0x150] sm:$0xff]  ;;  %v8162_v59 = vld [vmem:[#allocation141_spill] sm:$0xff]  ;;  %v8168_v10 = vld [vmem:[#allocation128_spill] sm:$0xff] }
 0x367   : > { %v1740_v41 = vsel %vm1724_vm4, %v1707_v22, %v8135_v1  ;;  %v8157_v22 = vld [vmem:[#allocation45_spill] sm:$0xff] }
 0x368   : > { %v1773_v61 = vsel %vm1757_vm6, %v1740_v41, %v8137_v25  ;;  %v1687_v55 = vsel %vm225_vm0, %v4315_v43, %v8157_v22  ;;  %v8159_v41 = vld [vmem:[#allocation100_spill] sm:$0xff]  ;;  %v4318_v22 = vld [vmem:[#allocation2 + $0x170] sm:$0xff] }
 0x369   : > { %v1720_v1 = vsel %vm1691_vm3, %v1687_v55, %v8158_v2  ;;  %v8178_v55 = vld [vmem:[#allocation50_spill] sm:$0xff] }
 0x36a   : > { %4204 = vmatmul.msk.f32.gmra.mxu0 %vm1931_vm10, %v1903_v20  ;;  %4214 = vmatmul.msk.f32.gmra.mxu2 %vm1931_vm10, %v1913_v12  ;;  %v8139_v20 = vld [vmem:[#allocation60_spill] sm:$0xff]  ;;  %v1618_v48 = vpop.permute.xlu2 %1617  ;;  %v1753_v57 = vsel %vm1724_vm4, %v1720_v1, %v8159_v41  ;;  %v8179_v1 = vld [vmem:[#allocation89_spill] sm:$0xff] }
 0x36b   : > { %v1806_v12 = vsel %vm1790_vm5, %v1773_v61, %v8139_v20  ;;  %v1786_v25 = vsel %vm1757_vm6, %v1753_v57, %v8160_v42  ;;  %v8161_v61 = vld [vmem:[#allocation127_spill] sm:$0xff]  ;;  %v8180_v42 = vld [vmem:[#allocation102_spill] sm:$0xff] }
 0x36c   : > { %v1839_v0 = vsel %vm1823_vm7, %v1806_v12, %v8141_v28  ;;  %v1819_v46 = vsel %vm1790_vm5, %v1786_v25, %v8161_v61  ;;  %v8181_v61 = vld [vmem:[#allocation52_spill] sm:$0xff] }
 0x36d   : > { %v2049_v19 = vpop.f32.mrf.mxu0  ;;  %v1872_v23 = vsel %vm1856_vm9, %v1839_v0, %v8142_v58  ;;  %v1852_v20 = vsel %vm1823_vm7, %v1819_v46, %v8162_v59  ;;  %v8164_v58 = vld [vmem:[#allocation31_spill] sm:$0xff] }
 0x36e   : > { %v2050_v21 = vadd.f32 %v6021_v54, %v2049_v19  ;;  %v1905_v53 = vsel %vm1889_vm8, %v1872_v23, %v5793_v13  ;;  %v1817_v19 = vsel %vm1790_vm5, %v1784_v40, %v8147_v36  ;;  %v1885_v14 = vsel %vm1856_vm9, %v1852_v20, %v8163_v26  ;;  %v1622_v40 = vpop.permute.xlu1 %1621  ;;  %v8169_v36 = vld [vmem:[#allocation150_spill] sm:$0xff]  ;;  %v1626_v20 = vpop.permute.xlu0 %1625 }
 0x36f   : > { %v1850_v47 = vsel %vm1823_vm7, %v1817_v19, %v8148_v8  ;;  %v1918_v0 = vsel %vm1889_vm8, %v1885_v14, %v1620_v9  ;;  %v1688_v23 = vsel %vm225_vm0, %v4316_v3, %v8164_v58  ;;  %v8170_v8 = vld [vmem:[#allocation164_spill] sm:$0xff]  ;;  %v8182_v9 = vld [vmem:[#allocation129_spill] sm:$0xff] }
 0x370   : > { %v2145_v27 = vmax.f32 %v2050_v21, 0.0  ;;  %v1883_v13 = vsel %vm1856_vm9, %v1850_v47, %v8149_v38  ;;  %v4314_v21 = vld [vmem:[#allocation2 + $0x140] sm:$0xff]  ;;  %v1721_v37 = vsel %vm1691_vm3, %v1688_v23, %v8165_v44 }
 0x371   : > { %v1916_v29 = vsel %vm1889_vm8, %v1883_v13, %v1616_v56  ;;  %v1686_v33 = vsel %vm225_vm0, %v4314_v21, %v8150_v34  ;;  %v8171_v21 = vld [vmem:[#allocation46_spill] sm:$0xff] }
 0x372   : > { %2177 = vst.msk [vmem:[#allocation2 + $0x19] sm:$0xff] %vm225_vm0, %v2145_v27  ;;  %4205 = vmatmul.msk.f32.gmra.mxu0 %vm1931_vm10, %v1904_v16  ;;  %4215 = vmatmul.msk.f32.gmra.mxu2 %vm1931_vm10, %v1914_v39  ;;  %v1719_v52 = vsel %vm1691_vm3, %v1686_v33, %v8151_v51  ;;  %v8154_v16 = vld [vmem:[#allocation80_spill] sm:$0xff]  ;;  %v8172_v51 = vld [vmem:[#allocation81_spill] sm:$0xff] }
 0x373   : > { %v1752_v15 = vsel %vm1724_vm4, %v1719_v52, %v8152_v32 }
 0x374   : > { %v1785_v27 = vsel %vm1757_vm6, %v1752_v15, %v8153_v45  ;;  %v8173_v15 = vld [vmem:[#allocation109_spill] sm:$0xff] }
 0x375   : > { %v1818_v39 = vsel %vm1790_vm5, %v1785_v27, %v8154_v16  ;;  %v8174_v27 = vld [vmem:[#allocation47_spill] sm:$0xff] }
 0x376   : > { %v1851_v6 = vsel %vm1823_vm7, %v1818_v39, %v8155_v63  ;;  %v8175_v39 = vld [vmem:[#allocation121_spill] sm:$0xff]  ;;  %v1624_v63 = vpop.permute.xlu2 %1623 }
 0x377   : > { %v1884_v49 = vsel %vm1856_vm9, %v1851_v6, %v8156_v17  ;;  %v8176_v6 = vld [vmem:[#allocation152_spill] sm:$0xff] }
 0x378   : > { %v1917_v60 = vsel %vm1889_vm8, %v1884_v49, %v1618_v48  ;;  %v8177_v49 = vld [vmem:[#allocation165_spill] sm:$0xff] }
 0x379   : > { %v6085_v62 = vld [vmem:[#allocation2 + $0x19] sm:$0xff] }
 0x37a   : > { %4216 = vmatmul.msk.f32.gmra.mxu2 %vm1931_vm10, %v1915_v35  ;;  %2533 = vrot.lane.b32.xlu0 %v6085_v62, %s4340_s20 }
 0x37b   : > { %4206 = vmatmul.msk.f32.gmra.mxu0 %vm1931_vm10, %v1905_v53  ;;  %v8166_v53 = vld [vmem:[#allocation108_spill] sm:$0xff] }
 0x37c   : > { %v1754_v11 = vsel %vm1724_vm4, %v1721_v37, %v8166_v53 }
 0x37d   : > { %v1787_v5 = vsel %vm1757_vm6, %v1754_v11, %v8167_v30 }
 0x37e   : > { %v1820_v50 = vsel %vm1790_vm5, %v1787_v5, %v8168_v10 }
 0x37f   : > { %v1853_v19 = vsel %vm1823_vm7, %v1820_v50, %v8169_v36 }
 0x380   : > { %v1886_v47 = vsel %vm1856_vm9, %v1853_v19, %v8170_v8 }
 0x381   : > { %v1919_v13 = vsel %vm1889_vm8, %v1886_v47, %v1622_v40 }
 0x382   : > { %4217 = vmatmul.msk.f32.gmra.mxu2 %vm1931_vm10, %v1916_v29  ;;  %v4317_v29 = vld [vmem:[#allocation2 + $0x168] sm:$0xff] }
 0x383   : > { %v1689_v34 = vsel %vm225_vm0, %v4317_v29, %v8171_v21 }
 0x384   : > { %v1722_v52 = vsel %vm1691_vm3, %v1689_v34, %v8172_v51 }
 0x385   : > { %v1755_v45 = vsel %vm1724_vm4, %v1722_v52, %v8173_v15 }
 0x386   : > { %v1788_v16 = vsel %vm1757_vm6, %v1755_v45, %v8174_v27 }
 0x387   : > { %v2052_v24 = vpop.f32.mrf.mxu0  ;;  %v1821_v48 = vsel %vm1790_vm5, %v1788_v16, %v8175_v39 }
 0x388   : > { %v2053_v18 = vadd.f32 %v6021_v54, %v2052_v24  ;;  %v1854_v24 = vsel %vm1823_vm7, %v1821_v48, %v8176_v6 }
 0x38a   : > { %v2146_v4 = vmax.f32 %v2053_v18, 0.0  ;;  %4218 = vmatmul.msk.f32.gmra.mxu2 %vm1931_vm10, %v1917_v60  ;;  %v1887_v18 = vsel %vm1856_vm9, %v1854_v24, %v8177_v49 }
 0x38b   : > { %v1920_v43 = vsel %vm1889_vm8, %v1887_v18, %v1624_v63 }
 0x38c   : > { %2178 = vst.msk [vmem:[#allocation2 + $0x21] sm:$0xff] %vm225_vm0, %v2146_v4  ;;  %v1690_v4 = vsel %vm225_vm0, %v4318_v22, %v8178_v55 }
 0x38d   : > { %v1723_v41 = vsel %vm1691_vm3, %v1690_v4, %v8179_v1 }
 0x38e   : > { %v1756_v25 = vsel %vm1724_vm4, %v1723_v41, %v8180_v42 }
 0x38f   : > { %v2055_v12 = vpop.f32.mrf.mxu0  ;;  %v1789_v46 = vsel %vm1757_vm6, %v1756_v25, %v8181_v61 }
 0x390   : > { %v2056_v28 = vadd.f32 %v6021_v54, %v2055_v12  ;;  %v1822_v59 = vsel %vm1790_vm5, %v1789_v46, %v8182_v9  ;;  %v8183_v12 = vld [vmem:[#allocation144_spill] sm:$0xff] }
 0x391   : > { %v1855_v26 = vsel %vm1823_vm7, %v1822_v59, %v8183_v12 }
 0x392   : > { %v2147_v35 = vmax.f32 %v2056_v28, 0.0  ;;  %4219 = vmatmul.msk.f32.gmra.mxu2 %vm1931_vm10, %v1918_v0  ;;  %v1888_v28 = vsel %vm1856_vm9, %v1855_v26, %v5663_v7 }
 0x393   : > { %v6148_v31 = vld [vmem:[#allocation2 + $0x21] sm:$0xff]  ;;  %v1921_v3 = vsel %vm1889_vm8, %v1888_v28, %v1626_v20 }
 0x394   : > { %2179 = vst.msk [vmem:[#allocation2 + $0x31] sm:$0xff] %vm225_vm0, %v2147_v35  ;;  %2535 = vrot.lane.b32.xlu1 %v6148_v31, %s4340_s20 }
 0x397   : > { %v2058_v56 = vpop.f32.mrf.mxu0 }
 0x398   : > { %v2059_v38 = vadd.f32 %v6021_v54, %v2058_v56 }
 0x39a   : > { %v2148_v33 = vmax.f32 %v2059_v38, 0.0  ;;  %4220 = vmatmul.msk.f32.gmra.mxu2 %vm1931_vm10, %v1919_v13 }
 0x39b   : > { %v6170_v32 = vld [vmem:[#allocation2 + $0x31] sm:$0xff] }
 0x39c   : > { %2180 = vst.msk [vmem:[#allocation2 + $0x39] sm:$0xff] %vm225_vm0, %v2148_v33  ;;  %2537 = vrot.lane.b32.xlu2 %v6170_v32, %s4340_s20 }
 0x39f   : > { %v2061_v17 = vpop.f32.mrf.mxu0 }
 0x3a0   : > { %v2062_v60 = vadd.f32 %v6021_v54, %v2061_v17 }
 0x3a2   : > { %v2149_v2 = vmax.f32 %v2062_v60, 0.0  ;;  %4221 = vmatmul.msk.f32.gmra.mxu2 %vm1931_vm10, %v1920_v43 }
 0x3a3   : > { %v6192_v57 = vld [vmem:[#allocation2 + $0x39] sm:$0xff] }
 0x3a4   : > { %2181 = vst.msk [vmem:[#allocation2 + $0x49] sm:$0xff] %vm225_vm0, %v2149_v2  ;;  %2539 = vrot.lane.b32.xlu0 %v6192_v57, %s4340_s20 }
 0x3a7   : > { %v2064_v14 = vpop.f32.mrf.mxu0 }
 0x3a8   : > { %v2065_v0 = vadd.f32 %v6021_v54, %v2064_v14 }
 0x3aa   : > { %v2150_v58 = vmax.f32 %v2065_v0, 0.0  ;;  %4222 = vmatmul.msk.f32.gmra.mxu2 %vm1931_vm10, %v1921_v3 }
 0x3ab   : > { %v6210_v23 = vld [vmem:[#allocation2 + $0x49] sm:$0xff] }
 0x3ac   : > { %2182 = vst.msk [vmem:[#allocation2 + $0x51] sm:$0xff] %vm225_vm0, %v2150_v58  ;;  %2541 = vrot.lane.b32.xlu1 %v6210_v23, %s4340_s20 }
 0x3af   : > { %v2067_v35 = vpop.f32.mrf.mxu0 }
 0x3b0   : > { %v2068_v44 = vadd.f32 %v6021_v54, %v2067_v35 }
 0x3b2   : > { %v2151_v37 = vmax.f32 %v2068_v44, 0.0 }
 0x3b3   : > { %v6216_v53 = vld [vmem:[#allocation2 + $0x51] sm:$0xff] }
 0x3b4   : > { %2183 = vst.msk [vmem:[#allocation2 + $0x61] sm:$0xff] %vm225_vm0, %v2151_v37  ;;  %2543 = vrot.lane.b32.xlu2 %v6216_v53, %s4340_s20 }
 0x3b5   : > { %v2097_v7 = vpop.f32.mrf.mxu2 }
 0x3b6   : > { %v2098_v11 = vadd.f32 %v6021_v54, %v2097_v7 }
 0x3b7   : > { %v2070_v30 = vpop.f32.mrf.mxu0 }
 0x3b8   : > { %v2161_v5 = vmax.f32 %v2098_v11, 0.0  ;;  %v2071_v10 = vadd.f32 %v6021_v54, %v2070_v30 }
 0x3ba   : > { %2193 = vst.msk [vmem:[#allocation2 + $0xd9] sm:$0xff] %vm225_vm0, %v2161_v5  ;;  %v2152_v50 = vmax.f32 %v2071_v10, 0.0 }
 0x3bb   : > { %v6224_v40 = vld [vmem:[#allocation2 + $0x61] sm:$0xff] }
 0x3bc   : > { %2184 = vst.msk [vmem:[#allocation2 + $0x69] sm:$0xff] %vm225_vm0, %v2152_v50  ;;  %2545 = vrot.lane.b32.xlu0 %v6224_v40, %s4340_s20 }
 0x3bd   : > { %v2100_v36 = vpop.f32.mrf.mxu2 }
 0x3be   : > { %v2101_v19 = vadd.f32 %v6021_v54, %v2100_v36 }
 0x3bf   : > { %v2073_v56 = vpop.f32.mrf.mxu0 }
 0x3c0   : > { %v2162_v8 = vmax.f32 %v2101_v19, 0.0  ;;  %v2074_v47 = vadd.f32 %v6021_v54, %v2073_v56 }
 0x3c1   : > { %v6288_v50 = vld [vmem:[#allocation2 + $0xd9] sm:$0xff] }
 0x3c2   : > { %2194 = vst.msk [vmem:[#allocation2 + $0xe1] sm:$0xff] %vm225_vm0, %v2162_v8  ;;  %v2153_v38 = vmax.f32 %v2074_v47, 0.0 }
 0x3c3   : > { %v6232_v13 = vld [vmem:[#allocation2 + $0x69] sm:$0xff] }
 0x3c4   : > { %2185 = vst.msk [vmem:[#allocation2 + $0x79] sm:$0xff] %vm225_vm0, %v2153_v38  ;;  %2547 = vrot.lane.b32.xlu1 %v6232_v13, %s4340_s20 }
 0x3c5   : > { %v2103_v29 = vpop.f32.mrf.mxu2 }
 0x3c6   : > { %v2104_v21 = vadd.f32 %v6021_v54, %v2103_v29 }
 0x3c7   : > { %v2076_v34 = vpop.f32.mrf.mxu0 }
 0x3c8   : > { %v2163_v33 = vmax.f32 %v2104_v21, 0.0  ;;  %v2077_v51 = vadd.f32 %v6021_v54, %v2076_v34 }
 0x3c9   : > { %v6301_v38 = vld [vmem:[#allocation2 + $0xe1] sm:$0xff] }
 0x3ca   : > { %2195 = vst.msk [vmem:[#allocation2 + $0xf1] sm:$0xff] %vm225_vm0, %v2163_v33  ;;  %v2154_v52 = vmax.f32 %v2077_v51, 0.0 }
 0x3cb   : > { %v6240_v15 = vld [vmem:[#allocation2 + $0x79] sm:$0xff] }
 0x3cc   : > { %2186 = vst.msk [vmem:[#allocation2 + $0x81] sm:$0xff] %vm225_vm0, %v2154_v52  ;;  %2549 = vrot.lane.b32.xlu2 %v6240_v15, %s4340_s20 }
 0x3cd   : > { %v2106_v45 = vpop.f32.mrf.mxu2 }
 0x3ce   : > { %v2107_v27 = vadd.f32 %v6021_v54, %v2106_v45 }
 0x3cf   : > { %v2079_v16 = vpop.f32.mrf.mxu0 }
 0x3d0   : > { %v2164_v39 = vmax.f32 %v2107_v27, 0.0  ;;  %v2080_v48 = vadd.f32 %v6021_v54, %v2079_v16 }
 0x3d1   : > { %v6319_v45 = vld [vmem:[#allocation2 + $0xf1] sm:$0xff] }
 0x3d2   : > { %2196 = vst.msk [vmem:[#allocation2 + $0xf9] sm:$0xff] %vm225_vm0, %v2164_v39  ;;  %v2155_v63 = vmax.f32 %v2080_v48, 0.0 }
 0x3d3   : > { %v6248_v6 = vld [vmem:[#allocation2 + $0x81] sm:$0xff] }
 0x3d4   : > { %2187 = vst.msk [vmem:[#allocation2 + $0x91] sm:$0xff] %vm225_vm0, %v2155_v63  ;;  %2551 = vrot.lane.b32.xlu0 %v6248_v6, %s4340_s20 }
 0x3d5   : > { %v2109_v24 = vpop.f32.mrf.mxu2 }
 0x3d6   : > { %v2110_v17 = vadd.f32 %v6021_v54, %v2109_v24 }
 0x3d7   : > { %v2082_v49 = vpop.f32.mrf.mxu0 }
 0x3d8   : > { %v2165_v18 = vmax.f32 %v2110_v17, 0.0  ;;  %v2083_v60 = vadd.f32 %v6021_v54, %v2082_v49 }
 0x3d9   : > { %v6299_v47 = vld [vmem:[#allocation2 + $0xf9] sm:$0xff] }
 0x3da   : > { %2197 = vst.msk [vmem:[#allocation2 + $0x109] sm:$0xff] %vm225_vm0, %v2165_v18  ;;  %v2156_v43 = vmax.f32 %v2083_v60, 0.0 }
 0x3db   : > { %v6256_v22 = vld [vmem:[#allocation2 + $0x91] sm:$0xff] }
 0x3dc   : > { %2188 = vst.msk [vmem:[#allocation2 + $0x99] sm:$0xff] %vm225_vm0, %v2156_v43  ;;  %2553 = vrot.lane.b32.xlu1 %v6256_v22, %s4340_s20 }
 0x3dd   : > { %v2112_v55 = vpop.f32.mrf.mxu2 }
 0x3de   : > { %v2113_v4 = vadd.f32 %v6021_v54, %v2112_v55 }
 0x3df   : > { %v2085_v2 = vpop.f32.mrf.mxu0 }
 0x3e0   : > { %v2166_v1 = vmax.f32 %v2113_v4, 0.0  ;;  %v2086_v41 = vadd.f32 %v6021_v54, %v2085_v2 }
 0x3e1   : > { %v6315_v52 = vld [vmem:[#allocation2 + $0x109] sm:$0xff] }
 0x3e2   : > { %2198 = vst.msk [vmem:[#allocation2 + $0x111] sm:$0xff] %vm225_vm0, %v2166_v1  ;;  %v2157_v42 = vmax.f32 %v2086_v41, 0.0 }
 0x3e3   : > { %v6264_v25 = vld [vmem:[#allocation2 + $0x99] sm:$0xff] }
 0x3e4   : > { %2189 = vst.msk [vmem:[#allocation2 + $0xa9] sm:$0xff] %vm225_vm0, %v2157_v42  ;;  %2555 = vrot.lane.b32.xlu2 %v6264_v25, %s4340_s20 }
 0x3e5   : > { %v2115_v61 = vpop.f32.mrf.mxu2 }
 0x3e6   : > { %v2116_v46 = vadd.f32 %v6021_v54, %v2115_v61 }
 0x3e7   : > { %v2088_v9 = vpop.f32.mrf.mxu0 }
 0x3e8   : > { %v2167_v59 = vmax.f32 %v2116_v46, 0.0  ;;  %v2089_v20 = vadd.f32 %v6021_v54, %v2088_v9  ;;  %v2274_v46 = vld [vmem:[#allocation2 + $0xa] sm:$0xff] }
 0x3e9   : > { %v6333_v24 = vld [vmem:[#allocation2 + $0x111] sm:$0xff] }
 0x3ea   : > { %2199 = vst.msk [vmem:[#allocation2 + $0x121] sm:$0xff] %vm225_vm0, %v2167_v59  ;;  %v2158_v12 = vmax.f32 %v2089_v20, 0.0  ;;  %v2273_v20 = vld [vmem:[#allocation2 + $0x2] sm:$0xff] }
 0x3eb   : > { %v6272_v26 = vld [vmem:[#allocation2 + $0xa9] sm:$0xff] }
 0x3ec   : > { %2190 = vst.msk [vmem:[#allocation2 + $0xb1] sm:$0xff] %vm225_vm0, %v2158_v12  ;;  %2557 = vrot.lane.b32.xlu0 %v6272_v26, %s4340_s20  ;;  %v6366_v12 = vpop.permute.xlu2 %2531 }
 0x3ed   : > { %v2118_v14 = vpop.f32.mrf.mxu2  ;;  %8184 = vst [vmem:[#allocation9_spill] sm:$0xff] %v6366_v12 }
 0x3ee   : > { %v2119_v28 = vadd.f32 %v6021_v54, %v2118_v14 }
 0x3ef   : > { %v2091_v0 = vpop.f32.mrf.mxu0 }
 0x3f0   : > { %v2168_v3 = vmax.f32 %v2119_v28, 0.0  ;;  %v2092_v58 = vadd.f32 %v6021_v54, %v2091_v0 }
 0x3f1   : > { %v6313_v51 = vld [vmem:[#allocation2 + $0x121] sm:$0xff] }
 0x3f2   : > { %2200 = vst.msk [vmem:[#allocation2 + $0x129] sm:$0xff] %vm225_vm0, %v2168_v3  ;;  %v2159_v35 = vmax.f32 %v2092_v58, 0.0  ;;  %v6370_v3 = vld [vmem:[#allocation2 + $0x32] sm:$0xff]  ;;  %v6372_v58 = vld [vmem:[#allocation2 + $0x1a] sm:$0xff] }
 0x3f3   : > { %v6280_v44 = vld [vmem:[#allocation2 + $0xb1] sm:$0xff] }
 0x3f4   : > { %2191 = vst.msk [vmem:[#allocation2 + $0xc1] sm:$0xff] %vm225_vm0, %v2159_v35  ;;  %2559 = vrot.lane.b32.xlu1 %v6280_v44, %s4340_s20  ;;  %v6379_v35 = vld [vmem:[#allocation2 + $0x22] sm:$0xff] }
 0x3f5   : > { %v2121_v37 = vpop.f32.mrf.mxu2 }
 0x3f6   : > { %v2122_v7 = vadd.f32 %v6021_v54, %v2121_v37  ;;  %v6383_v37 = vpop.permute.xlu2 %2537 }
 0x3f7   : > { %8185 = vst [vmem:[#allocation51_spill] sm:$0xff] %v6383_v37 }
 0x3f8   : > { %v2169_v11 = vmax.f32 %v2122_v7, 0.0  ;;  %v2094_v30 = vpop.f32.mrf.mxu0  ;;  %v6387_v7 = vld [vmem:[#allocation2 + $0x3a] sm:$0xff] }
 0x3f9   : > { %v2095_v5 = vadd.f32 %v6021_v54, %v2094_v30  ;;  %v6329_v63 = vld [vmem:[#allocation2 + $0x129] sm:$0xff] }
 0x3fa   : > { %2201 = vst.msk [vmem:[#allocation2 + $0x139] sm:$0xff] %vm225_vm0, %v2169_v11  ;;  %v6393_v11 = vpop.permute.xlu1 %2529  ;;  %v6395_v30 = vld [vmem:[#allocation2 + $0x4a] sm:$0xff]  ;;  %v6497_v37 = vld [vmem:[#allocation2 + $0x122] sm:$0xff] }
 0x3fb   : > { %v2160_v10 = vmax.f32 %v2095_v5, 0.0  ;;  %v6290_v36 = vld [vmem:[#allocation2 + $0xc1] sm:$0xff]  ;;  %8186 = vst [vmem:[#allocation7_spill] sm:$0xff] %v6393_v11 }
 0x3fc   : > { %2565 = vrot.lane.b32.xlu1 %v6288_v50, %s4340_s20  ;;  %2561 = vrot.lane.b32.xlu2 %v6290_v36, %s4340_s20 }
 0x3fd   : > { %2192 = vst.msk [vmem:[#allocation2 + $0xc9] sm:$0xff] %vm225_vm0, %v2160_v10  ;;  %v2124_v19 = vpop.f32.mrf.mxu2  ;;  %v6401_v10 = vld [vmem:[#allocation2 + $0x7a] sm:$0xff] }
 0x3fe   : > { %v2125_v56 = vadd.f32 %v6021_v54, %v2124_v19  ;;  %v6403_v19 = vld [vmem:[#allocation2 + $0x62] sm:$0xff] }
 0x400   : > { %v2170_v8 = vmax.f32 %v2125_v56, 0.0  ;;  %v6409_v56 = vld [vmem:[#allocation2 + $0x6a] sm:$0xff] }
 0x401   : > { %v6343_v43 = vld [vmem:[#allocation2 + $0x139] sm:$0xff] }
 0x402   : > { %2202 = vst.msk [vmem:[#allocation2 + $0x141] sm:$0xff] %vm225_vm0, %v2170_v8 }
 0x404   : > { %2571 = vrot.lane.b32.xlu1 %v6299_v47, %s4340_s20  ;;  %v6305_v29 = vld [vmem:[#allocation2 + $0xc9] sm:$0xff]  ;;  %2567 = vrot.lane.b32.xlu2 %v6301_v38, %s4340_s20 }
 0x405   : > { %2563 = vrot.lane.b32.xlu0 %v6305_v29, %s4340_s20  ;;  %v2127_v21 = vpop.f32.mrf.mxu2 }
 0x406   : > { %v2128_v34 = vadd.f32 %v6021_v54, %v2127_v21  ;;  %v6413_v8 = vpop.permute.xlu1 %2535 }
 0x407   : > { %8188 = vst [vmem:[#allocation11_spill] sm:$0xff] %v6413_v8 }
 0x408   : > { %v2171_v33 = vmax.f32 %v2128_v34, 0.0  ;;  %v6417_v34 = vld [vmem:[#allocation2 + $0x9a] sm:$0xff] }
 0x409   : > { %v6327_v48 = vld [vmem:[#allocation2 + $0x141] sm:$0xff] }
 0x40a   : > { %2203 = vst.msk [vmem:[#allocation2 + $0x151] sm:$0xff] %vm225_vm0, %v2171_v33  ;;  %v6419_v33 = vld [vmem:[#allocation2 + $0x82] sm:$0xff]  ;;  %v6507_v12 = vld [vmem:[#allocation2 + $0x13a] sm:$0xff] }
 0x40b   : > { %8205 = vst [vmem:[#allocation63_spill] sm:$0xff] %v6507_v12 }
 0x40c   : > { %2577 = vrot.lane.b32.xlu1 %v6313_v51, %s4340_s20  ;;  %2573 = vrot.lane.b32.xlu2 %v6315_v52, %s4340_s20 }
 0x40d   : > { %2569 = vrot.lane.b32.xlu0 %v6319_v45, %s4340_s20  ;;  %v2130_v27 = vpop.f32.mrf.mxu2 }
 0x40e   : > { %v2131_v16 = vadd.f32 %v6021_v54, %v2130_v27  ;;  %v6399_v5 = vpop.permute.xlu2 %2543  ;;  %v6425_v27 = vld [vmem:[#allocation2 + $0x92] sm:$0xff] }
 0x40f   : > { %8187 = vst [vmem:[#allocation54_spill] sm:$0xff] %v6399_v5 }
 0x410   : > { %v2172_v39 = vmax.f32 %v2131_v16, 0.0 }
 0x411   : > { %v6341_v60 = vld [vmem:[#allocation2 + $0x151] sm:$0xff] }
 0x412   : > { %2204 = vst.msk [vmem:[#allocation2 + $0x159] sm:$0xff] %vm225_vm0, %v2172_v39 }
 0x414   : > { %2583 = vrot.lane.b32.xlu1 %v6327_v48, %s4340_s20  ;;  %2579 = vrot.lane.b32.xlu2 %v6329_v63, %s4340_s20 }
 0x415   : > { %2575 = vrot.lane.b32.xlu0 %v6333_v24, %s4340_s20  ;;  %v2133_v17 = vpop.f32.mrf.mxu2 }
 0x416   : > { %v2134_v49 = vadd.f32 %v6021_v54, %v2133_v17  ;;  %v6433_v17 = vpop.permute.xlu0 %2533 }
 0x417   : > { %8192 = vst [vmem:[#allocation4_spill] sm:$0xff] %v6433_v17 }
 0x418   : > { %v2173_v18 = vmax.f32 %v2134_v49, 0.0  ;;  %v6435_v49 = vld [vmem:[#allocation2 + $0xc2] sm:$0xff] }
 0x419   : > { %v6355_v41 = vld [vmem:[#allocation2 + $0x159] sm:$0xff] }
 0x41a   : > { %2205 = vst.msk [vmem:[#allocation2 + $0x169] sm:$0xff] %vm225_vm0, %v2173_v18  ;;  %v6437_v18 = vld [vmem:[#allocation2 + $0xaa] sm:$0xff]  ;;  %v6505_v17 = vld [vmem:[#allocation2 + $0x152] sm:$0xff] }
 0x41b   : > { %8204 = vst [vmem:[#allocation62_spill] sm:$0xff] %v6505_v17 }
 0x41c   : > { %2585 = vrot.lane.b32.xlu2 %v6341_v60, %s4340_s20 }
 0x41d   : > { %2581 = vrot.lane.b32.xlu0 %v6343_v43, %s4340_s20  ;;  %v2136_v55 = vpop.f32.mrf.mxu2 }
 0x41e   : > { %v2137_v4 = vadd.f32 %v6021_v54, %v2136_v55  ;;  %v6429_v16 = vpop.permute.xlu1 %2541  ;;  %v6443_v55 = vld [vmem:[#allocation2 + $0xb2] sm:$0xff] }
 0x41f   : > { %8190 = vst [vmem:[#allocation3_spill] sm:$0xff] %v6429_v16  ;;  %v6489_v16 = vld [vmem:[#allocation2 + $0x12a] sm:$0xff] }
 0x420   : > { %v2174_v2 = vmax.f32 %v2137_v4, 0.0  ;;  %8201 = vst [vmem:[#allocation78_spill] sm:$0xff] %v6489_v16 }
 0x421   : > { %v6350_v1 = vld [vmem:[#allocation2 + $0x169] sm:$0xff] }
 0x422   : > { %2206 = vst.msk [vmem:[#allocation2 + $0x171] sm:$0xff] %vm225_vm0, %v2174_v2  ;;  %2589 = vrot.lane.b32.xlu1 %v6350_v1, %s4340_s20 }
 0x425   : > { %2587 = vrot.lane.b32.xlu0 %v6355_v41, %s4340_s20  ;;  %v2139_v42 = vpop.f32.mrf.mxu2 }
 0x426   : > { %v2140_v61 = vadd.f32 %v6021_v54, %v2139_v42  ;;  %v6415_v21 = vpop.permute.xlu2 %2549  ;;  %v6451_v42 = vpop.permute.xlu0 %2539 }
 0x427   : > { %8189 = vst [vmem:[#allocation39_spill] sm:$0xff] %v6415_v21  ;;  %v6473_v21 = vld [vmem:[#allocation2 + $0xf2] sm:$0xff] }
 0x428   : > { %v2175_v9 = vmax.f32 %v2140_v61, 0.0  ;;  %8195 = vst [vmem:[#allocation26_spill] sm:$0xff] %v6451_v42  ;;  %v6453_v61 = vld [vmem:[#allocation2 + $0xe2] sm:$0xff]  ;;  %v6491_v42 = vld [vmem:[#allocation2 + $0x112] sm:$0xff] }
 0x429   : > { %v6360_v59 = vld [vmem:[#allocation2 + $0x171] sm:$0xff] }
 0x42a   : > { %2207 = vst.msk [vmem:[#allocation2 + $0x181] sm:$0xff] %vm225_vm0, %v2175_v9  ;;  %2659 = vrot.lane.b32.xlu1 %v2274_v46, %s4341_s25  ;;  %2591 = vrot.lane.b32.xlu2 %v6360_v59, %s4340_s20  ;;  %v6455_v46 = vld [vmem:[#allocation2 + $0xca] sm:$0xff]  ;;  %v6461_v9 = vld [vmem:[#allocation2 + $0xda] sm:$0xff] }
 0x42d   : > { %2657 = vrot.lane.b32.xlu0 %v2273_v20, %s4341_s25  ;;  %v2142_v14 = vpop.f32.mrf.mxu2 }
 0x42e   : > { %v2143_v28 = vadd.f32 %v6021_v54, %v2142_v14  ;;  %v6385_v54 = vld [vmem:[#allocation2 + $0x52] sm:$0xff] }
 0x430   : > { %v2176_v0 = vmax.f32 %v2143_v28, 0.0  ;;  %v6469_v28 = vpop.permute.xlu0 %2545 }
 0x431   : > { %8198 = vst [vmem:[#allocation13_spill] sm:$0xff] %v6469_v28 }
 0x432   : > { %2208 = vst.msk [vmem:[#allocation2 + $0x189] sm:$0xff] %vm225_vm0, %v2176_v0  ;;  %2665 = vrot.lane.b32.xlu1 %v6370_v3, %s4341_s25  ;;  %2661 = vrot.lane.b32.xlu2 %v6372_v58, %s4341_s25  ;;  %v6471_v0 = vld [vmem:[#allocation2 + $0x10a] sm:$0xff] }
 0x435   : > { %2663 = vrot.lane.b32.xlu0 %v6379_v35, %s4341_s25 }
 0x436   : > { %v6447_v4 = vpop.permute.xlu1 %2547 }
 0x437   : > { %8193 = vst [vmem:[#allocation58_spill] sm:$0xff] %v6447_v4  ;;  %v6479_v4 = vld [vmem:[#allocation2 + $0xfa] sm:$0xff] }
 0x43a   : > { %2671 = vrot.lane.b32.xlu1 %v6385_v54, %s4341_s25  ;;  %2667 = vrot.lane.b32.xlu2 %v6387_v7, %s4341_s25 }
 0x43d   : > { %2669 = vrot.lane.b32.xlu0 %v6395_v30, %s4341_s25 }
 0x43e   : > { %v6431_v39 = vpop.permute.xlu2 %2555 }
 0x43f   : > { %8191 = vst [vmem:[#allocation55_spill] sm:$0xff] %v6431_v39  ;;  %v2304_v39 = vld [vmem:[#allocation2 + $0x172] sm:$0xff] }
 0x442   : > { %2677 = vrot.lane.b32.xlu1 %v6401_v10, %s4341_s25  ;;  %2673 = vrot.lane.b32.xlu2 %v6403_v19, %s4341_s25 }
 0x445   : > { %2675 = vrot.lane.b32.xlu0 %v6409_v56, %s4341_s25 }
 0x446   : > { %v6485_v5 = vpop.permute.xlu0 %2551 }
 0x447   : > { %8199 = vst [vmem:[#allocation14_spill] sm:$0xff] %v6485_v5 }
 0x44a   : > { %2683 = vrot.lane.b32.xlu1 %v6417_v34, %s4341_s25  ;;  %2679 = vrot.lane.b32.xlu2 %v6419_v33, %s4341_s25 }
 0x44d   : > { %2681 = vrot.lane.b32.xlu0 %v6425_v27, %s4341_s25 }
 0x44e   : > { %v6465_v20 = vpop.permute.xlu1 %2553 }
 0x44f   : > { %8196 = vst [vmem:[#allocation44_spill] sm:$0xff] %v6465_v20 }
 0x452   : > { %2689 = vrot.lane.b32.xlu1 %v6435_v49, %s4341_s25  ;;  %2685 = vrot.lane.b32.xlu2 %v6437_v18, %s4341_s25 }
 0x455   : > { %2687 = vrot.lane.b32.xlu0 %v6443_v55, %s4341_s25 }
 0x456   : > { %v6449_v2 = vpop.permute.xlu2 %2561 }
 0x457   : > { %8194 = vst [vmem:[#allocation12_spill] sm:$0xff] %v6449_v2  ;;  %v6515_v2 = vld [vmem:[#allocation2 + $0x142] sm:$0xff] }
 0x458   : > { %8207 = vst [vmem:[#allocation61_spill] sm:$0xff] %v6515_v2 }
 0x45a   : > { %2695 = vrot.lane.b32.xlu1 %v6453_v61, %s4341_s25  ;;  %2691 = vrot.lane.b32.xlu2 %v6455_v46, %s4341_s25 }
 0x45d   : > { %2693 = vrot.lane.b32.xlu0 %v6461_v9, %s4341_s25 }
 0x45e   : > { %v6467_v14 = vpop.permute.xlu2 %2567  ;;  %v6503_v5 = vpop.permute.xlu0 %2557 }
 0x45f   : > { %8197 = vst [vmem:[#allocation75_spill] sm:$0xff] %v6467_v14 }
 0x460   : > { %8203 = vst [vmem:[#allocation27_spill] sm:$0xff] %v6503_v5  ;;  %v6523_v5 = vld [vmem:[#allocation2 + $0x15a] sm:$0xff] }
 0x461   : > { %8210 = vst [vmem:[#allocation142_spill] sm:$0xff] %v6523_v5 }
 0x462   : > { %2701 = vrot.lane.b32.xlu1 %v6471_v0, %s4341_s25  ;;  %2697 = vrot.lane.b32.xlu2 %v6473_v21, %s4341_s25 }
 0x465   : > { %2699 = vrot.lane.b32.xlu0 %v6479_v4, %s4341_s25 }
 0x466   : > { %v6483_v20 = vpop.permute.xlu1 %2559  ;;  %v6487_v28 = vpop.permute.xlu2 %2573 }
 0x467   : > { %8200 = vst [vmem:[#allocation59_spill] sm:$0xff] %v6487_v28 }
 0x46a   : > { %2707 = vrot.lane.b32.xlu1 %v6489_v16, %s4341_s25  ;;  %2703 = vrot.lane.b32.xlu2 %v6491_v42, %s4341_s25 }
 0x46d   : > { %2705 = vrot.lane.b32.xlu0 %v6497_v37, %s4341_s25 }
 0x46e   : > { %v6501_v8 = vpop.permute.xlu1 %2565  ;;  %v6509_v11 = vpop.permute.xlu2 %2579 }
 0x46f   : > { %8202 = vst [vmem:[#allocation6_spill] sm:$0xff] %v6501_v8 }
 0x470   : > { %8206 = vst [vmem:[#allocation24_spill] sm:$0xff] %v6509_v11 }
 0x472   : > { %2713 = vrot.lane.b32.xlu1 %v6505_v17, %s4341_s25  ;;  %2709 = vrot.lane.b32.xlu2 %v6507_v12, %s4341_s25  ;;  %v2303_v17 = vld [vmem:[#allocation2 + $0x16a] sm:$0xff]  ;;  %v6533_v12 = vld [vmem:[#allocation2 + $0x18] sm:$0xff] }
 0x473   : > { %8213 = vst [vmem:[#allocation15_spill] sm:$0xff] %v6533_v12 }
 0x475   : > { %2711 = vrot.lane.b32.xlu0 %v6515_v2, %s4341_s25  ;;  %v2217_v2 = vld [vmem:[#allocation2 + $0x60] sm:$0xff] }
 0x476   : > { %v6521_v14 = vpop.permute.xlu1 %2571  ;;  %v6528_v11 = vpop.permute.xlu2 %2585 }
 0x477   : > { %v6519_v28 = vpop.permute.xlu0 %2563  ;;  %8209 = vst [vmem:[#allocation132_spill] sm:$0xff] %v6521_v14 }
 0x478   : > { %8208 = vst [vmem:[#allocation65_spill] sm:$0xff] %v6519_v28  ;;  %v2213_v28 = vld [vmem:[#allocation2 + $0x30] sm:$0xff] }
 0x479   : > { %8211 = vst [vmem:[#allocation151_spill] sm:$0xff] %v6528_v11 }
 0x47a   : > { %2719 = vrot.lane.b32.xlu1 %v2304_v39, %s4341_s25  ;;  %2715 = vrot.lane.b32.xlu2 %v6523_v5, %s4341_s25  ;;  %v2212_v39 = vld [vmem:[#allocation2 + $0x20] sm:$0xff]  ;;  %v2214_v5 = vld [vmem:[#allocation2 + $0x38] sm:$0xff] }
 0x47d   : > { %2717 = vrot.lane.b32.xlu0 %v2303_v17, %s4341_s25  ;;  %v2216_v17 = vld [vmem:[#allocation2 + $0x50] sm:$0xff] }
 0x47e   : > { %v6535_v16 = vpop.permute.xlu1 %2577 }
 0x47f   : > { %v6531_v8 = vpop.permute.xlu0 %2569  ;;  %8214 = vst [vmem:[#allocation32_spill] sm:$0xff] %v6535_v16 }
 0x480   : > { %8212 = vst [vmem:[#allocation163_spill] sm:$0xff] %v6531_v8  ;;  %v2215_v8 = vld [vmem:[#allocation2 + $0x48] sm:$0xff] }
 0x482   : > { %2789 = vrot.lane.b32.xlu1 %v2213_v28, %s4342_s26  ;;  %2785 = vrot.lane.b32.xlu2 %v6533_v12, %s4342_s26 }
 0x484   : > { %v6540_v14 = vpop.permute.xlu2 %2591 }
 0x485   : > { %8215 = vst [vmem:[#allocation49_spill] sm:$0xff] %v6540_v14  ;;  %2787 = vrot.lane.b32.xlu0 %v2212_v39, %s4342_s26  ;;  %v2219_v14 = vld [vmem:[#allocation2 + $0x78] sm:$0xff]  ;;  %v2218_v39 = vld [vmem:[#allocation2 + $0x68] sm:$0xff] }
 0x486   : > { %v6547_v16 = vpop.permute.xlu1 %2583 }
 0x487   : > { %v6543_v11 = vpop.permute.xlu0 %2575  ;;  %8217 = vst [vmem:[#allocation92_spill] sm:$0xff] %v6547_v16  ;;  %v6629_v16 = vld [vmem:[#allocation2 + $0x128] sm:$0xff] }
 0x488   : > { %8216 = vst [vmem:[#allocation79_spill] sm:$0xff] %v6543_v11 }
 0x489   : > { %8244 = vst [vmem:[#allocation94_spill] sm:$0xff] %v6629_v16 }
 0x48a   : > { %2795 = vrot.lane.b32.xlu1 %v2216_v17, %s4342_s26  ;;  %2791 = vrot.lane.b32.xlu2 %v2214_v5, %s4342_s26 }
 0x48c   : > { %v6549_v28 = vpop.permute.xlu2 %2661 }
 0x48d   : > { %8218 = vst [vmem:[#allocation93_spill] sm:$0xff] %v6549_v28  ;;  %2793 = vrot.lane.b32.xlu0 %v2215_v8, %s4342_s26  ;;  %v6563_v28 = vld [vmem:[#allocation2 + $0x98] sm:$0xff]  ;;  %v2220_v8 = vld [vmem:[#allocation2 + $0x80] sm:$0xff] }
 0x48e   : > { %8223 = vst [vmem:[#allocation133_spill] sm:$0xff] %v6563_v28 }
 0x48f   : > { %v6552_v12 = vpop.permute.xlu0 %2581 }
 0x490   : > { %8219 = vst [vmem:[#allocation112_spill] sm:$0xff] %v6552_v12 }
 0x492   : > { %2801 = vrot.lane.b32.xlu1 %v2219_v14, %s4342_s26  ;;  %2797 = vrot.lane.b32.xlu2 %v2217_v2, %s4342_s26  ;;  %v2221_v14 = vld [vmem:[#allocation2 + $0x90] sm:$0xff] }
 0x494   : > { %v6556_v11 = vpop.permute.xlu1 %2589  ;;  %v6558_v17 = vpop.permute.xlu2 %2667 }
 0x495   : > { %8220 = vst [vmem:[#allocation30_spill] sm:$0xff] %v6556_v11  ;;  %2799 = vrot.lane.b32.xlu0 %v2218_v39, %s4342_s26  ;;  %v6575_v39 = vld [vmem:[#allocation2 + $0xc0] sm:$0xff]  ;;  %v6613_v11 = vld [vmem:[#allocation2 + $0xf0] sm:$0xff] }
 0x496   : > { %8221 = vst [vmem:[#allocation48_spill] sm:$0xff] %v6558_v17 }
 0x497   : > { %v6561_v5 = vpop.permute.xlu0 %2587  ;;  %8227 = vst [vmem:[#allocation17_spill] sm:$0xff] %v6575_v39 }
 0x498   : > { %8222 = vst [vmem:[#allocation120_spill] sm:$0xff] %v6561_v5  ;;  %v6577_v5 = vld [vmem:[#allocation2 + $0xa8] sm:$0xff] }
 0x499   : > { %8228 = vst [vmem:[#allocation64_spill] sm:$0xff] %v6577_v5 }
 0x49a   : > { %2807 = vrot.lane.b32.xlu1 %v6563_v28, %s4342_s26  ;;  %2803 = vrot.lane.b32.xlu2 %v2220_v8, %s4342_s26  ;;  %v6583_v8 = vld [vmem:[#allocation2 + $0xb0] sm:$0xff]  ;;  %8239 = vst [vmem:[#allocation157_spill] sm:$0xff] %v6613_v11 }
 0x49c   : > { %v6568_v12 = vpop.permute.xlu1 %2659  ;;  %v6570_v2 = vpop.permute.xlu2 %2673 }
 0x49d   : > { %8224 = vst [vmem:[#allocation134_spill] sm:$0xff] %v6568_v12  ;;  %2805 = vrot.lane.b32.xlu0 %v2221_v14, %s4342_s26 }
 0x49e   : > { %8225 = vst [vmem:[#allocation155_spill] sm:$0xff] %v6570_v2  ;;  %v6593_v2 = vld [vmem:[#allocation2 + $0xe0] sm:$0xff] }
 0x49f   : > { %v6573_v17 = vpop.permute.xlu0 %2657  ;;  %8232 = vst [vmem:[#allocation113_spill] sm:$0xff] %v6593_v2 }
 0x4a0   : > { %8226 = vst [vmem:[#allocation16_spill] sm:$0xff] %v6573_v17  ;;  %v6595_v17 = vld [vmem:[#allocation2 + $0xc8] sm:$0xff] }
 0x4a1   : > { %8233 = vst [vmem:[#allocation114_spill] sm:$0xff] %v6595_v17 }
 0x4a2   : > { %2813 = vrot.lane.b32.xlu1 %v6575_v39, %s4342_s26  ;;  %2809 = vrot.lane.b32.xlu2 %v6577_v5, %s4342_s26  ;;  %v6601_v39 = vld [vmem:[#allocation2 + $0xd8] sm:$0xff]  ;;  %v6611_v5 = vld [vmem:[#allocation2 + $0x108] sm:$0xff] }
 0x4a3   : > { %8234 = vst [vmem:[#allocation119_spill] sm:$0xff] %v6601_v39 }
 0x4a4   : > { %v6585_v28 = vpop.permute.xlu1 %2665  ;;  %v6587_v12 = vpop.permute.xlu2 %2679  ;;  %8238 = vst [vmem:[#allocation156_spill] sm:$0xff] %v6611_v5 }
 0x4a5   : > { %8229 = vst [vmem:[#allocation82_spill] sm:$0xff] %v6585_v28  ;;  %2811 = vrot.lane.b32.xlu0 %v6583_v8, %s4342_s26 }
 0x4a6   : > { %8230 = vst [vmem:[#allocation90_spill] sm:$0xff] %v6587_v12 }
 0x4a7   : > { %v6591_v14 = vpop.permute.xlu0 %2663 }
 0x4a8   : > { %8231 = vst [vmem:[#allocation101_spill] sm:$0xff] %v6591_v14 }
 0x4aa   : > { %2819 = vrot.lane.b32.xlu1 %v6593_v2, %s4342_s26  ;;  %2815 = vrot.lane.b32.xlu2 %v6595_v17, %s4342_s26  ;;  %v6619_v2 = vld [vmem:[#allocation2 + $0xf8] sm:$0xff]  ;;  %v6631_v17 = vld [vmem:[#allocation2 + $0x110] sm:$0xff] }
 0x4ab   : > { %8240 = vst [vmem:[#allocation8_spill] sm:$0xff] %v6619_v2 }
 0x4ac   : > { %v6603_v28 = vpop.permute.xlu1 %2671  ;;  %v6605_v12 = vpop.permute.xlu2 %2685  ;;  %8245 = vst [vmem:[#allocation103_spill] sm:$0xff] %v6631_v17 }
 0x4ad   : > { %8235 = vst [vmem:[#allocation122_spill] sm:$0xff] %v6603_v28  ;;  %2817 = vrot.lane.b32.xlu0 %v6601_v39, %s4342_s26 }
 0x4ae   : > { %8236 = vst [vmem:[#allocation130_spill] sm:$0xff] %v6605_v12 }
 0x4af   : > { %v6609_v14 = vpop.permute.xlu0 %2669 }
 0x4b0   : > { %8237 = vst [vmem:[#allocation143_spill] sm:$0xff] %v6609_v14 }
 0x4b2   : > { %2825 = vrot.lane.b32.xlu1 %v6611_v5, %s4342_s26  ;;  %2821 = vrot.lane.b32.xlu2 %v6613_v11, %s4342_s26  ;;  %v6637_v5 = vld [vmem:[#allocation2 + $0x120] sm:$0xff]  ;;  %v6647_v11 = vld [vmem:[#allocation2 + $0x138] sm:$0xff] }
 0x4b3   : > { %8246 = vst [vmem:[#allocation110_spill] sm:$0xff] %v6637_v5 }
 0x4b4   : > { %v6621_v28 = vpop.permute.xlu1 %2677  ;;  %v6623_v12 = vpop.permute.xlu2 %2691  ;;  %8250 = vst [vmem:[#allocation135_spill] sm:$0xff] %v6647_v11 }
 0x4b5   : > { %8241 = vst [vmem:[#allocation33_spill] sm:$0xff] %v6621_v28  ;;  %2823 = vrot.lane.b32.xlu0 %v6619_v2, %s4342_s26  ;;  %v2237_v2 = vld [vmem:[#allocation2 + $0x150] sm:$0xff] }
 0x4b6   : > { %8242 = vst [vmem:[#allocation67_spill] sm:$0xff] %v6623_v12 }
 0x4b7   : > { %v6627_v14 = vpop.permute.xlu0 %2675 }
 0x4b8   : > { %8243 = vst [vmem:[#allocation68_spill] sm:$0xff] %v6627_v14 }
 0x4ba   : > { %2831 = vrot.lane.b32.xlu1 %v6629_v16, %s4342_s26  ;;  %2827 = vrot.lane.b32.xlu2 %v6631_v17, %s4342_s26  ;;  %v6652_v16 = vld [vmem:[#allocation2 + $0x140] sm:$0xff] }
 0x4bb   : > { %8251 = vst [vmem:[#allocation145_spill] sm:$0xff] %v6652_v16 }
 0x4bc   : > { %v6639_v28 = vpop.permute.xlu1 %2683  ;;  %v6641_v12 = vpop.permute.xlu2 %2697 }
 0x4bd   : > { %8247 = vst [vmem:[#allocation117_spill] sm:$0xff] %v6639_v28  ;;  %2829 = vrot.lane.b32.xlu0 %v6637_v5, %s4342_s26  ;;  %v6662_v5 = vld [vmem:[#allocation2 + $0x158] sm:$0xff] }
 0x4be   : > { %8248 = vst [vmem:[#allocation71_spill] sm:$0xff] %v6641_v12 }
 0x4bf   : > { %v6645_v14 = vpop.permute.xlu0 %2681  ;;  %8254 = vst [vmem:[#allocation35_spill] sm:$0xff] %v6662_v5 }
 0x4c0   : > { %8249 = vst [vmem:[#allocation66_spill] sm:$0xff] %v6645_v14  ;;  %v2240_v14 = vld [vmem:[#allocation2 + $0x170] sm:$0xff] }
 0x4c2   : > { %2837 = vrot.lane.b32.xlu1 %v2237_v2, %s4342_s26  ;;  %2833 = vrot.lane.b32.xlu2 %v6647_v11, %s4342_s26  ;;  %v6667_v2 = vld [vmem:[#allocation2 + $0x168] sm:$0xff] }
 0x4c4   : > { %v6654_v17 = vpop.permute.xlu1 %2689  ;;  %v6656_v28 = vpop.permute.xlu2 %2703 }
 0x4c5   : > { %8252 = vst [vmem:[#allocation153_spill] sm:$0xff] %v6654_v17  ;;  %2835 = vrot.lane.b32.xlu0 %v6652_v16, %s4342_s26  ;;  %v2335_v16 = vld [vmem:[#allocation2 + $0x180] sm:$0xff] }
 0x4c6   : > { %8253 = vst [vmem:[#allocation18_spill] sm:$0xff] %v6656_v28 }
 0x4c7   : > { %v6660_v12 = vpop.permute.xlu0 %2687 }
 0x4ca   : > { %2843 = vrot.lane.b32.xlu1 %v2240_v14, %s4342_s26  ;;  %2839 = vrot.lane.b32.xlu2 %v6662_v5, %s4342_s26  ;;  %v2336_v14 = vld [vmem:[#allocation2 + $0x188] sm:$0xff] }
 0x4cc   : > { %v6669_v11 = vpop.permute.xlu1 %2695  ;;  %v6671_v17 = vpop.permute.xlu2 %2709 }
 0x4cd   : > { %8255 = vst [vmem:[#allocation53_spill] sm:$0xff] %v6669_v11  ;;  %2841 = vrot.lane.b32.xlu0 %v6667_v2, %s4342_s26 }
 0x4ce   : > { %8256 = vst [vmem:[#allocation83_spill] sm:$0xff] %v6671_v17 }
 0x4cf   : > { %v6675_v28 = vpop.permute.xlu0 %2693 }
 0x4d2   : > { %2913 = vrot.lane.b32.xlu1 %v6085_v62, %s4343_s27  ;;  %2845 = vrot.lane.b32.xlu2 %v2335_v16, %s4342_s26 }
 0x4d4   : > { %v6680_v39 = vpop.permute.xlu1 %2701  ;;  %v6682_v5 = vpop.permute.xlu2 %2715 }
 0x4d5   : > { %2847 = vrot.lane.b32.xlu0 %v2336_v14, %s4342_s26 }
 0x4d7   : > { %v6685_v11 = vpop.permute.xlu0 %2699 }
 0x4da   : > { %2919 = vrot.lane.b32.xlu1 %v6192_v57, %s4343_s27  ;;  %2915 = vrot.lane.b32.xlu2 %v6148_v31, %s4343_s27 }
 0x4dc   : > { %v6691_v17 = vpop.permute.xlu1 %2707  ;;  %v6693_v62 = vpop.permute.xlu2 %2785 }
 0x4dd   : > { %2917 = vrot.lane.b32.xlu0 %v6170_v32, %s4343_s27 }
 0x4df   : > { %v6697_v16 = vpop.permute.xlu0 %2705 }
 0x4e2   : > { %2925 = vrot.lane.b32.xlu1 %v6224_v40, %s4343_s27  ;;  %2921 = vrot.lane.b32.xlu2 %v6210_v23, %s4343_s27 }
 0x4e4   : > { %v6703_v14 = vpop.permute.xlu1 %2713  ;;  %v6705_v57 = vpop.permute.xlu2 %2791 }
 0x4e5   : > { %8257 = vst [vmem:[#allocation95_spill] sm:$0xff] %v6703_v14  ;;  %2923 = vrot.lane.b32.xlu0 %v6216_v53, %s4343_s27 }
 0x4e7   : > { %v6709_v31 = vpop.permute.xlu0 %2711 }
 0x4ea   : > { %2931 = vrot.lane.b32.xlu1 %v6248_v6, %s4343_s27  ;;  %2927 = vrot.lane.b32.xlu2 %v6232_v13, %s4343_s27 }
 0x4ec   : > { %v6715_v32 = vpop.permute.xlu1 %2719  ;;  %v6717_v40 = vpop.permute.xlu2 %2797 }
 0x4ed   : > { %8258 = vst [vmem:[#allocation96_spill] sm:$0xff] %v6715_v32  ;;  %2929 = vrot.lane.b32.xlu0 %v6240_v15, %s4343_s27  ;;  %v6795_v32 = vld [vmem:[#allocation2 + $0x181] sm:$0xff] }
 0x4ee   : > { %8259 = vst [vmem:[#allocation115_spill] sm:$0xff] %v6717_v40 }
 0x4ef   : > { %v6721_v23 = vpop.permute.xlu0 %2717 }
 0x4f2   : > { %2937 = vrot.lane.b32.xlu1 %v6272_v26, %s4343_s27  ;;  %2933 = vrot.lane.b32.xlu2 %v6256_v22, %s4343_s27 }
 0x4f4   : > { %v6727_v53 = vpop.permute.xlu1 %2789  ;;  %v6729_v6 = vpop.permute.xlu2 %2803 }
 0x4f5   : > { %8260 = vst [vmem:[#allocation37_spill] sm:$0xff] %v6729_v6  ;;  %2935 = vrot.lane.b32.xlu0 %v6264_v25, %s4343_s27 }
 0x4f7   : > { %v6733_v13 = vpop.permute.xlu0 %2787 }
 0x4fa   : > { %2943 = vrot.lane.b32.xlu1 %v6305_v29, %s4343_s27  ;;  %2939 = vrot.lane.b32.xlu2 %v6280_v44, %s4343_s27 }
 0x4fc   : > { %v6739_v15 = vpop.permute.xlu1 %2795  ;;  %v6741_v26 = vpop.permute.xlu2 %2809 }
 0x4fd   : > { %8261 = vst [vmem:[#allocation56_spill] sm:$0xff] %v6741_v26  ;;  %2941 = vrot.lane.b32.xlu0 %v6290_v36, %s4343_s27 }
 0x4ff   : > { %v6745_v22 = vpop.permute.xlu0 %2793 }
 0x502   : > { %2949 = vrot.lane.b32.xlu1 %v6319_v45, %s4343_s27  ;;  %2945 = vrot.lane.b32.xlu2 %v6288_v50, %s4343_s27 }
 0x504   : > { %v6751_v25 = vpop.permute.xlu1 %2801  ;;  %v6753_v29 = vpop.permute.xlu2 %2815 }
 0x505   : > { %8262 = vst [vmem:[#allocation123_spill] sm:$0xff] %v6751_v25  ;;  %2947 = vrot.lane.b32.xlu0 %v6301_v38, %s4343_s27 }
 0x507   : > { %v6757_v44 = vpop.permute.xlu0 %2799 }
 0x508   : > { %8263 = vst [vmem:[#allocation136_spill] sm:$0xff] %v6757_v44  ;;  %v8281_v44 = vld [vmem:[#allocation119_spill] sm:$0xff] }
 0x50a   : > { %2955 = vrot.lane.b32.xlu1 %v6333_v24, %s4343_s27  ;;  %2951 = vrot.lane.b32.xlu2 %v6299_v47, %s4343_s27 }
 0x50c   : > { %v6763_v36 = vpop.permute.xlu1 %2807  ;;  %v6765_v45 = vpop.permute.xlu2 %2821 }
 0x50d   : > { %8264 = vst [vmem:[#allocation137_spill] sm:$0xff] %v6763_v36  ;;  %2953 = vrot.lane.b32.xlu0 %v6315_v52, %s4343_s27 }
 0x50f   : > { %v6769_v50 = vpop.permute.xlu0 %2805 }
 0x510   : > { %8265 = vst [vmem:[#allocation158_spill] sm:$0xff] %v6769_v50 }
 0x512   : > { %2961 = vrot.lane.b32.xlu1 %v6343_v43, %s4343_s27  ;;  %2957 = vrot.lane.b32.xlu2 %v6313_v51, %s4343_s27 }
 0x514   : > { %v6775_v38 = vpop.permute.xlu1 %2813  ;;  %v6777_v24 = vpop.permute.xlu2 %2827 }
 0x515   : > { %2959 = vrot.lane.b32.xlu0 %v6329_v63, %s4343_s27 }
 0x517   : > { %v6781_v47 = vpop.permute.xlu0 %2811 }
 0x51a   : > { %2967 = vrot.lane.b32.xlu1 %v6355_v41, %s4343_s27  ;;  %2963 = vrot.lane.b32.xlu2 %v6327_v48, %s4343_s27 }
 0x51c   : > { %v6787_v52 = vpop.permute.xlu1 %2819  ;;  %v6789_v43 = vpop.permute.xlu2 %2833 }
 0x51d   : > { %2965 = vrot.lane.b32.xlu0 %v6341_v60, %s4343_s27  ;;  %v6809_v60 = vld [vmem:[#allocation2 + $0x189] sm:$0xff] }
 0x51e   : > { %8266 = vst [vmem:[#allocation20_spill] sm:$0xff] %v6809_v60 }
 0x51f   : > { %v6793_v51 = vpop.permute.xlu0 %2817 }
 0x522   : > { %2973 = vrot.lane.b32.xlu1 %v6795_v32, %s4343_s27  ;;  %2969 = vrot.lane.b32.xlu2 %v6350_v1, %s4343_s27 }
 0x524   : > { %v6801_v63 = vpop.permute.xlu1 %2825  ;;  %v6803_v48 = vpop.permute.xlu2 %2839 }
 0x525   : > { %2971 = vrot.lane.b32.xlu0 %v6360_v59, %s4343_s27 }
 0x527   : > { %v6807_v41 = vpop.permute.xlu0 %2823 }
 0x52a   : > { %3043 = vrot.lane.b32.xlu1 %v6379_v35, %s4344_s28  ;;  %2975 = vrot.lane.b32.xlu2 %v6809_v60, %s4343_s27 }
 0x52c   : > { %v6815_v26 = vpop.permute.xlu1 %2831  ;;  %v6817_v1 = vpop.permute.xlu2 %2845 }
 0x52d   : > { %3041 = vrot.lane.b32.xlu0 %v6372_v58, %s4344_s28 }
 0x52f   : > { %v6821_v14 = vpop.permute.xlu0 %2829 }
 0x532   : > { %3049 = vrot.lane.b32.xlu1 %v6395_v30, %s4344_s28  ;;  %3045 = vrot.lane.b32.xlu2 %v6370_v3, %s4344_s28 }
 0x534   : > { %v6827_v59 = vpop.permute.xlu1 %2837  ;;  %v6829_v35 = vpop.permute.xlu2 %2915 }
 0x535   : > { %3047 = vrot.lane.b32.xlu0 %v6387_v7, %s4344_s28 }
 0x537   : > { %v6833_v36 = vpop.permute.xlu0 %2835 }
 0x53a   : > { %3055 = vrot.lane.b32.xlu1 %v6409_v56, %s4344_s28  ;;  %3051 = vrot.lane.b32.xlu2 %v6385_v54, %s4344_s28 }
 0x53c   : > { %v6839_v58 = vpop.permute.xlu1 %2843  ;;  %v6841_v30 = vpop.permute.xlu2 %2921 }
 0x53d   : > { %3053 = vrot.lane.b32.xlu0 %v6403_v19, %s4344_s28 }
 0x53f   : > { %v6845_v50 = vpop.permute.xlu0 %2841 }
 0x540   : > { %8267 = vst [vmem:[#allocation21_spill] sm:$0xff] %v6845_v50  ;;  %v3536_v50 = vsel %vm225_vm0, %v6583_v8, %v6483_v20 }
 0x542   : > { %3061 = vrot.lane.b32.xlu1 %v6425_v27, %s4344_s28  ;;  %3057 = vrot.lane.b32.xlu2 %v6401_v10, %s4344_s28 }
 0x544   : > { %v6851_v6 = vpop.permute.xlu1 %2913  ;;  %v6853_v56 = vpop.permute.xlu2 %2927 }
 0x545   : > { %8268 = vst [vmem:[#allocation69_spill] sm:$0xff] %v6853_v56  ;;  %3059 = vrot.lane.b32.xlu0 %v6419_v33, %s4344_s28 }
 0x547   : > { %v6857_v54 = vpop.permute.xlu0 %2847 }
 0x548   : > { %8269 = vst [vmem:[#allocation84_spill] sm:$0xff] %v6857_v54 }
 0x54a   : > { %3067 = vrot.lane.b32.xlu1 %v6443_v55, %s4344_s28  ;;  %3063 = vrot.lane.b32.xlu2 %v6417_v34, %s4344_s28 }
 0x54c   : > { %v6863_v19 = vpop.permute.xlu1 %2919  ;;  %v6865_v27 = vpop.permute.xlu2 %2933 }
 0x54d   : > { %8270 = vst [vmem:[#allocation91_spill] sm:$0xff] %v6865_v27  ;;  %3065 = vrot.lane.b32.xlu0 %v6437_v18, %s4344_s28  ;;  %v8277_v27 = vld [vmem:[#allocation61_spill] sm:$0xff] }
 0x54f   : > { %v6869_v10 = vpop.permute.xlu0 %2917 }
 0x552   : > { %3073 = vrot.lane.b32.xlu1 %v6461_v9, %s4344_s28  ;;  %3069 = vrot.lane.b32.xlu2 %v6435_v49, %s4344_s28 }
 0x554   : > { %v6875_v33 = vpop.permute.xlu1 %2925  ;;  %v6877_v55 = vpop.permute.xlu2 %2939 }
 0x555   : > { %8271 = vst [vmem:[#allocation104_spill] sm:$0xff] %v6875_v33  ;;  %3071 = vrot.lane.b32.xlu0 %v6455_v46, %s4344_s28  ;;  %v8285_v33 = vld [vmem:[#allocation114_spill] sm:$0xff] }
 0x557   : > { %v6881_v34 = vpop.permute.xlu0 %2923 }
 0x558   : > { %8272 = vst [vmem:[#allocation19_spill] sm:$0xff] %v6881_v34  ;;  %v2449_v34 = vld [vmem:[#allocation2 + $0xf1] sm:$0xff] }
 0x55a   : > { %3079 = vrot.lane.b32.xlu1 %v6479_v4, %s4344_s28  ;;  %3075 = vrot.lane.b32.xlu2 %v6453_v61, %s4344_s28 }
 0x55c   : > { %v6887_v18 = vpop.permute.xlu1 %2931  ;;  %v6889_v9 = vpop.permute.xlu2 %2945 }
 0x55d   : > { %8273 = vst [vmem:[#allocation23_spill] sm:$0xff] %v6887_v18  ;;  %3077 = vrot.lane.b32.xlu0 %v6473_v21, %s4344_s28  ;;  %v8278_v18 = vld [vmem:[#allocation78_spill] sm:$0xff] }
 0x55f   : > { %v6893_v49 = vpop.permute.xlu0 %2929 }
 0x560   : > { %8274 = vst [vmem:[#allocation70_spill] sm:$0xff] %v6893_v49 }
 0x562   : > { %3085 = vrot.lane.b32.xlu1 %v6497_v37, %s4344_s28  ;;  %3081 = vrot.lane.b32.xlu2 %v6471_v0, %s4344_s28 }
 0x564   : > { %v6899_v46 = vpop.permute.xlu1 %2937  ;;  %v6901_v54 = vpop.permute.xlu2 %2951 }
 0x565   : > { %8275 = vst [vmem:[#allocation124_spill] sm:$0xff] %v6899_v46  ;;  %3083 = vrot.lane.b32.xlu0 %v6491_v42, %s4344_s28  ;;  %v3568_v46 = vsel %vm1691_vm3, %v3536_v50, %v6660_v12  ;;  %v8282_v12 = vld [vmem:[#allocation157_spill] sm:$0xff] }
 0x566   : > { %v3600_v49 = vsel %vm1724_vm4, %v3568_v46, %v6753_v29  ;;  %v8283_v29 = vld [vmem:[#allocation62_spill] sm:$0xff] }
 0x567   : > { %v6905_v61 = vpop.permute.xlu0 %2935 }
 0x568   : > { %8276 = vst [vmem:[#allocation131_spill] sm:$0xff] %v6905_v61  ;;  %v8279_v61 = vld [vmem:[#allocation63_spill] sm:$0xff] }
 0x56a   : > { %3091 = vrot.lane.b32.xlu1 %v8277_v27, %s4344_s28  ;;  %3087 = vrot.lane.b32.xlu2 %v8278_v18, %s4344_s28  ;;  %v8280_v27 = vld [vmem:[#allocation6_spill] sm:$0xff] }
 0x56b   : > { %v3539_v18 = vsel %vm225_vm0, %v8281_v44, %v8280_v27  ;;  %v8286_v44 = vld [vmem:[#allocation142_spill] sm:$0xff] }
 0x56c   : > { %v2944_v25 = vpop.permute.xlu1 %2943  ;;  %v6918_v56 = vpop.permute.xlu2 %2957  ;;  %v3571_v50 = vsel %vm1691_vm3, %v3539_v18, %v6675_v28 }
 0x56d   : > { %3089 = vrot.lane.b32.xlu0 %v8279_v61, %s4344_s28  ;;  %v6923_v20 = vsel %vm1757_vm6, %v3600_v49, %v2944_v25  ;;  %v3603_v46 = vsel %vm1724_vm4, %v3571_v50, %v6765_v45  ;;  %v8284_v61 = vld [vmem:[#allocation65_spill] sm:$0xff]  ;;  %v2401_v50 = vld [vmem:[#allocation2 + $0x30] sm:$0xff] }
 0x56e   : > { %v3538_v40 = vsel %vm225_vm0, %v8285_v33, %v8284_v61 }
 0x56f   : > { %v6925_v8 = vpop.permute.xlu0 %2941 }
 0x572   : > { %3201 = vrot.lane.b32.xlu1 %v8282_v12, %s4345_s29  ;;  %3093 = vrot.lane.b32.xlu2 %v8283_v29, %s4344_s28  ;;  %v8287_v29 = vld [vmem:[#allocation67_spill] sm:$0xff] }
 0x573   : > { %v3570_v60 = vsel %vm1691_vm3, %v3538_v40, %v8287_v29  ;;  %v2450_v29 = vld [vmem:[#allocation2 + $0xf9] sm:$0xff] }
 0x574   : > { %v2950_v25 = vpop.permute.xlu1 %2949  ;;  %v6938_v49 = vpop.permute.xlu2 %2963  ;;  %v3602_v28 = vsel %vm1724_vm4, %v3570_v60, %v6787_v52  ;;  %v2433_v52 = vld [vmem:[#allocation2 + $0x31] sm:$0xff] }
 0x575   : > { %3095 = vrot.lane.b32.xlu0 %v8286_v44, %s4344_s28  ;;  %v6946_v27 = vsel %vm1757_vm6, %v3603_v46, %v2950_v25  ;;  %v2402_v44 = vld [vmem:[#allocation2 + $0x38] sm:$0xff] }
 0x577   : > { %v2948_v45 = vpop.permute.xlu0 %2947 }
 0x578   : > { %v6953_v18 = vsel %vm1757_vm6, %v3602_v28, %v2948_v45  ;;  %v8292_v28 = vld [vmem:[#allocation145_spill] sm:$0xff] }
 0x57a   : > { %3169 = vrot.lane.b32.xlu1 %v2401_v50, %s4345_s29  ;;  %3329 = vrot.lane.b32.xlu2 %v2449_v34, %s4346_s30  ;;  %v8290_v34 = vld [vmem:[#allocation8_spill] sm:$0xff] }
 0x57c   : > { %v6957_v33 = vpop.permute.xlu1 %2955  ;;  %v6959_v46 = vpop.permute.xlu2 %2969 }
 0x57d   : > { %8288 = vst [vmem:[#allocation146_spill] sm:$0xff] %v6959_v46  ;;  %3457 = vrot.lane.b32.xlu0 %v6473_v21, %s4347_s6  ;;  %v8291_v21 = vld [vmem:[#allocation92_spill] sm:$0xff] }
 0x57e   : > { %v3548_v45 = vsel %vm225_vm0, %v8292_v28, %v8291_v21  ;;  %v8293_v28 = vld [vmem:[#allocation30_spill] sm:$0xff] }
 0x57f   : > { %v6963_v40 = vpop.permute.xlu0 %2953 }
 0x582   : > { %3425 = vrot.lane.b32.xlu1 %v6370_v3, %s4347_s6  ;;  %3297 = vrot.lane.b32.xlu2 %v2433_v52, %s4346_s30  ;;  %v3580_v3 = vsel %vm1691_vm3, %v3548_v45, %v6709_v31 }
 0x583   : > { %v3612_v50 = vsel %vm1724_vm4, %v3580_v3, %v6803_v48  ;;  %v8295_v3 = vld [vmem:[#allocation120_spill] sm:$0xff] }
 0x584   : > { %v6968_v60 = vpop.permute.xlu1 %2961  ;;  %v6970_v25 = vpop.permute.xlu2 %2975 }
 0x585   : > { %8289 = vst [vmem:[#allocation159_spill] sm:$0xff] %v6970_v25  ;;  %3203 = vrot.lane.b32.xlu0 %v8290_v34, %s4345_s29 }
 0x587   : > { %v6974_v61 = vpop.permute.xlu0 %2959 }
 0x58a   : > { %3171 = vrot.lane.b32.xlu1 %v2402_v44, %s4345_s29  ;;  %3331 = vrot.lane.b32.xlu2 %v2450_v29, %s4346_s30  ;;  %v2434_v44 = vld [vmem:[#allocation2 + $0x39] sm:$0xff]  ;;  %v3551_v29 = vsel %vm225_vm0, %v6667_v2, %v8293_v28 }
 0x58b   : > { %v3583_v31 = vsel %vm1691_vm3, %v3551_v29, %v6721_v23  ;;  %v8297_v2 = vld [vmem:[#allocation156_spill] sm:$0xff]  ;;  %v2403_v29 = vld [vmem:[#allocation2 + $0x48] sm:$0xff] }
 0x58c   : > { %v2968_v52 = vpop.permute.xlu1 %2967  ;;  %v6985_v25 = vpop.permute.xlu2 %3045 }
 0x58d   : > { %3459 = vrot.lane.b32.xlu0 %v6479_v4, %s4347_s6  ;;  %v6990_v46 = vsel %vm1757_vm6, %v3612_v50, %v2968_v52  ;;  %v3615_v4 = vsel %vm1724_vm4, %v3583_v31, %v6817_v1  ;;  %v8296_v50 = vld [vmem:[#allocation35_spill] sm:$0xff] }
 0x58e   : > { %v3550_v52 = vsel %vm225_vm0, %v8296_v50, %v8295_v3  ;;  %v2451_v31 = vld [vmem:[#allocation2 + $0x109] sm:$0xff] }
 0x58f   : > { %v6992_v21 = vpop.permute.xlu0 %2965 }
 0x592   : > { %3427 = vrot.lane.b32.xlu1 %v6387_v7, %s4347_s6  ;;  %3299 = vrot.lane.b32.xlu2 %v2434_v44, %s4346_s30  ;;  %v3582_v44 = vsel %vm1691_vm3, %v3550_v52, %v6682_v5 }
 0x593   : > { %v3614_v23 = vsel %vm1724_vm4, %v3582_v44, %v6839_v58  ;;  %v2467_v58 = vld [vmem:[#allocation2 + $0x4a] sm:$0xff] }
 0x594   : > { %v2974_v48 = vpop.permute.xlu1 %2973  ;;  %v7004_v45 = vpop.permute.xlu2 %3051  ;;  %v8302_v44 = vld [vmem:[#allocation103_spill] sm:$0xff] }
 0x595   : > { %8294 = vst [vmem:[#allocation160_spill] sm:$0xff] %v7004_v45  ;;  %3205 = vrot.lane.b32.xlu0 %v8297_v2, %s4345_s29  ;;  %v7012_v7 = vsel %vm1757_vm6, %v3615_v4, %v2974_v48  ;;  %v2435_v48 = vld [vmem:[#allocation2 + $0x49] sm:$0xff] }
 0x596   : > { %8298 = vst [vmem:[#allocation10_spill] sm:$0xff] %v7012_v7  ;;  %v2452_v7 = vld [vmem:[#allocation2 + $0x111] sm:$0xff] }
 0x597   : > { %v2972_v1 = vpop.permute.xlu0 %2971 }
 0x598   : > { %v7019_v28 = vsel %vm1757_vm6, %v3614_v23, %v2972_v1  ;;  %v8303_v1 = vld [vmem:[#allocation27_spill] sm:$0xff] }
 0x599   : > { %8299 = vst [vmem:[#allocation36_spill] sm:$0xff] %v7019_v28  ;;  %v8305_v28 = vld [vmem:[#allocation130_spill] sm:$0xff] }
 0x59a   : > { %3173 = vrot.lane.b32.xlu1 %v2403_v29, %s4345_s29  ;;  %3333 = vrot.lane.b32.xlu2 %v2451_v31, %s4346_s30  ;;  %v8304_v29 = vld [vmem:[#allocation64_spill] sm:$0xff]  ;;  %v2404_v31 = vld [vmem:[#allocation2 + $0x50] sm:$0xff] }
 0x59c   : > { %v7023_v3 = vpop.permute.xlu1 %3043  ;;  %v7025_v4 = vpop.permute.xlu2 %3057 }
 0x59d   : > { %8300 = vst [vmem:[#allocation73_spill] sm:$0xff] %v7025_v4  ;;  %3461 = vrot.lane.b32.xlu0 %v6471_v0, %s4347_s6  ;;  %v3535_v0 = vsel %vm225_vm0, %v8304_v29, %v8303_v1  ;;  %v2468_v29 = vld [vmem:[#allocation2 + $0x52] sm:$0xff] }
 0x59f   : > { %v7029_v5 = vpop.permute.xlu0 %3041 }
 0x5a2   : > { %3429 = vrot.lane.b32.xlu1 %v2467_v58, %s4347_s6  ;;  %3301 = vrot.lane.b32.xlu2 %v2435_v48, %s4346_s30  ;;  %v3567_v58 = vsel %vm1691_vm3, %v3535_v0, %v8305_v28  ;;  %v2436_v0 = vld [vmem:[#allocation2 + $0x51] sm:$0xff] }
 0x5a3   : > { %v3599_v48 = vsel %vm1724_vm4, %v3567_v58, %v6775_v38  ;;  %v8314_v58 = vld [vmem:[#allocation163_spill] sm:$0xff] }
 0x5a4   : > { %v7033_v50 = vpop.permute.xlu1 %3049  ;;  %v7035_v52 = vpop.permute.xlu2 %3063 }
 0x5a5   : > { %8301 = vst [vmem:[#allocation74_spill] sm:$0xff] %v7035_v52  ;;  %3207 = vrot.lane.b32.xlu0 %v8302_v44, %s4345_s29  ;;  %v3631_v52 = vsel %vm1757_vm6, %v3599_v48, %v6925_v8  ;;  %v3541_v48 = vsel %vm225_vm0, %v8282_v12, %v8314_v58 }
 0x5a7   : > { %v7039_v23 = vpop.permute.xlu0 %3047 }
 0x5aa   : > { %3175 = vrot.lane.b32.xlu1 %v2404_v31, %s4345_s29  ;;  %3335 = vrot.lane.b32.xlu2 %v2452_v7, %s4346_s30  ;;  %v8310_v7 = vld [vmem:[#allocation110_spill] sm:$0xff] }
 0x5ac   : > { %v7052_v4 = vpop.permute.xlu1 %3055  ;;  %v3070_v45 = vpop.permute.xlu2 %3069 }
 0x5ad   : > { %8306 = vst [vmem:[#allocation97_spill] sm:$0xff] %v7052_v4  ;;  %3463 = vrot.lane.b32.xlu0 %v6491_v42, %s4347_s6  ;;  %v7057_v1 = vsel %vm1790_vm5, %v3631_v52, %v3070_v45  ;;  %v8312_v42 = vld [vmem:[#allocation55_spill] sm:$0xff]  ;;  %v8313_v45 = vld [vmem:[#allocation133_spill] sm:$0xff] }
 0x5ae   : > { %8307 = vst [vmem:[#allocation105_spill] sm:$0xff] %v7057_v1  ;;  %v3534_v52 = vsel %vm225_vm0, %v8313_v45, %v8312_v42  ;;  %v2453_v1 = vld [vmem:[#allocation2 + $0x121] sm:$0xff]  ;;  %v8316_v4 = vld [vmem:[#allocation71_spill] sm:$0xff] }
 0x5af   : > { %v7059_v28 = vpop.permute.xlu0 %3053 }
 0x5b0   : > { %8308 = vst [vmem:[#allocation111_spill] sm:$0xff] %v7059_v28  ;;  %v3573_v28 = vsel %vm1691_vm3, %v3541_v48, %v8316_v4 }
 0x5b1   : > { %v3605_v42 = vsel %vm1724_vm4, %v3573_v28, %v6801_v63  ;;  %v8317_v63 = vld [vmem:[#allocation79_spill] sm:$0xff]  ;;  %v2469_v28 = vld [vmem:[#allocation2 + $0x62] sm:$0xff] }
 0x5b2   : > { %3431 = vrot.lane.b32.xlu1 %v2468_v29, %s4347_s6  ;;  %3303 = vrot.lane.b32.xlu2 %v2436_v0, %s4346_s30  ;;  %v2405_v29 = vld [vmem:[#allocation2 + $0x60] sm:$0xff]  ;;  %v3637_v45 = vsel %vm1757_vm6, %v3605_v42, %v6963_v40  ;;  %v8318_v40 = vld [vmem:[#allocation18_spill] sm:$0xff] }
 0x5b3   : > { %v8315_v0 = vld [vmem:[#allocation117_spill] sm:$0xff] }
 0x5b4   : > { %v7063_v38 = vpop.permute.xlu1 %3061  ;;  %v7065_v8 = vpop.permute.xlu2 %3075 }
 0x5b5   : > { %8309 = vst [vmem:[#allocation118_spill] sm:$0xff] %v7063_v38  ;;  %3209 = vrot.lane.b32.xlu0 %v8310_v7, %s4345_s29  ;;  %v3566_v38 = vsel %vm1691_vm3, %v3534_v52, %v8315_v0 }
 0x5b7   : > { %v7069_v31 = vpop.permute.xlu0 %3059 }
 0x5b8   : > { %8311 = vst [vmem:[#allocation72_spill] sm:$0xff] %v7069_v31  ;;  %v3598_v31 = vsel %vm1724_vm4, %v3566_v38, %v6781_v47  ;;  %v2437_v38 = vld [vmem:[#allocation2 + $0x61] sm:$0xff] }
 0x5b9   : > { %v3630_v12 = vsel %vm1757_vm6, %v3598_v31, %v6877_v55  ;;  %v3544_v55 = vsel %vm225_vm0, %v8302_v44, %v8317_v63 }
 0x5ba   : > { %3177 = vrot.lane.b32.xlu1 %v2405_v29, %s4345_s29  ;;  %3337 = vrot.lane.b32.xlu2 %v2453_v1, %s4346_s30  ;;  %v3576_v31 = vsel %vm1691_vm3, %v3544_v55, %v8318_v40  ;;  %v2422_v29 = vld [vmem:[#allocation2 + $0x128] sm:$0xff]  ;;  %v8321_v55 = vld [vmem:[#allocation112_spill] sm:$0xff] }
 0x5bb   : > { %v2406_v40 = vld [vmem:[#allocation2 + $0x68] sm:$0xff] }
 0x5bc   : > { %v3068_v52 = vpop.permute.xlu1 %3067  ;;  %v3082_v58 = vpop.permute.xlu2 %3081 }
 0x5bd   : > { %3465 = vrot.lane.b32.xlu0 %v6497_v37, %s4347_s6  ;;  %v7094_v4 = vsel %vm1790_vm5, %v3630_v12, %v3068_v52  ;;  %v7097_v1 = vsel %vm1790_vm5, %v3637_v45, %v3082_v58  ;;  %v3608_v37 = vsel %vm1724_vm4, %v3576_v31, %v6815_v26  ;;  %v3781_v26 = vld [vmem:[%s7754_s3 + $0x20] sm:$0xf]  ;;  %v8319_v52 = vld [vmem:[#allocation75_spill] sm:$0xff] }
 0x5be   : > { %v3640_v48 = vsel %vm1757_vm6, %v3608_v37, %v6974_v61  ;;  %v3780_v61 = vld [vmem:[%s7754_s3 + $0x18] sm:$0xff]  ;;  %v8320_v58 = vld [vmem:[#allocation113_spill] sm:$0xff]  ;;  %v2454_v31 = vld [vmem:[#allocation2 + $0x129] sm:$0xff]  ;;  %4265 = vmatpush.msk.msra.mxu3 %vm2028_vm2, %v3781_v26  ;;  %4223 = vmatpush.msk.msra.mxu1 %vm2028_vm2, %v3781_v26 }
 0x5bf   : > { %v7099_v47 = vpop.permute.xlu0 %3065  ;;  %v3540_v63 = vsel %vm225_vm0, %v8320_v58, %v8319_v52 }
 0x5c0   : > { %4266 = vmatpush.msra.mxu3 %v3780_v61  ;;  %3897 = vmatpush.msra.mxu1 %v3780_v61  ;;  %v8325_v61 = vld [vmem:[#allocation59_spill] sm:$0xff] }
 0x5c2   : > { %3433 = vrot.lane.b32.xlu1 %v2469_v28, %s4347_s6  ;;  %3305 = vrot.lane.b32.xlu2 %v2437_v38, %s4346_s30  ;;  %v8322_v28 = vld [vmem:[#allocation135_spill] sm:$0xff] }
 0x5c3   : > { %v3547_v38 = vsel %vm225_vm0, %v8322_v28, %v8321_v55 }
 0x5c4   : > { %v7112_v0 = vpop.permute.xlu1 %3073  ;;  %v3088_v42 = vpop.permute.xlu2 %3087 }
 0x5c5   : > { %3211 = vrot.lane.b32.xlu0 %v2422_v29, %s4345_s29  ;;  %v7116_v44 = vsel %vm1790_vm5, %v3640_v48, %v3088_v42  ;;  %v8324_v48 = vld [vmem:[#allocation83_spill] sm:$0xff] }
 0x5c6   : > { %v3579_v29 = vsel %vm1691_vm3, %v3547_v38, %v8324_v48  ;;  %v3779_v42 = vld [vmem:[%s7754_s3 + $0x10] sm:$0xff] }
 0x5c7   : > { %v3072_v12 = vpop.permute.xlu0 %3071  ;;  %v3611_v26 = vsel %vm1724_vm4, %v3579_v29, %v6827_v59  ;;  %4267 = vmatpush.msra.mxu3 %v3779_v42  ;;  %v3778_v59 = vld [vmem:[%s7754_s3 + $0x8] sm:$0xff]  ;;  %3898 = vmatpush.msra.mxu1 %v3779_v42  ;;  %v8326_v42 = vld [vmem:[#allocation132_spill] sm:$0xff] }
 0x5c8   : > { %v7120_v45 = vsel %vm1790_vm5, %v6923_v20, %v3072_v12  ;;  %v8323_v20 = vld [vmem:[#allocation53_spill] sm:$0xff]  ;;  %v3643_v58 = vsel %vm1757_vm6, %v3611_v26, %v6992_v21 }
 0x5c9   : > { %v3572_v37 = vsel %vm1691_vm3, %v3540_v63, %v8323_v20  ;;  %v2486_v63 = vld [vmem:[#allocation2 + $0x12a] sm:$0xff]  ;;  %4268 = vmatpush.msra.mxu3 %v3778_v59  ;;  %v3777_v21 = vld [vmem:[%s7754_s3] sm:$0xff]  ;;  %3899 = vmatpush.msra.mxu1 %v3778_v59  ;;  %v2407_v59 = vld [vmem:[#allocation2 + $0x78] sm:$0xff] }
 0x5ca   : > { %3179 = vrot.lane.b32.xlu1 %v2406_v40, %s4345_s29  ;;  %3339 = vrot.lane.b32.xlu2 %v2454_v31, %s4346_s30  ;;  %v3604_v12 = vsel %vm1724_vm4, %v3572_v37, %v6807_v41  ;;  %v3543_v31 = vsel %vm225_vm0, %v8297_v2, %v8325_v61  ;;  %v2470_v20 = vld [vmem:[#allocation2 + $0x6a] sm:$0xff] }
 0x5cb   : > { %v3636_v52 = vsel %vm1757_vm6, %v3604_v12, %v6901_v54  ;;  %v2438_v37 = vld [vmem:[#allocation2 + $0x69] sm:$0xff]  ;;  %4269 = vmatpush.msra.mxu3 %v3777_v21  ;;  %v3575_v48 = vsel %vm1691_vm3, %v3543_v31, %v6680_v39  ;;  %3900 = vmatpush.msra.mxu1 %v3777_v21  ;;  %v3542_v12 = vsel %vm225_vm0, %v8290_v34, %v8326_v42  ;;  %v2455_v21 = vld [vmem:[#allocation2 + $0x139] sm:$0xff] }
 0x5cc   : > { %v3080_v55 = vpop.permute.xlu1 %3079  ;;  %v3094_v38 = vpop.permute.xlu2 %3093  ;;  %v3607_v29 = vsel %vm1724_vm4, %v3575_v48, %v6821_v14  ;;  %v3574_v39 = vsel %vm1691_vm3, %v3542_v12, %v6685_v11  ;;  %v2471_v12 = vld [vmem:[#allocation2 + $0x7a] sm:$0xff] }
 0x5cd   : > { %3467 = vrot.lane.b32.xlu0 %v2486_v63, %s4347_s6  ;;  %v7155_v40 = vsel %vm1790_vm5, %v3636_v52, %v3080_v55  ;;  %v7158_v41 = vsel %vm1790_vm5, %v3643_v58, %v3094_v38  ;;  %v3639_v2 = vsel %vm1757_vm6, %v3607_v29, %v6918_v56  ;;  %v3606_v14 = vsel %vm1724_vm4, %v3574_v39, %v6777_v24  ;;  %v8327_v55 = vld [vmem:[#allocation24_spill] sm:$0xff]  ;;  %v8328_v38 = vld [vmem:[#allocation94_spill] sm:$0xff] }
 0x5ce   : > { %v3638_v34 = vsel %vm1757_vm6, %v3606_v14, %v6957_v33  ;;  %v3546_v11 = vsel %vm225_vm0, %v8328_v38, %v8327_v55  ;;  %v8329_v33 = vld [vmem:[#allocation32_spill] sm:$0xff] }
 0x5cf   : > { %v7163_v54 = vpop.permute.xlu0 %3077  ;;  %v3545_v61 = vsel %vm225_vm0, %v8310_v7, %v8329_v33  ;;  %v8330_v14 = vld [vmem:[#allocation12_spill] sm:$0xff] }
 0x5d2   : > { %3435 = vrot.lane.b32.xlu1 %v2470_v20, %s4347_s6  ;;  %3307 = vrot.lane.b32.xlu2 %v2438_v37, %s4346_s30  ;;  %v2487_v20 = vld [vmem:[#allocation2 + $0x13a] sm:$0xff] }
 0x5d4   : > { %v3086_v26 = vpop.permute.xlu1 %3085  ;;  %v3330_v52 = vpop.permute.xlu2 %3329 }
 0x5d5   : > { %3213 = vrot.lane.b32.xlu0 %v8322_v28, %s4345_s29  ;;  %v7187_v58 = vsel %vm1790_vm5, %v3639_v2, %v3086_v26  ;;  %v3578_v28 = vsel %vm1691_vm3, %v3546_v11, %v6691_v17  ;;  %v3577_v17 = vsel %vm1691_vm3, %v3545_v61, %v6697_v16  ;;  %v2439_v2 = vld [vmem:[#allocation2 + $0x79] sm:$0xff]  ;;  %v8333_v61 = vld [vmem:[#allocation7_spill] sm:$0xff] }
 0x5d6   : > { %v3610_v24 = vsel %vm1724_vm4, %v3578_v28, %v6833_v36  ;;  %v3609_v36 = vsel %vm1724_vm4, %v3577_v17, %v6789_v43  ;;  %v2424_v16 = vld [vmem:[#allocation2 + $0x140] sm:$0xff]  ;;  %v8334_v17 = vld [vmem:[#allocation16_spill] sm:$0xff] }
 0x5d7   : > { %v3084_v63 = vpop.permute.xlu0 %3083  ;;  %v3642_v31 = vsel %vm1757_vm6, %v3610_v24, %v6938_v49  ;;  %v3641_v7 = vsel %vm1757_vm6, %v3609_v36, %v6968_v60  ;;  %v8331_v43 = vld [vmem:[#allocation17_spill] sm:$0xff] }
 0x5d8   : > { %v7194_v56 = vsel %vm1790_vm5, %v3638_v34, %v3084_v63  ;;  %v3537_v34 = vsel %vm225_vm0, %v8331_v43, %v8330_v14  ;;  %v8332_v63 = vld [vmem:[#allocation153_spill] sm:$0xff] }
 0x5d9   : > { %v3569_v55 = vsel %vm1691_vm3, %v3537_v34, %v8332_v63  ;;  %v2209_v11 = vld [vmem:[#allocation2] sm:$0xff]  ;;  %v2409_v63 = vld [vmem:[#allocation2 + $0x90] sm:$0xff] }
 0x5da   : > { %3181 = vrot.lane.b32.xlu1 %v2407_v59, %s4345_s29  ;;  %3341 = vrot.lane.b32.xlu2 %v2455_v21, %s4346_s30  ;;  %v3601_v59 = vsel %vm1724_vm4, %v3569_v55, %v6793_v51  ;;  %v2408_v21 = vld [vmem:[#allocation2 + $0x80] sm:$0xff]  ;;  %v2457_v55 = vld [vmem:[#allocation2 + $0x151] sm:$0xff] }
 0x5db   : > { %v2456_v28 = vld [vmem:[#allocation2 + $0x141] sm:$0xff]  ;;  %v3633_v24 = vsel %vm1757_vm6, %v3601_v59, %v6889_v9 }
 0x5dc   : > { %v3092_v37 = vpop.permute.xlu1 %3091  ;;  %v3298_v48 = vpop.permute.xlu2 %3297  ;;  %v3665_v33 = vsel %vm1790_vm5, %v3633_v24, %v7112_v0  ;;  %v2440_v14 = vld [vmem:[#allocation2 + $0x81] sm:$0xff] }
 0x5dd   : > { %3469 = vrot.lane.b32.xlu0 %v2487_v20, %s4347_s6  ;;  %v7214_v29 = vsel %vm1790_vm5, %v3642_v31, %v3092_v37  ;;  %v2488_v20 = vld [vmem:[#allocation2 + $0x142] sm:$0xff] }
 0x5de   : > { %v8335_v59 = vld [vmem:[#allocation9_spill] sm:$0xff] }
 0x5df   : > { %v3090_v42 = vpop.permute.xlu0 %3089 }
 0x5e0   : > { %v7221_v49 = vsel %vm1790_vm5, %v3641_v7, %v3090_v42 }
 0x5e2   : > { %3437 = vrot.lane.b32.xlu1 %v2471_v12, %s4347_s6  ;;  %3309 = vrot.lane.b32.xlu2 %v2439_v2, %s4346_s30 }
 0x5e4   : > { %v3202_v26 = vpop.permute.xlu1 %3201  ;;  %v3332_v39 = vpop.permute.xlu2 %3331 }
 0x5e5   : > { %3215 = vrot.lane.b32.xlu0 %v2424_v16, %s4345_s29  ;;  %v3697_v31 = vsel %vm1823_vm7, %v3665_v33, %v3202_v26  ;;  %v2472_v26 = vld [vmem:[#allocation2 + $0x82] sm:$0xff] }
 0x5e6   : > { %v3729_v42 = vsel %vm1856_vm9, %v3697_v31, %v3330_v52 }
 0x5e7   : > { %v3096_v60 = vpop.permute.xlu0 %3095 }
 0x5e8   : > { %v7233_v38 = vsel %vm1790_vm5, %v6990_v46, %v3096_v60  ;;  %v3521_v46 = vsel %vm225_vm0, %v2209_v11, %v8333_v61  ;;  %v2210_v60 = vld [vmem:[#allocation2 + $0x8] sm:$0xff]  ;;  %v3666_v11 = vsel %vm1790_vm5, %v6953_v18, %v7065_v8 }
 0x5e9   : > { %v3553_v36 = vsel %vm1691_vm3, %v3521_v46, %v8334_v17  ;;  %v8336_v61 = vld [vmem:[#allocation134_spill] sm:$0xff] }
 0x5ea   : > { %3183 = vrot.lane.b32.xlu1 %v2408_v21, %s4345_s29  ;;  %3343 = vrot.lane.b32.xlu2 %v2456_v28, %s4346_s30  ;;  %v3585_v9 = vsel %vm1724_vm4, %v3553_v36, %v6693_v62  ;;  %v2425_v62 = vld [vmem:[#allocation2 + $0x150] sm:$0xff] }
 0x5eb   : > { %v3617_v7 = vsel %vm1757_vm6, %v3585_v9, %v6851_v6  ;;  %v2489_v28 = vld [vmem:[#allocation2 + $0x152] sm:$0xff] }
 0x5ec   : > { %v3170_v37 = vpop.permute.xlu1 %3169  ;;  %v3300_v51 = vpop.permute.xlu2 %3299  ;;  %v3649_v12 = vsel %vm1790_vm5, %v3617_v7, %v7029_v5  ;;  %v2473_v9 = vld [vmem:[#allocation2 + $0x92] sm:$0xff] }
 0x5ed   : > { %3471 = vrot.lane.b32.xlu0 %v2488_v20, %s4347_s6  ;;  %v3681_v16 = vsel %vm1823_vm7, %v3649_v12, %v3170_v37  ;;  %v2441_v7 = vld [vmem:[#allocation2 + $0x91] sm:$0xff] }
 0x5ee   : > { %v3713_v52 = vsel %vm1856_vm9, %v3681_v16, %v3298_v48  ;;  %v3522_v48 = vsel %vm225_vm0, %v2210_v60, %v8335_v59  ;;  %v2410_v12 = vld [vmem:[#allocation2 + $0x98] sm:$0xff]  ;;  %v3667_v16 = vsel %vm1790_vm5, %v6946_v27, %v7163_v54 }
 0x5ef   : > { %v3458_v0 = vpop.permute.xlu0 %3457  ;;  %v3554_v46 = vsel %vm1691_vm3, %v3522_v48, %v8336_v61 }
 0x5f0   : > { %v3761_v2 = vsel %vm1889_vm8, %v3729_v42, %v3458_v0  ;;  %v3586_v31 = vsel %vm1724_vm4, %v3554_v46, %v6733_v13  ;;  %v2426_v13 = vld [vmem:[#allocation2 + $0x158] sm:$0xff]  ;;  %v2411_v46 = vld [vmem:[#allocation2 + $0xa8] sm:$0xff] }
 0x5f1   : > { %4240 = vmatmul.msk.f32.vlgmr.msra.gmra.mxu3 %vm1931_vm10, %v3761_v2  ;;  %v3618_v20 = vsel %vm1757_vm6, %v3586_v31, %v6829_v35  ;;  %v2458_v2 = vld [vmem:[#allocation2 + $0x159] sm:$0xff]  ;;  %v2459_v31 = vld [vmem:[#allocation2 + $0x169] sm:$0xff] }
 0x5f2   : > { %3439 = vrot.lane.b32.xlu1 %v2472_v26, %s4347_s6  ;;  %3311 = vrot.lane.b32.xlu2 %v2440_v14, %s4346_s30  ;;  %v3650_v37 = vsel %vm1790_vm5, %v3618_v20, %v7023_v3  ;;  %v8337_v26 = vld [vmem:[#allocation4_spill] sm:$0xff]  ;;  %v8338_v14 = vld [vmem:[#allocation15_spill] sm:$0xff]  ;;  %v4319_v20 = vld [vmem:[#allocation2 + $0x20] sm:$0xff] }
 0x5f4   : > { %v3426_v6 = vpop.permute.xlu1 %3425  ;;  %v3334_v43 = vpop.permute.xlu2 %3333 }
 0x5f5   : > { %3217 = vrot.lane.b32.xlu0 %v2425_v62, %s4345_s29  ;;  %v3745_v5 = vsel %vm1889_vm8, %v3713_v52, %v3426_v6  ;;  %v2490_v6 = vld [vmem:[#allocation2 + $0x15a] sm:$0xff] }
 0x5f6   : > { %4224 = vmatmul.msk.f32.vlgmr.msra.gmra.mxu1 %vm1931_vm10, %v3745_v5 }
 0x5f7   : > { %v3204_v34 = vpop.permute.xlu0 %3203 }
 0x5f8   : > { %v3698_v21 = vsel %vm1823_vm7, %v3666_v11, %v3204_v34  ;;  %v8339_v34 = vld [vmem:[#allocation93_spill] sm:$0xff] }
 0x5f9   : > { %v3730_v8 = vsel %vm1856_vm9, %v3698_v21, %v3332_v39  ;;  %v2474_v21 = vld [vmem:[#allocation2 + $0x9a] sm:$0xff] }
 0x5fa   : > { %3185 = vrot.lane.b32.xlu1 %v2409_v63, %s4345_s29  ;;  %3345 = vrot.lane.b32.xlu2 %v2457_v55, %s4346_s30 }
 0x5fc   : > { %v3172_v24 = vpop.permute.xlu1 %3171  ;;  %v3302_v33 = vpop.permute.xlu2 %3301 }
 0x5fd   : > { %3473 = vrot.lane.b32.xlu0 %v2489_v28, %s4347_s6  ;;  %v3682_v36 = vsel %vm1823_vm7, %v3650_v37, %v3172_v24  ;;  %v2442_v28 = vld [vmem:[#allocation2 + $0x99] sm:$0xff]  ;;  %v2491_v37 = vld [vmem:[#allocation2 + $0x16a] sm:$0xff] }
 0x5fe   : > { %v3714_v39 = vsel %vm1856_vm9, %v3682_v36, %v3300_v51  ;;  %v3523_v51 = vsel %vm225_vm0, %v8338_v14, %v8337_v26 }
 0x5ff   : > { %v3460_v18 = vpop.permute.xlu0 %3459  ;;  %v3555_v60 = vsel %vm1691_vm3, %v3523_v51, %v8339_v34  ;;  %v2412_v51 = vld [vmem:[#allocation2 + $0xb0] sm:$0xff] }
 0x600   : > { %v3762_v17 = vsel %vm1889_vm8, %v3730_v8, %v3460_v18  ;;  %v3587_v63 = vsel %vm1724_vm4, %v3555_v60, %v6727_v53  ;;  %v2427_v53 = vld [vmem:[#allocation2 + $0x168] sm:$0xff]  ;;  %v8340_v18 = vld [vmem:[#allocation11_spill] sm:$0xff] }
 0x601   : > { %4241 = vmatmul.msk.f32.gmra.mxu3 %vm1931_vm10, %v3762_v17  ;;  %v3619_v27 = vsel %vm1757_vm6, %v3587_v63, %v6869_v10  ;;  %v3524_v8 = vsel %vm225_vm0, %v4319_v20, %v8340_v18  ;;  %v2492_v60 = vld [vmem:[#allocation2 + $0x172] sm:$0xff]  ;;  %v8344_v20 = vld [vmem:[#allocation26_spill] sm:$0xff] }
 0x602   : > { %3441 = vrot.lane.b32.xlu1 %v2473_v9, %s4347_s6  ;;  %3313 = vrot.lane.b32.xlu2 %v2441_v7, %s4346_s30  ;;  %v3651_v11 = vsel %vm1790_vm5, %v3619_v27, %v6985_v25  ;;  %v8341_v9 = vld [vmem:[#allocation101_spill] sm:$0xff] }
 0x603   : > { %v3556_v7 = vsel %vm1691_vm3, %v3524_v8, %v8341_v9 }
 0x604   : > { %v3428_v35 = vpop.permute.xlu1 %3427  ;;  %v3336_v0 = vpop.permute.xlu2 %3335 }
 0x605   : > { %3219 = vrot.lane.b32.xlu0 %v2426_v13, %s4345_s29  ;;  %v3746_v3 = vsel %vm1889_vm8, %v3714_v39, %v3428_v35  ;;  %v3588_v13 = vsel %vm1724_vm4, %v3556_v7, %v6705_v57  ;;  %v2428_v57 = vld [vmem:[#allocation2 + $0x170] sm:$0xff] }
 0x606   : > { %4225 = vmatmul.msk.f32.gmra.mxu1 %vm1931_vm10, %v3746_v3  ;;  %v3620_v35 = vsel %vm1757_vm6, %v3588_v13, %v6863_v19  ;;  %v8346_v7 = vld [vmem:[#allocation19_spill] sm:$0xff] }
 0x607   : > { %v3206_v42 = vpop.permute.xlu0 %3205 }
 0x608   : > { %v3699_v62 = vsel %vm1823_vm7, %v3667_v16, %v3206_v42  ;;  %v2443_v16 = vld [vmem:[#allocation2 + $0xa9] sm:$0xff] }
 0x609   : > { %v3731_v55 = vsel %vm1856_vm9, %v3699_v62, %v3334_v43  ;;  %v2460_v62 = vld [vmem:[#allocation2 + $0x171] sm:$0xff] }
 0x60a   : > { %3187 = vrot.lane.b32.xlu1 %v2410_v12, %s4345_s29  ;;  %3347 = vrot.lane.b32.xlu2 %v2458_v2, %s4346_s30  ;;  %v2475_v2 = vld [vmem:[#allocation2 + $0xaa] sm:$0xff] }
 0x60c   : > { %v3174_v52 = vpop.permute.xlu1 %3173  ;;  %v3304_v5 = vpop.permute.xlu2 %3303 }
 0x60d   : > { %3475 = vrot.lane.b32.xlu0 %v2490_v6, %s4347_s6  ;;  %v3683_v48 = vsel %vm1823_vm7, %v3651_v11, %v3174_v52  ;;  %v4320_v6 = vld [vmem:[#allocation2 + $0x30] sm:$0xff] }
 0x60e   : > { %v3715_v43 = vsel %vm1856_vm9, %v3683_v48, %v3302_v33  ;;  %v8342_v52 = vld [vmem:[#allocation51_spill] sm:$0xff] }
 0x60f   : > { %v3462_v54 = vpop.permute.xlu0 %3461  ;;  %v3525_v34 = vsel %vm225_vm0, %v4320_v6, %v8342_v52  ;;  %v2477_v6 = vld [vmem:[#allocation2 + $0xc2] sm:$0xff] }
 0x610   : > { %v3763_v59 = vsel %vm1889_vm8, %v3731_v55, %v3462_v54  ;;  %v8343_v54 = vld [vmem:[#allocation82_spill] sm:$0xff] }
 0x611   : > { %4242 = vmatmul.msk.f32.gmra.mxu3 %vm1931_vm10, %v3763_v59  ;;  %v3557_v55 = vsel %vm1691_vm3, %v3525_v34, %v8343_v54  ;;  %v8352_v54 = vld [vmem:[#allocation104_spill] sm:$0xff] }
 0x612   : > { %3443 = vrot.lane.b32.xlu1 %v2474_v21, %s4347_s6  ;;  %3315 = vrot.lane.b32.xlu2 %v2442_v28, %s4346_s30  ;;  %v3589_v11 = vsel %vm1724_vm4, %v3557_v55, %v6745_v22  ;;  %v2444_v22 = vld [vmem:[#allocation2 + $0xb1] sm:$0xff] }
 0x613   : > { %v3621_v59 = vsel %vm1757_vm6, %v3589_v11, %v6841_v30 }
 0x614   : > { %v3430_v10 = vpop.permute.xlu1 %3429  ;;  %v3338_v24 = vpop.permute.xlu2 %3337 }
 0x615   : > { %3221 = vrot.lane.b32.xlu0 %v2427_v53, %s4345_s29  ;;  %v3747_v25 = vsel %vm1889_vm8, %v3715_v43, %v3430_v10  ;;  %v2429_v10 = vld [vmem:[#allocation2 + $0x180] sm:$0xff] }
 0x616   : > { %4226 = vmatmul.msk.f32.gmra.mxu1 %vm1931_vm10, %v3747_v25 }
 0x617   : > { %v3208_v61 = vpop.permute.xlu0 %3207 }
 0x618   : > { %v3700_v33 = vsel %vm1823_vm7, %v7155_v40, %v3208_v61  ;;  %v3652_v40 = vsel %vm1790_vm5, %v3620_v35, %v7039_v23  ;;  %v2493_v61 = vld [vmem:[#allocation2 + $0x182] sm:$0xff] }
 0x619   : > { %v3732_v3 = vsel %vm1856_vm9, %v3700_v33, %v3336_v0 }
 0x61a   : > { %3189 = vrot.lane.b32.xlu1 %v2411_v46, %s4345_s29  ;;  %3349 = vrot.lane.b32.xlu2 %v2459_v31, %s4346_s30  ;;  %v2476_v46 = vld [vmem:[#allocation2 + $0xb2] sm:$0xff] }
 0x61b   : > { %v4321_v31 = vld [vmem:[#allocation2 + $0x38] sm:$0xff] }
 0x61c   : > { %v3176_v17 = vpop.permute.xlu1 %3175  ;;  %v3306_v36 = vpop.permute.xlu2 %3305  ;;  %v3526_v18 = vsel %vm225_vm0, %v4321_v31, %v8344_v20  ;;  %v8354_v31 = vld [vmem:[#allocation54_spill] sm:$0xff] }
 0x61d   : > { %3477 = vrot.lane.b32.xlu0 %v2491_v37, %s4347_s6  ;;  %v3684_v12 = vsel %vm1823_vm7, %v3652_v40, %v3176_v17  ;;  %v8345_v17 = vld [vmem:[#allocation48_spill] sm:$0xff] }
 0x61e   : > { %v3716_v0 = vsel %vm1856_vm9, %v3684_v12, %v3304_v5  ;;  %v2445_v12 = vld [vmem:[#allocation2 + $0xc1] sm:$0xff] }
 0x61f   : > { %v3464_v39 = vpop.permute.xlu0 %3463 }
 0x620   : > { %v3764_v42 = vsel %vm1889_vm8, %v3732_v3, %v3464_v39  ;;  %v8347_v3 = vld [vmem:[#allocation160_spill] sm:$0xff] }
 0x621   : > { %4243 = vmatmul.msk.f32.gmra.mxu3 %vm1931_vm10, %v3764_v42 }
 0x622   : > { %3445 = vrot.lane.b32.xlu1 %v2475_v2, %s4347_s6  ;;  %3317 = vrot.lane.b32.xlu2 %v2443_v16, %s4346_s30 }
 0x624   : > { %v3432_v19 = vpop.permute.xlu1 %3431  ;;  %v3340_v26 = vpop.permute.xlu2 %3339 }
 0x625   : > { %3223 = vrot.lane.b32.xlu0 %v2428_v57, %s4345_s29  ;;  %v3748_v23 = vsel %vm1889_vm8, %v3716_v0, %v3432_v19  ;;  %v8348_v0 = vld [vmem:[#allocation20_spill] sm:$0xff] }
 0x626   : > { %4227 = vmatmul.msk.f32.gmra.mxu1 %vm1931_vm10, %v3748_v23  ;;  %v4322_v23 = vld [vmem:[#allocation2 + $0x48] sm:$0xff] }
 0x627   : > { %v3210_v14 = vpop.permute.xlu0 %3209 }
 0x628   : > { %v3701_v5 = vsel %vm1823_vm7, %v7097_v1, %v3210_v14  ;;  %v3653_v1 = vsel %vm1790_vm5, %v3621_v59, %v7033_v50  ;;  %v8349_v14 = vld [vmem:[#allocation3_spill] sm:$0xff] }
 0x629   : > { %v3733_v21 = vsel %vm1856_vm9, %v3701_v5, %v3338_v24  ;;  %v8350_v5 = vld [vmem:[#allocation143_spill] sm:$0xff] }
 0x62a   : > { %3191 = vrot.lane.b32.xlu1 %v2412_v51, %s4345_s29  ;;  %3351 = vrot.lane.b32.xlu2 %v2460_v62, %s4346_s30  ;;  %v3527_v51 = vsel %vm225_vm0, %v4322_v23, %v8349_v14  ;;  %v8359_v23 = vld [vmem:[#allocation13_spill] sm:$0xff] }
 0x62c   : > { %v3178_v63 = vpop.permute.xlu1 %3177  ;;  %v3308_v27 = vpop.permute.xlu2 %3307 }
 0x62d   : > { %3479 = vrot.lane.b32.xlu0 %v2492_v60, %s4347_s6  ;;  %v3685_v53 = vsel %vm1823_vm7, %v3653_v1, %v3178_v63  ;;  %v8351_v63 = vld [vmem:[#allocation115_spill] sm:$0xff] }
 0x62e   : > { %v3717_v25 = vsel %vm1856_vm9, %v3685_v53, %v3306_v36  ;;  %v3558_v36 = vsel %vm1691_vm3, %v3526_v18, %v8345_v17  ;;  %v2414_v53 = vld [vmem:[#allocation2 + $0xc8] sm:$0xff] }
 0x62f   : > { %v3466_v48 = vpop.permute.xlu0 %3465  ;;  %v3590_v9 = vsel %vm1724_vm4, %v3558_v36, %v6739_v15  ;;  %v8356_v36 = vld [vmem:[#allocation136_spill] sm:$0xff] }
 0x630   : > { %v3765_v28 = vsel %vm1889_vm8, %v3733_v21, %v3466_v48  ;;  %v3622_v13 = vsel %vm1757_vm6, %v3590_v9, %v8346_v7  ;;  %v8353_v48 = vld [vmem:[#allocation111_spill] sm:$0xff]  ;;  %v8357_v7 = vld [vmem:[#allocation69_spill] sm:$0xff] }
 0x631   : > { %4244 = vmatmul.msk.f32.gmra.mxu3 %vm1931_vm10, %v3765_v28  ;;  %v2494_v28 = vld [vmem:[#allocation2 + $0x18a] sm:$0xff] }
 0x632   : > { %3225 = vrot.lane.b32.xlu1 %v2429_v10, %s4345_s29  ;;  %3097 = vrot.lane.b32.xlu2 %v2491_v37, %s4344_s28 }
 0x634   : > { %v3434_v43 = vpop.permute.xlu1 %3433  ;;  %v3342_v30 = vpop.permute.xlu2 %3341 }
 0x635   : > { %3319 = vrot.lane.b32.xlu0 %v2444_v22, %s4346_s30  ;;  %v3749_v50 = vsel %vm1889_vm8, %v3717_v25, %v3434_v43 }
 0x636   : > { %4228 = vmatmul.msk.f32.gmra.mxu1 %vm1931_vm10, %v3749_v50  ;;  %v2478_v50 = vld [vmem:[#allocation2 + $0xca] sm:$0xff] }
 0x637   : > { %v3212_v24 = vpop.permute.xlu0 %3211 }
 0x638   : > { %v3702_v8 = vsel %vm1823_vm7, %v7194_v56, %v3212_v24  ;;  %v3654_v56 = vsel %vm1790_vm5, %v3622_v13, %v8347_v3  ;;  %v2446_v24 = vld [vmem:[#allocation2 + $0xc9] sm:$0xff]  ;;  %v2463_v3 = vld [vmem:[#allocation2 + $0x199] sm:$0xff] }
 0x639   : > { %v3734_v39 = vsel %vm1856_vm9, %v3702_v8, %v3340_v26  ;;  %v2430_v26 = vld [vmem:[#allocation2 + $0x188] sm:$0xff] }
 0x63a   : > { %3481 = vrot.lane.b32.xlu1 %v2493_v61, %s4347_s6  ;;  %3447 = vrot.lane.b32.xlu2 %v2476_v46, %s4347_s6  ;;  %v4323_v46 = vld [vmem:[#allocation2 + $0x50] sm:$0xff] }
 0x63b   : > { %v3528_v20 = vsel %vm225_vm0, %v4323_v46, %v8354_v31 }
 0x63c   : > { %v3180_v33 = vpop.permute.xlu1 %3179  ;;  %v3310_v37 = vpop.permute.xlu2 %3309 }
 0x63d   : > { %3353 = vrot.lane.b32.xlu0 %v6795_v32, %s4346_s30  ;;  %v3686_v42 = vsel %vm1823_vm7, %v3654_v56, %v3180_v33  ;;  %v2413_v32 = vld [vmem:[#allocation2 + $0xc0] sm:$0xff] }
 0x63e   : > { %v3718_v16 = vsel %vm1856_vm9, %v3686_v42, %v3308_v27  ;;  %v8358_v56 = vld [vmem:[#allocation97_spill] sm:$0xff] }
 0x63f   : > { %v3468_v35 = vpop.permute.xlu0 %3467 }
 0x640   : > { %v3766_v40 = vsel %vm1889_vm8, %v3734_v39, %v3468_v35 }
 0x641   : > { %4245 = vmatmul.msk.f32.gmra.mxu3 %vm1931_vm10, %v3766_v40 }
 0x642   : > { %3321 = vrot.lane.b32.xlu1 %v2445_v12, %s4346_s30  ;;  %3193 = vrot.lane.b32.xlu2 %v2413_v32, %s4345_s29  ;;  %v2415_v12 = vld [vmem:[#allocation2 + $0xd8] sm:$0xff] }
 0x643   : > { %v2495_v32 = vld [vmem:[#allocation2 + $0x19a] sm:$0xff] }
 0x644   : > { %v3436_v15 = vpop.permute.xlu1 %3435  ;;  %v3344_v2 = vpop.permute.xlu2 %3343 }
 0x645   : > { %3099 = vrot.lane.b32.xlu0 %v2492_v60, %s4344_s28  ;;  %v3750_v57 = vsel %vm1889_vm8, %v3718_v16, %v3436_v15  ;;  %v3559_v60 = vsel %vm1691_vm3, %v3527_v51, %v8350_v5 }
 0x646   : > { %4229 = vmatmul.msk.f32.gmra.mxu1 %vm1931_vm10, %v3750_v57  ;;  %v3591_v27 = vsel %vm1724_vm4, %v3559_v60, %v8351_v63  ;;  %v8361_v60 = vld [vmem:[#allocation123_spill] sm:$0xff] }
 0x647   : > { %v3214_v19 = vpop.permute.xlu0 %3213  ;;  %v3623_v55 = vsel %vm1757_vm6, %v3591_v27, %v8352_v54  ;;  %v8362_v27 = vld [vmem:[#allocation70_spill] sm:$0xff] }
 0x648   : > { %v3703_v62 = vsel %vm1823_vm7, %v7187_v58, %v3214_v19  ;;  %v3655_v58 = vsel %vm1790_vm5, %v3623_v55, %v8353_v48 }
 0x649   : > { %v3735_v59 = vsel %vm1856_vm9, %v3703_v62, %v3342_v30  ;;  %v2447_v62 = vld [vmem:[#allocation2 + $0xd9] sm:$0xff] }
 0x64a   : > { %3355 = vrot.lane.b32.xlu1 %v8348_v0, %s4346_s30  ;;  %3227 = vrot.lane.b32.xlu2 %v2430_v26, %s4345_s29  ;;  %v2432_v26 = vld [vmem:[#allocation2 + $0x1a0] sm:$0xff] }
 0x64b   : > { %v4324_v0 = vld [vmem:[#allocation2 + $0x60] sm:$0xff] }
 0x64c   : > { %v3182_v52 = vpop.permute.xlu1 %3181  ;;  %v3312_v34 = vpop.permute.xlu2 %3311  ;;  %v3529_v14 = vsel %vm225_vm0, %v4324_v0, %v8359_v23 }
 0x64d   : > { %3449 = vrot.lane.b32.xlu0 %v2477_v6, %s4347_s6  ;;  %v3687_v1 = vsel %vm1823_vm7, %v3655_v58, %v3182_v52 }
 0x64e   : > { %v3719_v43 = vsel %vm1856_vm9, %v3687_v1, %v3310_v37  ;;  %v8355_v37 = vld [vmem:[#allocation122_spill] sm:$0xff] }
 0x64f   : > { %v3470_v11 = vpop.permute.xlu0 %3469  ;;  %v3560_v17 = vsel %vm1691_vm3, %v3528_v20, %v8355_v37 }
 0x650   : > { %v3767_v21 = vsel %vm1889_vm8, %v3735_v59, %v3470_v11  ;;  %v3592_v9 = vsel %vm1724_vm4, %v3560_v17, %v8356_v36  ;;  %v2496_v11 = vld [vmem:[#allocation2 + $0x1a2] sm:$0xff] }
 0x651   : > { %4246 = vmatmul.msk.f32.gmra.mxu3 %vm1931_vm10, %v3767_v21  ;;  %v3624_v13 = vsel %vm1757_vm6, %v3592_v9, %v8357_v7  ;;  %v8363_v59 = vld [vmem:[#allocation73_spill] sm:$0xff]  ;;  %v4325_v9 = vld [vmem:[#allocation2 + $0x68] sm:$0xff] }
 0x652   : > { %3101 = vrot.lane.b32.xlu1 %v2493_v61, %s4344_s28  ;;  %3483 = vrot.lane.b32.xlu2 %v2494_v28, %s4347_s6  ;;  %v2431_v61 = vld [vmem:[#allocation2 + $0x198] sm:$0xff]  ;;  %v7471_v21 = vld [vmem:[%s7755_s4] ss:$0 sm:$0xff]  ;;  %v2480_v17 = vld [vmem:[#allocation2 + $0xe2] sm:$0xff] }
 0x653   : > { %v2416_v36 = vld [vmem:[#allocation2 + $0xe0] sm:$0xff]  ;;  %v8364_v7 = vld [vmem:[#allocation58_spill] sm:$0xff] }
 0x654   : > { %v3438_v10 = vpop.permute.xlu1 %3437  ;;  %v3346_v22 = vpop.permute.xlu2 %3345 }
 0x655   : > { %3195 = vrot.lane.b32.xlu0 %v2414_v53, %s4345_s29  ;;  %v3751_v30 = vsel %vm1889_vm8, %v3719_v43, %v3438_v10  ;;  %v2464_v53 = vld [vmem:[#allocation2 + $0x1a1] sm:$0xff] }
 0x656   : > { %4230 = vmatmul.msk.f32.gmra.mxu1 %vm1931_vm10, %v3751_v30 }
 0x657   : > { %v3216_v25 = vpop.permute.xlu0 %3215 }
 0x658   : > { %v3704_v18 = vsel %vm1823_vm7, %v7116_v44, %v3216_v25  ;;  %v3656_v44 = vsel %vm1790_vm5, %v3624_v13, %v8358_v56  ;;  %v4014_v25 = vld [vmem:[%s4461_s24 + $0x80] sm:$0xff]  ;;  %v3530_v13 = vsel %vm225_vm0, %v4325_v9, %v8364_v7  ;;  %v8365_v56 = vld [vmem:[#allocation68_spill] sm:$0xff] }
 0x659   : > { %v3736_v39 = vsel %vm1856_vm9, %v3704_v18, %v3344_v2 }
 0x65a   : > { %3451 = vrot.lane.b32.xlu1 %v2478_v50, %s4347_s6  ;;  %3323 = vrot.lane.b32.xlu2 %v2446_v24, %s4346_s30 }
 0x65c   : > { %v3184_v8 = vpop.permute.xlu1 %3183  ;;  %v3314_v33 = vpop.permute.xlu2 %3313 }
 0x65d   : > { %3229 = vrot.lane.b32.xlu0 %v2431_v61, %s4345_s29  ;;  %v3688_v42 = vsel %vm1823_vm7, %v3656_v44, %v3184_v8  ;;  %v3562_v44 = vsel %vm1691_vm3, %v3530_v13, %v8365_v56 }
 0x65e   : > { %v3720_v2 = vsel %vm1856_vm9, %v3688_v42, %v3312_v34  ;;  %v8360_v34 = vld [vmem:[#allocation155_spill] sm:$0xff]  ;;  %v8366_v42 = vld [vmem:[#allocation37_spill] sm:$0xff] }
 0x65f   : > { %v3472_v35 = vpop.permute.xlu0 %3471  ;;  %v3561_v5 = vsel %vm1691_vm3, %v3529_v14, %v8360_v34  ;;  %v3999_v14 = vld [vmem:[%s4461_s24 + $0x8] sm:$0xff] }
 0x660   : > { %v3768_v40 = vsel %vm1889_vm8, %v3736_v39, %v3472_v35  ;;  %v3593_v63 = vsel %vm1724_vm4, %v3561_v5, %v8361_v60  ;;  %v2448_v39 = vld [vmem:[#allocation2 + $0xe1] sm:$0xff] }
 0x661   : > { %4247 = vmatmul.msk.f32.gmra.mxu3 %vm1931_vm10, %v3768_v40  ;;  %v3625_v54 = vsel %vm1757_vm6, %v3593_v63, %v8362_v27 }
 0x662   : > { %3197 = vrot.lane.b32.xlu1 %v2415_v12, %s4345_s29  ;;  %3357 = vrot.lane.b32.xlu2 %v2463_v3, %s4346_s30  ;;  %v3657_v48 = vsel %vm1790_vm5, %v3625_v54, %v8363_v59  ;;  %v3594_v12 = vsel %vm1724_vm4, %v3562_v44, %v8366_v42  ;;  %v4326_v59 = vld [vmem:[#allocation2 + $0x78] sm:$0xff] }
 0x664   : > { %v3440_v15 = vpop.permute.xlu1 %3439  ;;  %v7443_v16 = vpop.permute.xlu2 %3347 }
 0x665   : > { %3485 = vrot.lane.b32.xlu0 %v2495_v32, %s4347_s6  ;;  %v3752_v57 = vsel %vm1889_vm8, %v3720_v2, %v3440_v15  ;;  %v8367_v32 = vld [vmem:[#allocation23_spill] sm:$0xff] }
 0x666   : > { %4231 = vmatmul.msk.f32.gmra.mxu1 %vm1931_vm10, %v3752_v57  ;;  %v3626_v15 = vsel %vm1757_vm6, %v3594_v12, %v8367_v32 }
 0x667   : > { %v3218_v19 = vpop.permute.xlu0 %3217 }
 0x668   : > { %v3705_v51 = vsel %vm1823_vm7, %v7221_v49, %v3218_v19 }
 0x669   : > { %v3737_v49 = vsel %vm1856_vm9, %v3705_v51, %v3346_v22  ;;  %v3998_v22 = vld [vmem:[%s4461_s24] sm:$0xff] }
 0x66a   : > { %3231 = vrot.lane.b32.xlu1 %v2432_v26, %s4345_s29  ;;  %3103 = vrot.lane.b32.xlu2 %v2494_v28, %s4344_s28  ;;  %v2479_v28 = vld [vmem:[#allocation2 + $0xda] sm:$0xff] }
 0x66c   : > { %v3186_v6 = vpop.permute.xlu1 %3185  ;;  %v7455_v52 = vpop.permute.xlu2 %3315 }
 0x66d   : > { %3325 = vrot.lane.b32.xlu0 %v2447_v62, %s4346_s30  ;;  %v3689_v1 = vsel %vm1823_vm7, %v3657_v48, %v3186_v6  ;;  %v4015_v6 = vld [vmem:[%s4461_s24 + $0x88] sm:$0xff]  ;;  %v8369_v48 = vld [vmem:[#allocation39_spill] sm:$0xff] }
 0x66e   : > { %v3721_v24 = vsel %vm1856_vm9, %v3689_v1, %v3314_v33 }
 0x66f   : > { %v3474_v55 = vpop.permute.xlu0 %3473 }
 0x670   : > { %v3769_v58 = vsel %vm1889_vm8, %v3737_v49, %v3474_v55 }
 0x671   : > { %4248 = vmatmul.msk.f32.gmra.mxu3 %vm1931_vm10, %v3769_v58 }
 0x672   : > { %3487 = vrot.lane.b32.xlu1 %v2496_v11, %s4347_s6  ;;  %3453 = vrot.lane.b32.xlu2 %v2479_v28, %s4347_s6  ;;  %v8370_v28 = vld [vmem:[#allocation33_spill] sm:$0xff] }
 0x673   : > { %v3902_v10 = vpop.f32.mrf.mxu1 }
 0x674   : > { %v3903_v43 = vadd.f32 %v7471_v21, %v3902_v10  ;;  %v3950_v30 = vpop.f32.mrf.mxu3  ;;  %v3442_v50 = vpop.permute.xlu1 %3441  ;;  %v8371_v10 = vld [vmem:[#allocation158_spill] sm:$0xff] }
 0x675   : > { %v3951_v61 = vadd.f32 %v7471_v21, %v3950_v30  ;;  %3359 = vrot.lane.b32.xlu0 %v2464_v53, %s4346_s30  ;;  %v3350_v46 = vpop.permute.xlu2 %3349  ;;  %v3753_v31 = vsel %vm1889_vm8, %v3721_v24, %v3442_v50 }
 0x676   : > { %v4030_v20 = vadd.f32 %v3998_v22, %v3903_v43  ;;  %4232 = vmatmul.msk.f32.gmra.mxu1 %vm1931_vm10, %v3753_v31  ;;  %v8372_v43 = vld [vmem:[#allocation91_spill] sm:$0xff] }
 0x677   : > { %v4046_v18 = vadd.f32 %v4014_v25, %v3951_v61  ;;  %v3220_v8 = vpop.permute.xlu0 %3219  ;;  %v8373_v61 = vld [vmem:[#allocation118_spill] sm:$0xff] }
 0x678   : > { %v4062_v33 = vmax.f32 %v4030_v20, 0.0  ;;  %v3706_v35 = vsel %vm1823_vm7, %v7214_v29, %v3220_v8  ;;  %v8368_v29 = vld [vmem:[#allocation72_spill] sm:$0xff]  ;;  %v4000_v8 = vld [vmem:[%s4461_s24 + $0x10] sm:$0xff] }
 0x679   : > { %v4078_v37 = vmax.f32 %v4046_v18, 0.0  ;;  %v3738_v57 = vsel %vm1856_vm9, %v3706_v35, %v7443_v16  ;;  %v3658_v19 = vsel %vm1790_vm5, %v3626_v15, %v8368_v29 }
 0x67a   : > { %4094 = vst.msk [vmem:[%s7490_s15] sm:$0xff] %vm225_vm0, %v4062_v33  ;;  %3455 = vrot.lane.b32.xlu1 %v2480_v17, %s4347_s6  ;;  %3199 = vrot.lane.b32.xlu2 %v2416_v36, %s4345_s29  ;;  %v4016_v17 = vld [vmem:[%s4461_s24 + $0x90] sm:$0xff] }
 0x67b   : > { %4110 = vst.msk [vmem:[%s7490_s15 + $0x80] sm:$0xff] %vm225_vm0, %v4078_v37 }
 0x67c   : > { %v3188_v3 = vpop.permute.xlu1 %3187 }
 0x67d   : > { %3327 = vrot.lane.b32.xlu0 %v2448_v39, %s4346_s30  ;;  %v3318_v40 = vpop.permute.xlu2 %3317  ;;  %v3690_v0 = vsel %vm1823_vm7, %v3658_v19, %v3188_v3  ;;  %v8375_v19 = vld [vmem:[#allocation90_spill] sm:$0xff] }
 0x67e   : > { %v3722_v16 = vsel %vm1856_vm9, %v3690_v0, %v7455_v52  ;;  %v3531_v52 = vsel %vm225_vm0, %v4326_v59, %v8369_v48 }
 0x67f   : > { %v3476_v2 = vpop.permute.xlu0 %3475  ;;  %v3563_v53 = vsel %vm1691_vm3, %v3531_v52, %v8370_v28  ;;  %v4328_v28 = vld [vmem:[#allocation2 + $0x150] sm:$0xff] }
 0x680   : > { %v3770_v26 = vsel %vm1889_vm8, %v3738_v57, %v3476_v2  ;;  %v3595_v22 = vsel %vm1724_vm4, %v3563_v53, %v8371_v10  ;;  %v4327_v2 = vld [vmem:[#allocation2 + $0x80] sm:$0xff]  ;;  %v8374_v57 = vld [vmem:[#allocation14_spill] sm:$0xff]  ;;  %v8379_v53 = vld [vmem:[#allocation151_spill] sm:$0xff] }
 0x681   : > { %4249 = vmatmul.msk.f32.gmra.mxu3 %vm1931_vm10, %v3770_v26  ;;  %v3627_v30 = vsel %vm1757_vm6, %v3595_v22, %v8372_v43  ;;  %v3532_v29 = vsel %vm225_vm0, %v4327_v2, %v8374_v57  ;;  %v3549_v10 = vsel %vm225_vm0, %v4328_v28, %v8379_v53  ;;  %v8380_v22 = vld [vmem:[#allocation95_spill] sm:$0xff]  ;;  %v8385_v57 = vld [vmem:[#allocation66_spill] sm:$0xff] }
 0x682   : > { %v3659_v31 = vsel %vm1790_vm5, %v3627_v30, %v8373_v61  ;;  %v3564_v26 = vsel %vm1691_vm3, %v3532_v29, %v8375_v19  ;;  %v3581_v43 = vsel %vm1691_vm3, %v3549_v10, %v8380_v22  ;;  %v8381_v30 = vld [vmem:[#allocation21_spill] sm:$0xff]  ;;  %v8382_v61 = vld [vmem:[#allocation146_spill] sm:$0xff]  ;;  %v8386_v19 = vld [vmem:[#allocation56_spill] sm:$0xff] }
 0x683   : > { %v3905_v23 = vpop.f32.mrf.mxu1 }
 0x684   : > { %v3906_v51 = vadd.f32 %v7471_v21, %v3905_v23  ;;  %v3953_v62 = vpop.f32.mrf.mxu3  ;;  %v3444_v34 = vpop.permute.xlu1 %3443 }
 0x685   : > { %v3954_v5 = vadd.f32 %v7471_v21, %v3953_v62  ;;  %v3352_v60 = vpop.permute.xlu2 %3351  ;;  %v3754_v63 = vsel %vm1889_vm8, %v3722_v16, %v3444_v34  ;;  %v4017_v34 = vld [vmem:[%s4461_s24 + $0x98] sm:$0xff] }
 0x686   : > { %v4031_v27 = vadd.f32 %v3999_v14, %v3906_v51  ;;  %4233 = vmatmul.msk.f32.gmra.mxu1 %vm1931_vm10, %v3754_v63  ;;  %v4001_v14 = vld [vmem:[%s4461_s24 + $0x18] sm:$0xff]  ;;  %v8376_v51 = vld [vmem:[#allocation137_spill] sm:$0xff] }
 0x687   : > { %v4047_v54 = vadd.f32 %v4015_v6, %v3954_v5  ;;  %v3222_v55 = vpop.permute.xlu0 %3221  ;;  %v8377_v5 = vld [vmem:[#allocation131_spill] sm:$0xff] }
 0x688   : > { %v4063_v49 = vmax.f32 %v4031_v27, 0.0  ;;  %v3707_v58 = vsel %vm1823_vm7, %v7158_v41, %v3222_v55  ;;  %v8378_v27 = vld [vmem:[#allocation74_spill] sm:$0xff] }
 0x689   : > { %v4079_v11 = vmax.f32 %v4047_v54, 0.0  ;;  %v3739_v24 = vsel %vm1856_vm9, %v3707_v58, %v3350_v46 }
 0x68a   : > { %4095 = vst.msk [vmem:[%s7490_s15 + $0x8] sm:$0xff] %vm225_vm0, %v4063_v49 }
 0x68b   : > { %4111 = vst.msk [vmem:[%s7490_s15 + $0x88] sm:$0xff] %vm225_vm0, %v4079_v11 }
 0x68c   : > { %v3190_v1 = vpop.permute.xlu1 %3189 }
 0x68d   : > { %v7538_v25 = vpop.permute.xlu2 %3097  ;;  %v3691_v20 = vsel %vm1823_vm7, %v3659_v31, %v3190_v1 }
 0x68e   : > { %v3723_v46 = vsel %vm1856_vm9, %v3691_v20, %v3318_v40 }
 0x68f   : > { %v3478_v50 = vpop.permute.xlu0 %3477 }
 0x690   : > { %v3771_v41 = vsel %vm1889_vm8, %v3739_v24, %v3478_v50  ;;  %v3613_v50 = vsel %vm1724_vm4, %v3581_v43, %v8381_v30 }
 0x691   : > { %4250 = vmatmul.msk.f32.gmra.mxu3 %vm1931_vm10, %v3771_v41  ;;  %v3645_v31 = vsel %vm1757_vm6, %v3613_v50, %v8382_v61 }
 0x692   : > { %v3677_v41 = vsel %vm1790_vm5, %v3645_v31, %v7538_v25 }
 0x693   : > { %v3908_v18 = vpop.f32.mrf.mxu1 }
 0x694   : > { %v3909_v33 = vadd.f32 %v7471_v21, %v3908_v18  ;;  %v3956_v37 = vpop.f32.mrf.mxu3  ;;  %v3446_v36 = vpop.permute.xlu1 %3445 }
 0x695   : > { %v3957_v9 = vadd.f32 %v7471_v21, %v3956_v37  ;;  %v3755_v7 = vsel %vm1889_vm8, %v3723_v46, %v3446_v36  ;;  %v3448_v44 = vpop.permute.xlu2 %3447  ;;  %v4002_v36 = vld [vmem:[%s4461_s24 + $0x20] sm:$0xff] }
 0x696   : > { %v4032_v13 = vadd.f32 %v4000_v8, %v3909_v33  ;;  %4234 = vmatmul.msk.f32.gmra.mxu1 %vm1931_vm10, %v3755_v7  ;;  %v4018_v7 = vld [vmem:[%s4461_s24 + $0xa0] sm:$0xff] }
 0x697   : > { %v4048_v35 = vadd.f32 %v4016_v17, %v3957_v9  ;;  %v3224_v39 = vpop.permute.xlu0 %3223 }
 0x698   : > { %v4064_v3 = vmax.f32 %v4032_v13, 0.0  ;;  %v3708_v40 = vsel %vm1823_vm7, %v7233_v38, %v3224_v39  ;;  %v3596_v38 = vsel %vm1724_vm4, %v3564_v26, %v8376_v51 }
 0x699   : > { %v4080_v56 = vmax.f32 %v4048_v35, 0.0  ;;  %v3740_v32 = vsel %vm1856_vm9, %v3708_v40, %v3352_v60  ;;  %v3628_v60 = vsel %vm1757_vm6, %v3596_v38, %v8377_v5  ;;  %v4329_v40 = vld [vmem:[#allocation2 + $0x90] sm:$0xff] }
 0x69a   : > { %4096 = vst.msk [vmem:[%s7490_s15 + $0x10] sm:$0xff] %vm225_vm0, %v4064_v3  ;;  %v3660_v54 = vsel %vm1790_vm5, %v3628_v60, %v8378_v27 }
 0x69b   : > { %4112 = vst.msk [vmem:[%s7490_s15 + $0x90] sm:$0xff] %vm225_vm0, %v4080_v56 }
 0x69c   : > { %v3192_v42 = vpop.permute.xlu1 %3191 }
 0x69d   : > { %v3194_v0 = vpop.permute.xlu2 %3193  ;;  %v3692_v49 = vsel %vm1823_vm7, %v3660_v54, %v3192_v42  ;;  %v8383_v42 = vld [vmem:[#allocation44_spill] sm:$0xff] }
 0x69f   : > { %v3480_v12 = vpop.permute.xlu0 %3479 }
 0x6a0   : > { %v3772_v15 = vsel %vm1889_vm8, %v3740_v32, %v3480_v12  ;;  %v3533_v12 = vsel %vm225_vm0, %v4329_v40, %v8383_v42 }
 0x6a1   : > { %4251 = vmatmul.msk.f32.gmra.mxu3 %vm1931_vm10, %v3772_v15  ;;  %v8384_v15 = vld [vmem:[#allocation36_spill] sm:$0xff]  ;;  %v3565_v29 = vsel %vm1691_vm3, %v3533_v12, %v8385_v57 }
 0x6a2   : > { %v3597_v26 = vsel %vm1724_vm4, %v3565_v29, %v8386_v19  ;;  %v8391_v57 = vld [vmem:[#allocation96_spill] sm:$0xff] }
 0x6a3   : > { %v3911_v23 = vpop.f32.mrf.mxu1 }
 0x6a4   : > { %v3912_v62 = vadd.f32 %v7471_v21, %v3911_v23  ;;  %v3959_v6 = vpop.f32.mrf.mxu3  ;;  %v3226_v16 = vpop.permute.xlu1 %3225  ;;  %v8387_v23 = vld [vmem:[#allocation124_spill] sm:$0xff] }
 0x6a5   : > { %v3960_v63 = vadd.f32 %v7471_v21, %v3959_v6  ;;  %v3228_v20 = vpop.permute.xlu2 %3227  ;;  %v3709_v18 = vsel %vm1823_vm7, %v3677_v41, %v3226_v16  ;;  %v4004_v41 = vld [vmem:[%s4461_s24 + $0x30] sm:$0xff] }
 0x6a6   : > { %v4033_v55 = vadd.f32 %v4001_v14, %v3912_v62  ;;  %v3629_v14 = vsel %vm1757_vm6, %v3597_v26, %v8387_v23  ;;  %v4005_v26 = vld [vmem:[%s4461_s24 + $0x38] sm:$0xff] }
 0x6a7   : > { %v4049_v11 = vadd.f32 %v4017_v34, %v3960_v63  ;;  %v3320_v59 = vpop.permute.xlu0 %3319  ;;  %v3661_v62 = vsel %vm1790_vm5, %v3629_v14, %v7099_v47  ;;  %v4003_v47 = vld [vmem:[%s4461_s24 + $0x28] sm:$0xff]  ;;  %v8392_v23 = vld [vmem:[#allocation84_spill] sm:$0xff] }
 0x6a8   : > { %v4065_v48 = vmax.f32 %v4033_v55, 0.0  ;;  %v3724_v52 = vsel %vm1856_vm9, %v3692_v49, %v3320_v59  ;;  %v3693_v34 = vsel %vm1823_vm7, %v3661_v62, %v3194_v0  ;;  %v4019_v0 = vld [vmem:[%s4461_s24 + $0xa8] sm:$0xff]  ;;  %v4021_v62 = vld [vmem:[%s4461_s24 + $0xb8] sm:$0xff] }
 0x6a9   : > { %v4081_v58 = vmax.f32 %v4049_v11, 0.0  ;;  %v3756_v1 = vsel %vm1889_vm8, %v3724_v52, %v3448_v44 }
 0x6aa   : > { %4097 = vst.msk [vmem:[%s7490_s15 + $0x18] sm:$0xff] %vm225_vm0, %v4065_v48  ;;  %4235 = vmatmul.msk.f32.gmra.mxu1 %vm1931_vm10, %v3756_v1 }
 0x6ab   : > { %4113 = vst.msk [vmem:[%s7490_s15 + $0x98] sm:$0xff] %vm225_vm0, %v4081_v58 }
 0x6ac   : > { %v3482_v24 = vpop.permute.xlu1 %3481 }
 0x6ad   : > { %v3484_v56 = vpop.permute.xlu2 %3483 }
 0x6af   : > { %v3354_v8 = vpop.permute.xlu0 %3353 }
 0x6b0   : > { %v3741_v33 = vsel %vm1856_vm9, %v3709_v18, %v3354_v8  ;;  %v4020_v8 = vld [vmem:[%s4461_s24 + $0xb0] sm:$0xff] }
 0x6b1   : > { %v3773_v37 = vsel %vm1889_vm8, %v3741_v33, %v3482_v24  ;;  %v8388_v24 = vld [vmem:[#allocation10_spill] sm:$0xff] }
 0x6b2   : > { %4252 = vmatmul.msk.f32.gmra.mxu3 %vm1931_vm10, %v3773_v37 }
 0x6b3   : > { %v3914_v17 = vpop.f32.mrf.mxu1 }
 0x6b4   : > { %v3915_v46 = vadd.f32 %v7471_v21, %v3914_v17  ;;  %v3962_v9 = vpop.f32.mrf.mxu3  ;;  %v3322_v13 = vpop.permute.xlu1 %3321 }
 0x6b5   : > { %v3963_v25 = vadd.f32 %v7471_v21, %v3962_v9  ;;  %v3725_v5 = vsel %vm1856_vm9, %v3693_v34, %v3322_v13  ;;  %v3324_v27 = vpop.permute.xlu2 %3323 }
 0x6b6   : > { %v4034_v35 = vadd.f32 %v4002_v36, %v3915_v46 }
 0x6b7   : > { %v4050_v39 = vadd.f32 %v4018_v7, %v3963_v25  ;;  %v3100_v3 = vpop.permute.xlu0 %3099 }
 0x6b8   : > { %v4066_v44 = vmax.f32 %v4034_v35, 0.0  ;;  %v3678_v2 = vsel %vm1790_vm5, %v8384_v15, %v3100_v3  ;;  %v8389_v3 = vld [vmem:[#allocation105_spill] sm:$0xff] }
 0x6b9   : > { %v4082_v32 = vmax.f32 %v4050_v39, 0.0  ;;  %v3710_v38 = vsel %vm1823_vm7, %v3678_v2, %v3228_v20  ;;  %v8390_v15 = vld [vmem:[#allocation49_spill] sm:$0xff] }
 0x6ba   : > { %4098 = vst.msk [vmem:[%s7490_s15 + $0x20] sm:$0xff] %vm225_vm0, %v4066_v44 }
 0x6bb   : > { %4114 = vst.msk [vmem:[%s7490_s15 + $0xa0] sm:$0xff] %vm225_vm0, %v4082_v32  ;;  %v4330_v32 = vld [vmem:[#allocation2 + $0x170] sm:$0xff] }
 0x6bc   : > { %v3356_v51 = vpop.permute.xlu1 %3355  ;;  %v3552_v2 = vsel %vm225_vm0, %v4330_v32, %v8390_v15 }
 0x6bd   : > { %v3742_v6 = vsel %vm1856_vm9, %v3710_v38, %v3356_v51  ;;  %v3358_v10 = vpop.permute.xlu2 %3357  ;;  %v3584_v29 = vsel %vm1691_vm3, %v3552_v2, %v8391_v57  ;;  %v4009_v57 = vld [vmem:[%s4461_s24 + $0x58] sm:$0xff] }
 0x6be   : > { %v3774_v16 = vsel %vm1889_vm8, %v3742_v6, %v3484_v56  ;;  %v3616_v14 = vsel %vm1724_vm4, %v3584_v29, %v8392_v23  ;;  %v8393_v6 = vld [vmem:[#allocation159_spill] sm:$0xff] }
 0x6bf   : > { %v3450_v60 = vpop.permute.xlu0 %3449  ;;  %4253 = vmatmul.msk.f32.gmra.mxu3 %vm1931_vm10, %v3774_v16  ;;  %v3648_v34 = vsel %vm1757_vm6, %v3616_v14, %v8393_v6 }
 0x6c0   : > { %v3757_v63 = vsel %vm1889_vm8, %v3725_v5, %v3450_v60 }
 0x6c1   : > { %4236 = vmatmul.msk.f32.gmra.mxu1 %vm1931_vm10, %v3757_v63 }
 0x6c3   : > { %v3917_v54 = vpop.f32.mrf.mxu1 }
 0x6c4   : > { %v3918_v55 = vadd.f32 %v7471_v21, %v3917_v54  ;;  %v3965_v49 = vpop.f32.mrf.mxu3  ;;  %v3102_v11 = vpop.permute.xlu1 %3101 }
 0x6c5   : > { %v3966_v59 = vadd.f32 %v7471_v21, %v3965_v49  ;;  %v3679_v61 = vsel %vm1790_vm5, %v8388_v24, %v3102_v11  ;;  %v3104_v17 = vpop.permute.xlu2 %3103 }
 0x6c6   : > { %v4035_v48 = vadd.f32 %v4003_v47, %v3918_v55  ;;  %v3680_v5 = vsel %vm1790_vm5, %v3648_v34, %v3104_v17 }
 0x6c7   : > { %v4051_v52 = vadd.f32 %v4019_v0, %v3966_v59  ;;  %v3196_v58 = vpop.permute.xlu0 %3195 }
 0x6c8   : > { %v4067_v1 = vmax.f32 %v4035_v48, 0.0  ;;  %v3694_v53 = vsel %vm1823_vm7, %v7094_v4, %v3196_v58 }
 0x6c9   : > { %v4083_v28 = vmax.f32 %v4051_v52, 0.0  ;;  %v3726_v43 = vsel %vm1856_vm9, %v3694_v53, %v3324_v27 }
 0x6ca   : > { %4099 = vst.msk [vmem:[%s7490_s15 + $0x28] sm:$0xff] %vm225_vm0, %v4067_v1 }
 0x6cb   : > { %4115 = vst.msk [vmem:[%s7490_s15 + $0xa8] sm:$0xff] %vm225_vm0, %v4083_v28 }
 0x6cc   : > { %v3452_v22 = vpop.permute.xlu1 %3451 }
 0x6cd   : > { %v3758_v30 = vsel %vm1889_vm8, %v3726_v43, %v3452_v22  ;;  %v3454_v40 = vpop.permute.xlu2 %3453 }
 0x6ce   : > { %4237 = vmatmul.msk.f32.gmra.mxu1 %vm1931_vm10, %v3758_v30  ;;  %v4022_v30 = vld [vmem:[%s4461_s24 + $0xc0] sm:$0xff] }
 0x6cf   : > { %v3230_v50 = vpop.permute.xlu0 %3229 }
 0x6d0   : > { %v3711_v4 = vsel %vm1823_vm7, %v3679_v61, %v3230_v50 }
 0x6d1   : > { %v3743_v7 = vsel %vm1856_vm9, %v3711_v4, %v3358_v10  ;;  %v4006_v10 = vld [vmem:[%s4461_s24 + $0x40] sm:$0xff]  ;;  %v4007_v4 = vld [vmem:[%s4461_s24 + $0x48] sm:$0xff] }
 0x6d3   : > { %v3920_v31 = vpop.f32.mrf.mxu1 }
 0x6d4   : > { %v3921_v20 = vadd.f32 %v7471_v21, %v3920_v31  ;;  %v3968_v18 = vpop.f32.mrf.mxu3  ;;  %v3198_v33 = vpop.permute.xlu1 %3197 }
 0x6d5   : > { %v3969_v37 = vadd.f32 %v7471_v21, %v3968_v18  ;;  %v3695_v56 = vsel %vm1823_vm7, %v8389_v3, %v3198_v33  ;;  %v3200_v59 = vpop.permute.xlu2 %3199 }
 0x6d6   : > { %v4036_v36 = vadd.f32 %v4004_v41, %v3921_v20  ;;  %v3696_v48 = vsel %vm1823_vm7, %v7120_v45, %v3200_v59 }
 0x6d7   : > { %v4052_v46 = vadd.f32 %v4020_v8, %v3969_v37  ;;  %v3486_v9 = vpop.permute.xlu0 %3485  ;;  %v4023_v8 = vld [vmem:[%s4461_s24 + $0xc8] sm:$0xff] }
 0x6d8   : > { %v4068_v13 = vmax.f32 %v4036_v36, 0.0  ;;  %v3775_v25 = vsel %vm1889_vm8, %v3743_v7, %v3486_v9  ;;  %v4008_v7 = vld [vmem:[%s4461_s24 + $0x50] sm:$0xff] }
 0x6d9   : > { %v4084_v35 = vmax.f32 %v4052_v46, 0.0  ;;  %4254 = vmatmul.msk.f32.gmra.mxu3 %vm1931_vm10, %v3775_v25 }
 0x6da   : > { %4100 = vst.msk [vmem:[%s7490_s15 + $0x30] sm:$0xff] %vm225_vm0, %v4068_v13 }
 0x6db   : > { %4116 = vst.msk [vmem:[%s7490_s15 + $0xb0] sm:$0xff] %vm225_vm0, %v4084_v35  ;;  %v4024_v35 = vld [vmem:[%s4461_s24 + $0xd0] sm:$0xff] }
 0x6dc   : > { %v3232_v39 = vpop.permute.xlu1 %3231 }
 0x6dd   : > { %v3712_v27 = vsel %vm1823_vm7, %v3680_v5, %v3232_v39 }
 0x6df   : > { %v3326_v44 = vpop.permute.xlu0 %3325 }
 0x6e0   : > { %v3727_v42 = vsel %vm1856_vm9, %v3695_v56, %v3326_v44 }
 0x6e1   : > { %v3759_v12 = vsel %vm1889_vm8, %v3727_v42, %v3454_v40 }
 0x6e2   : > { %4238 = vmatmul.msk.f32.gmra.mxu1 %vm1931_vm10, %v3759_v12  ;;  %v4025_v12 = vld [vmem:[%s4461_s24 + $0xd8] sm:$0xff] }
 0x6e3   : > { %v3923_v19 = vpop.f32.mrf.mxu1 }
 0x6e4   : > { %v3924_v51 = vadd.f32 %v7471_v21, %v3923_v19  ;;  %v3971_v38 = vpop.f32.mrf.mxu3  ;;  %v3488_v63 = vpop.permute.xlu1 %3487 }
 0x6e5   : > { %v3972_v16 = vadd.f32 %v7471_v21, %v3971_v38 }
 0x6e6   : > { %v4037_v60 = vadd.f32 %v4005_v26, %v3924_v51  ;;  %v4026_v51 = vld [vmem:[%s4461_s24 + $0xe0] sm:$0xff] }
 0x6e7   : > { %v4053_v54 = vadd.f32 %v4021_v62, %v3972_v16  ;;  %v3360_v47 = vpop.permute.xlu0 %3359  ;;  %v4010_v16 = vld [vmem:[%s4461_s24 + $0x60] sm:$0xff] }
 0x6e8   : > { %v4069_v55 = vmax.f32 %v4037_v60, 0.0  ;;  %v3744_v49 = vsel %vm1856_vm9, %v3712_v27, %v3360_v47  ;;  %v4027_v27 = vld [vmem:[%s4461_s24 + $0xe8] sm:$0xff] }
 0x6e9   : > { %v4085_v0 = vmax.f32 %v4053_v54, 0.0  ;;  %v3776_v11 = vsel %vm1889_vm8, %v3744_v49, %v3488_v63 }
 0x6ea   : > { %4101 = vst.msk [vmem:[%s7490_s15 + $0x38] sm:$0xff] %vm225_vm0, %v4069_v55  ;;  %4255 = vmatmul.msk.f32.gmra.mxu3 %vm1931_vm10, %v3776_v11  ;;  %v4011_v11 = vld [vmem:[%s4461_s24 + $0x68] sm:$0xff] }
 0x6eb   : > { %4117 = vst.msk [vmem:[%s7490_s15 + $0xb8] sm:$0xff] %vm225_vm0, %v4085_v0 }
 0x6ec   : > { %v3456_v58 = vpop.permute.xlu1 %3455 }
 0x6ef   : > { %v3328_v52 = vpop.permute.xlu0 %3327 }
 0x6f0   : > { %v3728_v1 = vsel %vm1856_vm9, %v3696_v48, %v3328_v52 }
 0x6f1   : > { %v3760_v28 = vsel %vm1889_vm8, %v3728_v1, %v3456_v58  ;;  %v4028_v1 = vld [vmem:[%s4461_s24 + $0xf0] sm:$0xff] }
 0x6f2   : > { %4239 = vmatmul.msk.f32.gmra.mxu1 %vm1931_vm10, %v3760_v28 }
 0x6f3   : > { %v3926_v53 = vpop.f32.mrf.mxu1 }
 0x6f4   : > { %v3927_v22 = vadd.f32 %v7471_v21, %v3926_v53  ;;  %v3974_v43 = vpop.f32.mrf.mxu3 }
 0x6f5   : > { %v3975_v45 = vadd.f32 %v7471_v21, %v3974_v43 }
 0x6f6   : > { %v4038_v50 = vadd.f32 %v4006_v10, %v3927_v22  ;;  %v4012_v22 = vld [vmem:[%s4461_s24 + $0x70] sm:$0xff] }
 0x6f7   : > { %v4054_v24 = vadd.f32 %v4022_v30, %v3975_v45 }
 0x6f8   : > { %v4070_v61 = vmax.f32 %v4038_v50, 0.0 }
 0x6f9   : > { %v4086_v31 = vmax.f32 %v4054_v24, 0.0 }
 0x6fa   : > { %4102 = vst.msk [vmem:[%s7490_s15 + $0x40] sm:$0xff] %vm225_vm0, %v4070_v61  ;;  %v4029_v61 = vld [vmem:[%s4461_s24 + $0xf8] sm:$0xff] }
 0x6fb   : > { %4118 = vst.msk [vmem:[%s7490_s15 + $0xc0] sm:$0xff] %vm225_vm0, %v4086_v31 }
 0x703   : > { %v3929_v41 = vpop.f32.mrf.mxu1 }
 0x704   : > { %v3930_v20 = vadd.f32 %v7471_v21, %v3929_v41  ;;  %v3977_v18 = vpop.f32.mrf.mxu3 }
 0x705   : > { %v3978_v33 = vadd.f32 %v7471_v21, %v3977_v18 }
 0x706   : > { %v4039_v37 = vadd.f32 %v4007_v4, %v3930_v20  ;;  %v4013_v4 = vld [vmem:[%s4461_s24 + $0x78] sm:$0xff] }
 0x707   : > { %v4055_v17 = vadd.f32 %v4023_v8, %v3978_v33 }
 0x708   : > { %v4071_v36 = vmax.f32 %v4039_v37, 0.0 }
 0x709   : > { %v4087_v46 = vmax.f32 %v4055_v17, 0.0 }
 0x70a   : > { %4103 = vst.msk [vmem:[%s7490_s15 + $0x48] sm:$0xff] %vm225_vm0, %v4071_v36 }
 0x70b   : > { %4119 = vst.msk [vmem:[%s7490_s15 + $0xc8] sm:$0xff] %vm225_vm0, %v4087_v46 }
 0x713   : > { %v3932_v9 = vpop.f32.mrf.mxu1 }
 0x714   : > { %v3933_v13 = vadd.f32 %v7471_v21, %v3932_v9  ;;  %v3980_v25 = vpop.f32.mrf.mxu3 }
 0x715   : > { %v3981_v39 = vadd.f32 %v7471_v21, %v3980_v25 }
 0x716   : > { %v4040_v3 = vadd.f32 %v4008_v7, %v3933_v13 }
 0x717   : > { %v4056_v56 = vadd.f32 %v4024_v35, %v3981_v39 }
 0x718   : > { %v4072_v44 = vmax.f32 %v4040_v3, 0.0 }
 0x719   : > { %v4088_v40 = vmax.f32 %v4056_v56, 0.0 }
 0x71a   : > { %4104 = vst.msk [vmem:[%s7490_s15 + $0x50] sm:$0xff] %vm225_vm0, %v4072_v44 }
 0x71b   : > { %4120 = vst.msk [vmem:[%s7490_s15 + $0xd0] sm:$0xff] %vm225_vm0, %v4088_v40 }
 0x724   : > { %v3983_v42 = vpop.f32.mrf.mxu3 }
 0x725   : > { %v3984_v32 = vadd.f32 %v7471_v21, %v3983_v42 }
 0x727   : > { %v4057_v15 = vadd.f32 %v4025_v12, %v3984_v32  ;;  %v3935_v2 = vpop.f32.mrf.mxu1 }
 0x728   : > { %v3936_v29 = vadd.f32 %v7471_v21, %v3935_v2 }
 0x729   : > { %v4089_v19 = vmax.f32 %v4057_v15, 0.0 }
 0x72a   : > { %v4041_v26 = vadd.f32 %v4009_v57, %v3936_v29 }
 0x72b   : > { %4121 = vst.msk [vmem:[%s7490_s15 + $0xd8] sm:$0xff] %vm225_vm0, %v4089_v19 }
 0x72c   : > { %v4073_v23 = vmax.f32 %v4041_v26, 0.0 }
 0x72e   : > { %4105 = vst.msk [vmem:[%s7490_s15 + $0x58] sm:$0xff] %vm225_vm0, %v4073_v23 }
 0x735   : > { %v3986_v14 = vpop.f32.mrf.mxu3 }
 0x736   : > { %v3987_v38 = vadd.f32 %v7471_v21, %v3986_v14 }
 0x738   : > { %v4058_v62 = vadd.f32 %v4026_v51, %v3987_v38 }
 0x73a   : > { %v4090_v6 = vmax.f32 %v4058_v62, 0.0 }
 0x73c   : > { %4122 = vst.msk [vmem:[%s7490_s15 + $0xe0] sm:$0xff] %vm225_vm0, %v4090_v6 }
 0x73e   : > { %v3938_v34 = vpop.f32.mrf.mxu1 }
 0x73f   : > { %v3939_v5 = vadd.f32 %v7471_v21, %v3938_v34 }
 0x741   : > { %v4042_v60 = vadd.f32 %v4010_v16, %v3939_v5 }
 0x742   : > { %v3989_v63 = vpop.f32.mrf.mxu3 }
 0x743   : > { %v4074_v54 = vmax.f32 %v4042_v60, 0.0  ;;  %v3990_v47 = vadd.f32 %v7471_v21, %v3989_v63 }
 0x745   : > { %4106 = vst.msk [vmem:[%s7490_s15 + $0x60] sm:$0xff] %vm225_vm0, %v4074_v54  ;;  %v4059_v55 = vadd.f32 %v4027_v27, %v3990_v47 }
 0x747   : > { %v4091_v49 = vmax.f32 %v4059_v55, 0.0 }
 0x749   : > { %4123 = vst.msk [vmem:[%s7490_s15 + $0xe8] sm:$0xff] %vm225_vm0, %v4091_v49 }
 0x74b   : > { %v3941_v0 = vpop.f32.mrf.mxu1 }
 0x74c   : > { %v3942_v59 = vadd.f32 %v7471_v21, %v3941_v0 }
 0x74e   : > { %v4043_v48 = vadd.f32 %v4011_v11, %v3942_v59 }
 0x750   : > { %v4075_v52 = vmax.f32 %v4043_v48, 0.0 }
 0x752   : > { %4107 = vst.msk [vmem:[%s7490_s15 + $0x68] sm:$0xff] %vm225_vm0, %v4075_v52 }
 0x75c   : > { %v3992_v58 = vpop.f32.mrf.mxu3 }
 0x75d   : > { %v3993_v28 = vadd.f32 %v7471_v21, %v3992_v58 }
 0x75f   : > { %v4060_v53 = vadd.f32 %v4028_v1, %v3993_v28  ;;  %v3944_v10 = vpop.f32.mrf.mxu1 }
 0x760   : > { %v3945_v43 = vadd.f32 %v7471_v21, %v3944_v10 }
 0x761   : > { %v4092_v30 = vmax.f32 %v4060_v53, 0.0 }
 0x762   : > { %v4044_v45 = vadd.f32 %v4012_v22, %v3945_v43 }
 0x763   : > { %4124 = vst.msk [vmem:[%s7490_s15 + $0xf0] sm:$0xff] %vm225_vm0, %v4092_v30 }
 0x764   : > { %v4076_v50 = vmax.f32 %v4044_v45, 0.0 }
 0x766   : > { %4108 = vst.msk [vmem:[%s7490_s15 + $0x70] sm:$0xff] %vm225_vm0, %v4076_v50 }
 0x76d   : > { %v3995_v24 = vpop.f32.mrf.mxu3 }
 0x76e   : > { %v3996_v31 = vadd.f32 %v7471_v21, %v3995_v24 }
 0x76f   : > { %v3947_v41 = vpop.f32.mrf.mxu1 }
 0x770   : > { %v4061_v20 = vadd.f32 %v4029_v61, %v3996_v31  ;;  %v3948_v18 = vadd.f32 %v7471_v21, %v3947_v41 }
 0x772   : > { %v4093_v8 = vmax.f32 %v4061_v20, 0.0  ;;  %v4045_v33 = vadd.f32 %v4013_v4, %v3948_v18 }
 0x774   : > { %4125 = vst.msk [vmem:[%s7490_s15 + $0xf8] sm:$0xff] %vm225_vm0, %v4093_v8  ;;  %v4077_v37 = vmax.f32 %v4045_v33, 0.0 }
 0x776   : > { %4109 = vst.msk [vmem:[%s7490_s15 + $0x78] sm:$0xff] %vm225_vm0, %v4077_v37 }
 0x777 PF: > { %s15_s18 = sadd.s32 1, %s4337_s18  }
 0x778   : > { %p12_p4 = scmp.ge.s32.totalorder %s15_s18, 4  }
 0x77a   :  { %14 = sbr.rel (!%p12_p4) target bundleno = 1 (0x1), region = 72 }

</bundles_post_ra>
